<compile_context>
chip_gen: v7x
topology: tpu7x:2x2x1
jax: 0.10.0
libtpu: 0.0.40
codegen_flags: <defaults>
</compile_context>

<pallas_src>
import jax
import jax.numpy as jnp
import numpy as np
from jax.experimental import pallas as pl
from jax.experimental.pallas import tpu as pltpu

PAD = 2      # sequence zero-pad on each side (covers the fused k=5 filter)
LANE = 128   # TPU lane width


def _round_up(x, m):
    return (x + m - 1) // m * m


# ---------------------------------------------------------------------------
# kernel
# ---------------------------------------------------------------------------
def _conv_relu_maxpool(x_pad, w, b_row):
    """Fused 5-tap 'SAME' conv -> bias -> ReLU -> global max-pool over L.

    x_pad: (TB, L + 2*PAD, Cin) bf16, zero padded (sequence + channels).
    w:     (5, Cin, Cout) bf16.    b_row: (1, Cout) f32.
    Returns (TB, Cout) f32.
    """
    tb, lp, cin = x_pad.shape
    k_taps, _, cout = w.shape
    l = lp - 2 * PAD

    def tap(k):
        # Cin is a multiple of 128, so this reshape is layout preserving.
        xs = x_pad[:, k:k + l, :].reshape(tb * l, cin)
        return jnp.dot(xs, w[k], preferred_element_type=jnp.float32)

    acc = tap(0)                              # init from tap 0 (no zeros + add)
    for k in range(1, k_taps):                # short static loop, MXU matmuls
        acc = acc + tap(k)
    acc = jnp.maximum(acc + b_row, 0.0)       # bias + ReLU
    return jnp.max(acc.reshape(tb, l, cout), axis=1)   # global max-pool over L


def text_classifier_kernel(title_ref, abs_ref,
                           wt_ref, bt_ref, wa_ref, ba_ref,
                           wct_ref, wca_ref, bcls_ref, out_ref):
    t_feat = _conv_relu_maxpool(title_ref[...], wt_ref[...], bt_ref[...])
    a_feat = _conv_relu_maxpool(abs_ref[...], wa_ref[...], ba_ref[...])
    # classifier: VPU multiply + lane reduction instead of concat + N=1 matmul
    out_ref[...] = (jnp.sum(t_feat * wct_ref[...], axis=-1, keepdims=True)
                    + jnp.sum(a_feat * wca_ref[...], axis=-1, keepdims=True)
                    + bcls_ref[...])


# ---------------------------------------------------------------------------
# wrapper
# ---------------------------------------------------------------------------
def _fuse_conv_weights(w3, b3, w5, b5, cin_pad):
    """Pack the (k=3, k=5) convs that read the same input into one 5-tap
    filter with concatenated, lane-padded output channels."""
    _, cin, c = w5.shape
    cout_pad = _round_up(2 * c, LANE)
    wf = jnp.zeros((5, cin_pad, cout_pad), jnp.float32)
    wf = wf.at[1:4, :cin, :c].set(w3)          # k=3 filter lives in taps 1..3
    wf = wf.at[:, :cin, c:2 * c].set(w5)
    bf = jnp.zeros((1, cout_pad), jnp.float32)
    bf = bf.at[:, :c].set(b3).at[:, c:2 * c].set(b5)
    return wf.astype(jnp.bfloat16), bf


def _pick_batch_tile(b_pad, bytes_per_batch_row):
    """Largest tile in {64,32,16} that divides b_pad, keeps >=2 grid steps for
    DMA/compute overlap, and fits double-buffered input tiles in VMEM budget."""
    budget = 24 << 20
    for cand in (64, 32, 16):
        if (b_pad % cand == 0 and b_pad // cand >= 2
                and 4 * cand * bytes_per_batch_row <= budget):
            return cand
    return 8


@jax.jit
def text_classifier_forward(title_ids, abstract_ids, params):
    emb = params["embedding"]                  # (V, 6E) f32
    cin = emb.shape[1]
    e = cin // 6
    cin_pad = _round_up(cin, LANE)

    # Pad the embedding table's channel dim once and cast to bf16 so the
    # gathered activations come out lane-aligned and half-width.
    emb_p = jnp.pad(emb, ((0, 0), (0, cin_pad - cin))).astype(jnp.bfloat16)

    b, lt = title_ids.shape
    _, la = abstract_ids.shape
    b_pad = _round_up(b, 8)
    # bf16 bytes of one batch row of padded title + abstract activations
    bytes_per_batch_row = (lt + 2 * PAD + la + 2 * PAD) * cin_pad * 2
    tb = _pick_batch_tile(b_pad, bytes_per_batch_row)

    # Gather embeddings, then pad: batch -> tile multiple, sequence -> +2 each side.
    t = jnp.pad(jnp.take(emb_p, title_ids, axis=0),
                ((0, b_pad - b), (PAD, PAD), (0, 0)))
    a = jnp.pad(jnp.take(emb_p, abstract_ids, axis=0),
                ((0, b_pad - b), (PAD, PAD), (0, 0)))
    # TODO(synk): for very large B*L, scalar-prefetch the token ids and gather
    # rows in-kernel to avoid materialising padded activations in HBM.

    wt_f, bt_f = _fuse_conv_weights(params["wt3"], params["bt3"],
                                    params["wt5"], params["bt5"], cin_pad)
    wa_f, ba_f = _fuse_conv_weights(params["wa3"], params["ba3"],
                                    params["wa5"], params["ba5"], cin_pad)
    ct_pad, ca_pad = wt_f.shape[2], wa_f.shape[2]

    # Split the (6E, 1) classifier to match the fused conv output layouts:
    # title pooled = [t3 | t5 | 0-pad], abstract pooled = [a3 | a5 | 0-pad].
    wcls = params["wcls"][:, 0]
    wct = jnp.zeros((1, ct_pad), jnp.float32).at[0, :2 * e].set(wcls[:2 * e])
    wca = jnp.zeros((1, ca_pad), jnp.float32).at[0, :4 * e].set(wcls[2 * e:])
    bcls = params["bcls"]

    grid = (pl.cdiv(b_pad, tb),)

    def _tiled(shape):
        n = len(shape) - 1
        return pl.BlockSpec((tb,) + shape[1:], lambda i, _n=n: (i,) + (0,) * _n)

    def _const(shape):
        n = len(shape)
        return pl.BlockSpec(shape, lambda i, _n=n: (0,) * _n)

    inputs = [t, a, wt_f, bt_f, wa_f, ba_f, wct, wca, bcls]
    in_specs = ([_tiled(t.shape), _tiled(a.shape)]
                + [_const(x.shape) for x in inputs[2:]])

    out = pl.pallas_call(
        text_classifier_kernel,
        out_shape=jax.ShapeDtypeStruct((b_pad, 1), jnp.float32),
        grid=grid,
        in_specs=in_specs,
        out_specs=pl.BlockSpec((tb, 1), lambda i: (i, 0)),
        compiler_params=pltpu.CompilerParams(
            dimension_semantics=("parallel",),
            vmem_limit_bytes=48 << 20),
    )(*inputs)
    return out[:b]


# ---------------------------------------------------------------------------
# pure-JAX reference (f32) and params
# ---------------------------------------------------------------------------
def reference_forward(title_ids, abstract_ids, params):
    emb = params["embedding"]
    t_emb = jnp.take(emb, title_ids, axis=0)
    a_emb = jnp.take(emb, abstract_ids, axis=0)

    def conv_relu_max(x, w, bias):
        out = jax.lax.conv_general_dilated(
            x, w, window_strides=(1,), padding="SAME",
            dimension_numbers=("NWC", "WIO", "NWC"))
        out = jax.nn.relu(out + bias)
        return jnp.max(out, axis=1)

    t3 = conv_relu_max(t_emb, params["wt3"], params["bt3"])
    t5 = conv_relu_max(t_emb, params["wt5"], params["bt5"])
    a3 = conv_relu_max(a_emb, params["wa3"], params["ba3"])
    a5 = conv_relu_max(a_emb, params["wa5"], params["ba5"])
    feat = jnp.concatenate([t3, t5, a3, a5], axis=1)
    return feat @ params["wcls"] + params["bcls"]


def make_params(key, vocab_size, embedding_dim):
    E = embedding_dim
    Cin = 6 * E
    ks = jax.random.split(key, 11)

    def u(k, shape, fan_in):
        bound = 1.0 / np.sqrt(fan_in)
        return jax.random.uniform(k, shape, jnp.float32, -bound, bound)

    return {
        "embedding": jax.random.normal(ks[0], (vocab_size, Cin), jnp.float32) * 0.1,
        # conv weights stored as (K, Cin, Cout); biases as (1, Cout)
        "wt3": u(ks[1], (3, Cin, E),     3 * Cin), "bt3": u(ks[2], (1, E),     3 * Cin),
        "wt5": u(ks[3], (5, Cin, E),     5 * Cin), "bt5": u(ks[4], (1, E),     5 * Cin),
        "wa3": u(ks[5], (3, Cin, 2 * E), 3 * Cin), "ba3": u(ks[6], (1, 2 * E), 3 * Cin),
        "wa5": u(ks[7], (5, Cin, 2 * E), 5 * Cin), "ba5": u(ks[8], (1, 2 * E), 5 * Cin),
        # classifier: (6E, 1) weight, (1, 1) bias
        "wcls": u(ks[9], (Cin, 1), Cin), "bcls": u(ks[10], (1, 1), Cin),
    }


if __name__ == "__main__":
    vocab_size = 50
    embedding_dim = 32          # -> embedding width 192 (padded to 256 in-kernel)
    B, Lt, La = 16, 8, 16       # B=16, TB=8 -> grid of 2 batch tiles

    key = jax.random.PRNGKey(0)
    k_params, k_title, k_abs = jax.random.split(key, 3)
    params = make_params(k_params, vocab_size, embedding_dim)

    title_ids = jax.random.randint(k_title, (B, Lt), 0, vocab_size, dtype=jnp.int32)
    abstract_ids = jax.random.randint(k_abs, (B, La), 0, vocab_size, dtype=jnp.int32)

    out = text_classifier_forward(title_ids, abstract_ids, params)
    out = jax.block_until_ready(out)

    ref = jax.block_until_ready(reference_forward(title_ids, abstract_ids, params))
    assert out.shape == (B, 1)
    # bf16 activations/weights with f32 accumulation -> looser tolerance than f32
    np.testing.assert_allclose(np.asarray(out), np.asarray(ref), rtol=2e-2, atol=2e-2)

    print("KERNEL_OK")
</pallas_src>

<mosaic_0001>
module attributes {stable_mosaic.version = 11 : i64} {
  func.func @text_classifier_kernel(%arg0: i32, %arg1: memref<8x12x256xbf16, #tpu.memory_space<vmem>>, %arg2: memref<8x20x256xbf16, #tpu.memory_space<vmem>>, %arg3: memref<5x256x128xbf16, #tpu.memory_space<vmem>>, %arg4: memref<1x128xf32, #tpu.memory_space<vmem>>, %arg5: memref<5x256x128xbf16, #tpu.memory_space<vmem>>, %arg6: memref<1x128xf32, #tpu.memory_space<vmem>>, %arg7: memref<1x128xf32, #tpu.memory_space<vmem>>, %arg8: memref<1x128xf32, #tpu.memory_space<vmem>>, %arg9: memref<1x1xf32, #tpu.memory_space<vmem>>, %arg10: memref<8x1xf32, #tpu.memory_space<vmem>>) attributes {dimension_semantics = [#tpu.dimension_semantics<parallel>], iteration_bounds = array<i64: 2>, scalar_prefetch = 0 : i64, scratch_operands = 0 : i64, tpu.core_type = #tpu.core_type<tc>, window_params = [{transform_indices = @transform_0, window_bounds = array<i64: 8, 12, 256>}, {transform_indices = @transform_1, window_bounds = array<i64: 8, 20, 256>}, {pipeline_mode = #tpu.pipeline_mode<synchronous>, transform_indices = @transform_2, window_bounds = array<i64: 5, 256, 128>}, {pipeline_mode = #tpu.pipeline_mode<synchronous>, transform_indices = @transform_3, window_bounds = array<i64: 1, 128>}, {pipeline_mode = #tpu.pipeline_mode<synchronous>, transform_indices = @transform_4, window_bounds = array<i64: 5, 256, 128>}, {pipeline_mode = #tpu.pipeline_mode<synchronous>, transform_indices = @transform_5, window_bounds = array<i64: 1, 128>}, {pipeline_mode = #tpu.pipeline_mode<synchronous>, transform_indices = @transform_6, window_bounds = array<i64: 1, 128>}, {pipeline_mode = #tpu.pipeline_mode<synchronous>, transform_indices = @transform_7, window_bounds = array<i64: 1, 128>}, {pipeline_mode = #tpu.pipeline_mode<synchronous>, transform_indices = @transform_8, window_bounds = array<i64: 1, 1>}, {transform_indices = @transform_9, window_bounds = array<i64: 8, 1>}]} {
    %c0 = arith.constant 0 : index
    %c0_0 = arith.constant 0 : index
    %c0_1 = arith.constant 0 : index
    %0 = vector.load %arg1[%c0, %c0_0, %c0_1] : memref<8x12x256xbf16, #tpu.memory_space<vmem>>, vector<8x12x256xbf16>
    %c0_2 = arith.constant 0 : index
    %c0_3 = arith.constant 0 : index
    %c0_4 = arith.constant 0 : index
    %1 = vector.load %arg3[%c0_2, %c0_3, %c0_4] : memref<5x256x128xbf16, #tpu.memory_space<vmem>>, vector<5x256x128xbf16>
    %c0_5 = arith.constant 0 : index
    %c0_6 = arith.constant 0 : index
    %2 = vector.load %arg4[%c0_5, %c0_6] : memref<1x128xf32, #tpu.memory_space<vmem>>, vector<1x128xf32>
    %3 = vector.extract_strided_slice %0 {offsets = [0, 0, 0], sizes = [8, 8, 256], strides = [1, 1, 1]} : vector<8x12x256xbf16> to vector<8x8x256xbf16>
    %4 = vector.shape_cast %3 : vector<8x8x256xbf16> to vector<64x256xbf16>
    %5 = vector.extract_strided_slice %1 {offsets = [0, 0, 0], sizes = [1, 256, 128], strides = [1, 1, 1]} : vector<5x256x128xbf16> to vector<1x256x128xbf16>
    %6 = vector.shape_cast %5 : vector<1x256x128xbf16> to vector<256x128xbf16>
    %cst = arith.constant dense<0.000000e+00> : vector<64x128xf32>
    %7 = tpu.matmul %4, %6, %cst {dimension_numbers = #tpu.dot_dimension_numbers<[1], [0], [0], [1], [0, 0, 1, 1], [], []>} : vector<64x256xbf16>, vector<256x128xbf16>, vector<64x128xf32> -> vector<64x128xf32>
    %8 = vector.extract_strided_slice %0 {offsets = [0, 1, 0], sizes = [8, 8, 256], strides = [1, 1, 1]} : vector<8x12x256xbf16> to vector<8x8x256xbf16>
    %9 = vector.shape_cast %8 : vector<8x8x256xbf16> to vector<64x256xbf16>
    %10 = vector.extract_strided_slice %1 {offsets = [1, 0, 0], sizes = [1, 256, 128], strides = [1, 1, 1]} : vector<5x256x128xbf16> to vector<1x256x128xbf16>
    %11 = vector.shape_cast %10 : vector<1x256x128xbf16> to vector<256x128xbf16>
    %cst_7 = arith.constant dense<0.000000e+00> : vector<64x128xf32>
    %12 = tpu.matmul %9, %11, %cst_7 {dimension_numbers = #tpu.dot_dimension_numbers<[1], [0], [0], [1], [0, 0, 1, 1], [], []>} : vector<64x256xbf16>, vector<256x128xbf16>, vector<64x128xf32> -> vector<64x128xf32>
    %13 = arith.addf %7, %12 : vector<64x128xf32>
    %14 = vector.extract_strided_slice %0 {offsets = [0, 2, 0], sizes = [8, 8, 256], strides = [1, 1, 1]} : vector<8x12x256xbf16> to vector<8x8x256xbf16>
    %15 = vector.shape_cast %14 : vector<8x8x256xbf16> to vector<64x256xbf16>
    %16 = vector.extract_strided_slice %1 {offsets = [2, 0, 0], sizes = [1, 256, 128], strides = [1, 1, 1]} : vector<5x256x128xbf16> to vector<1x256x128xbf16>
    %17 = vector.shape_cast %16 : vector<1x256x128xbf16> to vector<256x128xbf16>
    %cst_8 = arith.constant dense<0.000000e+00> : vector<64x128xf32>
    %18 = tpu.matmul %15, %17, %cst_8 {dimension_numbers = #tpu.dot_dimension_numbers<[1], [0], [0], [1], [0, 0, 1, 1], [], []>} : vector<64x256xbf16>, vector<256x128xbf16>, vector<64x128xf32> -> vector<64x128xf32>
    %19 = arith.addf %13, %18 : vector<64x128xf32>
    %20 = vector.extract_strided_slice %0 {offsets = [0, 3, 0], sizes = [8, 8, 256], strides = [1, 1, 1]} : vector<8x12x256xbf16> to vector<8x8x256xbf16>
    %21 = vector.shape_cast %20 : vector<8x8x256xbf16> to vector<64x256xbf16>
    %22 = vector.extract_strided_slice %1 {offsets = [3, 0, 0], sizes = [1, 256, 128], strides = [1, 1, 1]} : vector<5x256x128xbf16> to vector<1x256x128xbf16>
    %23 = vector.shape_cast %22 : vector<1x256x128xbf16> to vector<256x128xbf16>
    %cst_9 = arith.constant dense<0.000000e+00> : vector<64x128xf32>
    %24 = tpu.matmul %21, %23, %cst_9 {dimension_numbers = #tpu.dot_dimension_numbers<[1], [0], [0], [1], [0, 0, 1, 1], [], []>} : vector<64x256xbf16>, vector<256x128xbf16>, vector<64x128xf32> -> vector<64x128xf32>
    %25 = arith.addf %19, %24 : vector<64x128xf32>
    %26 = vector.extract_strided_slice %0 {offsets = [0, 4, 0], sizes = [8, 8, 256], strides = [1, 1, 1]} : vector<8x12x256xbf16> to vector<8x8x256xbf16>
    %27 = vector.shape_cast %26 : vector<8x8x256xbf16> to vector<64x256xbf16>
    %28 = vector.extract_strided_slice %1 {offsets = [4, 0, 0], sizes = [1, 256, 128], strides = [1, 1, 1]} : vector<5x256x128xbf16> to vector<1x256x128xbf16>
    %29 = vector.shape_cast %28 : vector<1x256x128xbf16> to vector<256x128xbf16>
    %cst_10 = arith.constant dense<0.000000e+00> : vector<64x128xf32>
    %30 = tpu.matmul %27, %29, %cst_10 {dimension_numbers = #tpu.dot_dimension_numbers<[1], [0], [0], [1], [0, 0, 1, 1], [], []>} : vector<64x256xbf16>, vector<256x128xbf16>, vector<64x128xf32> -> vector<64x128xf32>
    %31 = arith.addf %25, %30 : vector<64x128xf32>
    %32 = vector.broadcast %2 : vector<1x128xf32> to vector<64x128xf32>
    %33 = arith.addf %31, %32 : vector<64x128xf32>
    %cst_11 = arith.constant 0.000000e+00 : f32
    %34 = vector.broadcast %cst_11 : f32 to vector<64x128xf32>
    %35 = arith.maximumf %33, %34 : vector<64x128xf32>
    %36 = vector.shape_cast %35 : vector<64x128xf32> to vector<8x8x128xf32>
    %cst_12 = arith.constant dense<0xFF800000> : vector<8x128xf32>
    %37 = vector.multi_reduction <maximumf>, %36, %cst_12 [1] : vector<8x8x128xf32> to vector<8x128xf32>
    %c0_13 = arith.constant 0 : index
    %c0_14 = arith.constant 0 : index
    %c0_15 = arith.constant 0 : index
    %38 = vector.load %arg2[%c0_13, %c0_14, %c0_15] : memref<8x20x256xbf16, #tpu.memory_space<vmem>>, vector<8x20x256xbf16>
    %c0_16 = arith.constant 0 : index
    %c0_17 = arith.constant 0 : index
    %c0_18 = arith.constant 0 : index
    %39 = vector.load %arg5[%c0_16, %c0_17, %c0_18] : memref<5x256x128xbf16, #tpu.memory_space<vmem>>, vector<5x256x128xbf16>
    %c0_19 = arith.constant 0 : index
    %c0_20 = arith.constant 0 : index
    %40 = vector.load %arg6[%c0_19, %c0_20] : memref<1x128xf32, #tpu.memory_space<vmem>>, vector<1x128xf32>
    %41 = vector.extract_strided_slice %38 {offsets = [0, 0, 0], sizes = [8, 16, 256], strides = [1, 1, 1]} : vector<8x20x256xbf16> to vector<8x16x256xbf16>
    %42 = vector.shape_cast %41 : vector<8x16x256xbf16> to vector<128x256xbf16>
    %43 = vector.extract_strided_slice %39 {offsets = [0, 0, 0], sizes = [1, 256, 128], strides = [1, 1, 1]} : vector<5x256x128xbf16> to vector<1x256x128xbf16>
    %44 = vector.shape_cast %43 : vector<1x256x128xbf16> to vector<256x128xbf16>
    %cst_21 = arith.constant dense<0.000000e+00> : vector<128x128xf32>
    %45 = tpu.matmul %42, %44, %cst_21 {dimension_numbers = #tpu.dot_dimension_numbers<[1], [0], [0], [1], [0, 0, 1, 1], [], []>} : vector<128x256xbf16>, vector<256x128xbf16>, vector<128x128xf32> -> vector<128x128xf32>
    %46 = vector.extract_strided_slice %38 {offsets = [0, 1, 0], sizes = [8, 16, 256], strides = [1, 1, 1]} : vector<8x20x256xbf16> to vector<8x16x256xbf16>
    %47 = vector.shape_cast %46 : vector<8x16x256xbf16> to vector<128x256xbf16>
    %48 = vector.extract_strided_slice %39 {offsets = [1, 0, 0], sizes = [1, 256, 128], strides = [1, 1, 1]} : vector<5x256x128xbf16> to vector<1x256x128xbf16>
    %49 = vector.shape_cast %48 : vector<1x256x128xbf16> to vector<256x128xbf16>
    %cst_22 = arith.constant dense<0.000000e+00> : vector<128x128xf32>
    %50 = tpu.matmul %47, %49, %cst_22 {dimension_numbers = #tpu.dot_dimension_numbers<[1], [0], [0], [1], [0, 0, 1, 1], [], []>} : vector<128x256xbf16>, vector<256x128xbf16>, vector<128x128xf32> -> vector<128x128xf32>
    %51 = arith.addf %45, %50 : vector<128x128xf32>
    %52 = vector.extract_strided_slice %38 {offsets = [0, 2, 0], sizes = [8, 16, 256], strides = [1, 1, 1]} : vector<8x20x256xbf16> to vector<8x16x256xbf16>
    %53 = vector.shape_cast %52 : vector<8x16x256xbf16> to vector<128x256xbf16>
    %54 = vector.extract_strided_slice %39 {offsets = [2, 0, 0], sizes = [1, 256, 128], strides = [1, 1, 1]} : vector<5x256x128xbf16> to vector<1x256x128xbf16>
    %55 = vector.shape_cast %54 : vector<1x256x128xbf16> to vector<256x128xbf16>
    %cst_23 = arith.constant dense<0.000000e+00> : vector<128x128xf32>
    %56 = tpu.matmul %53, %55, %cst_23 {dimension_numbers = #tpu.dot_dimension_numbers<[1], [0], [0], [1], [0, 0, 1, 1], [], []>} : vector<128x256xbf16>, vector<256x128xbf16>, vector<128x128xf32> -> vector<128x128xf32>
    %57 = arith.addf %51, %56 : vector<128x128xf32>
    %58 = vector.extract_strided_slice %38 {offsets = [0, 3, 0], sizes = [8, 16, 256], strides = [1, 1, 1]} : vector<8x20x256xbf16> to vector<8x16x256xbf16>
    %59 = vector.shape_cast %58 : vector<8x16x256xbf16> to vector<128x256xbf16>
    %60 = vector.extract_strided_slice %39 {offsets = [3, 0, 0], sizes = [1, 256, 128], strides = [1, 1, 1]} : vector<5x256x128xbf16> to vector<1x256x128xbf16>
    %61 = vector.shape_cast %60 : vector<1x256x128xbf16> to vector<256x128xbf16>
    %cst_24 = arith.constant dense<0.000000e+00> : vector<128x128xf32>
    %62 = tpu.matmul %59, %61, %cst_24 {dimension_numbers = #tpu.dot_dimension_numbers<[1], [0], [0], [1], [0, 0, 1, 1], [], []>} : vector<128x256xbf16>, vector<256x128xbf16>, vector<128x128xf32> -> vector<128x128xf32>
    %63 = arith.addf %57, %62 : vector<128x128xf32>
    %64 = vector.extract_strided_slice %38 {offsets = [0, 4, 0], sizes = [8, 16, 256], strides = [1, 1, 1]} : vector<8x20x256xbf16> to vector<8x16x256xbf16>
    %65 = vector.shape_cast %64 : vector<8x16x256xbf16> to vector<128x256xbf16>
    %66 = vector.extract_strided_slice %39 {offsets = [4, 0, 0], sizes = [1, 256, 128], strides = [1, 1, 1]} : vector<5x256x128xbf16> to vector<1x256x128xbf16>
    %67 = vector.shape_cast %66 : vector<1x256x128xbf16> to vector<256x128xbf16>
    %cst_25 = arith.constant dense<0.000000e+00> : vector<128x128xf32>
    %68 = tpu.matmul %65, %67, %cst_25 {dimension_numbers = #tpu.dot_dimension_numbers<[1], [0], [0], [1], [0, 0, 1, 1], [], []>} : vector<128x256xbf16>, vector<256x128xbf16>, vector<128x128xf32> -> vector<128x128xf32>
    %69 = arith.addf %63, %68 : vector<128x128xf32>
    %70 = vector.broadcast %40 : vector<1x128xf32> to vector<128x128xf32>
    %71 = arith.addf %69, %70 : vector<128x128xf32>
    %cst_26 = arith.constant 0.000000e+00 : f32
    %72 = vector.broadcast %cst_26 : f32 to vector<128x128xf32>
    %73 = arith.maximumf %71, %72 : vector<128x128xf32>
    %74 = vector.shape_cast %73 : vector<128x128xf32> to vector<8x16x128xf32>
    %cst_27 = arith.constant dense<0xFF800000> : vector<8x128xf32>
    %75 = vector.multi_reduction <maximumf>, %74, %cst_27 [1] : vector<8x16x128xf32> to vector<8x128xf32>
    %c0_28 = arith.constant 0 : index
    %c0_29 = arith.constant 0 : index
    %76 = vector.load %arg7[%c0_28, %c0_29] : memref<1x128xf32, #tpu.memory_space<vmem>>, vector<1x128xf32>
    %77 = vector.broadcast %76 : vector<1x128xf32> to vector<8x128xf32>
    %78 = arith.mulf %37, %77 : vector<8x128xf32>
    %cst_30 = arith.constant dense<0.000000e+00> : vector<8xf32>
    %79 = vector.multi_reduction <add>, %78, %cst_30 [1] : vector<8x128xf32> to vector<8xf32>
    %80 = vector.shape_cast %79 : vector<8xf32> to vector<8x1xf32>
    %c0_31 = arith.constant 0 : index
    %c0_32 = arith.constant 0 : index
    %81 = vector.load %arg8[%c0_31, %c0_32] : memref<1x128xf32, #tpu.memory_space<vmem>>, vector<1x128xf32>
    %82 = vector.broadcast %81 : vector<1x128xf32> to vector<8x128xf32>
    %83 = arith.mulf %75, %82 : vector<8x128xf32>
    %cst_33 = arith.constant dense<0.000000e+00> : vector<8xf32>
    %84 = vector.multi_reduction <add>, %83, %cst_33 [1] : vector<8x128xf32> to vector<8xf32>
    %85 = vector.shape_cast %84 : vector<8xf32> to vector<8x1xf32>
    %86 = arith.addf %80, %85 : vector<8x1xf32>
    %c0_34 = arith.constant 0 : index
    %c0_35 = arith.constant 0 : index
    %87 = vector.load %arg9[%c0_34, %c0_35] : memref<1x1xf32, #tpu.memory_space<vmem>>, vector<1x1xf32>
    %88 = vector.broadcast %87 : vector<1x1xf32> to vector<8x1xf32>
    %89 = arith.addf %86, %88 : vector<8x1xf32>
    %c0_36 = arith.constant 0 : index
    %c0_37 = arith.constant 0 : index
    %90 = vector.load %arg10[%c0_36, %c0_37] : memref<8x1xf32, #tpu.memory_space<vmem>>, vector<8x1xf32>
    tpu.vector_store %arg10[%c0_36, %c0_37], %89 {strides = array<i32>} : memref<8x1xf32, #tpu.memory_space<vmem>>, vector<8x1xf32>,
    return
  }
  func.func @transform_0(%arg0: i32) -> (i32, i32, i32) {
    %c0_i32 = arith.constant 0 : i32
    %c0_i32_0 = arith.constant 0 : i32
    %c0_i32_1 = arith.constant 0 : i32
    return %arg0, %c0_i32, %c0_i32_0 : i32, i32, i32
  }
  func.func @transform_1(%arg0: i32) -> (i32, i32, i32) {
    %c0_i32 = arith.constant 0 : i32
    %c0_i32_0 = arith.constant 0 : i32
    %c0_i32_1 = arith.constant 0 : i32
    return %arg0, %c0_i32, %c0_i32_0 : i32, i32, i32
  }
  func.func @transform_2(%arg0: i32) -> (i32, i32, i32) {
    %c0_i32 = arith.constant 0 : i32
    %c0_i32_0 = arith.constant 0 : i32
    %c0_i32_1 = arith.constant 0 : i32
    %c0_i32_2 = arith.constant 0 : i32
    return %c0_i32, %c0_i32_0, %c0_i32_1 : i32, i32, i32
  }
  func.func @transform_3(%arg0: i32) -> (i32, i32) {
    %c0_i32 = arith.constant 0 : i32
    %c0_i32_0 = arith.constant 0 : i32
    %c0_i32_1 = arith.constant 0 : i32
    return %c0_i32, %c0_i32_0 : i32, i32
  }
  func.func @transform_4(%arg0: i32) -> (i32, i32, i32) {
    %c0_i32 = arith.constant 0 : i32
    %c0_i32_0 = arith.constant 0 : i32
    %c0_i32_1 = arith.constant 0 : i32
    %c0_i32_2 = arith.constant 0 : i32
    return %c0_i32, %c0_i32_0, %c0_i32_1 : i32, i32, i32
  }
  func.func @transform_5(%arg0: i32) -> (i32, i32) {
    %c0_i32 = arith.constant 0 : i32
    %c0_i32_0 = arith.constant 0 : i32
    %c0_i32_1 = arith.constant 0 : i32
    return %c0_i32, %c0_i32_0 : i32, i32
  }
  func.func @transform_6(%arg0: i32) -> (i32, i32) {
    %c0_i32 = arith.constant 0 : i32
    %c0_i32_0 = arith.constant 0 : i32
    %c0_i32_1 = arith.constant 0 : i32
    return %c0_i32, %c0_i32_0 : i32, i32
  }
  func.func @transform_7(%arg0: i32) -> (i32, i32) {
    %c0_i32 = arith.constant 0 : i32
    %c0_i32_0 = arith.constant 0 : i32
    %c0_i32_1 = arith.constant 0 : i32
    return %c0_i32, %c0_i32_0 : i32, i32
  }
  func.func @transform_8(%arg0: i32) -> (i32, i32) {
    %c0_i32 = arith.constant 0 : i32
    %c0_i32_0 = arith.constant 0 : i32
    %c0_i32_1 = arith.constant 0 : i32
    return %c0_i32, %c0_i32_0 : i32, i32
  }
  func.func @transform_9(%arg0: i32) -> (i32, i32) {
    %c0_i32 = arith.constant 0 : i32
    %c0_i32_0 = arith.constant 0 : i32
    return %arg0, %c0_i32 : i32, i32
  }
}

</mosaic_0001>

<bundles_post_ra>
// kernel: text_classifier_forward.1
= control target key start
LH: loop header
LB: loop body
LE: loop exit
PB: predicated region body
PF: predicated region fallthrough
CT: control target
= control target key end

     0   :  { %s5249_s11 = smov 0   ;;  %s6996_s0 = inlined_call_operand.vmem [shape: bf16[16,12,256], index: 0, kind: input, shape index: {}]   ;;  %s6997_s1 = inlined_call_operand.vmem [shape: bf16[16,20,256], index: 1, kind: input, shape index: {}]   ;;  %s6998_s2 = inlined_call_operand.vmem [shape: bf16[5,256,128], index: 2, kind: input, shape index: {}]   ;;  %s6999_s3 = inlined_call_operand.vmem [shape: f32[1,128], index: 3, kind: input, shape index: {}]   ;;  %s7000_s4 = inlined_call_operand.vmem [shape: bf16[5,256,128], index: 4, kind: input, shape index: {}]   ;;  %s7001_s5 = inlined_call_operand.vmem [shape: f32[1,128], index: 5, kind: input, shape index: {}]   ;;  %s7002_s6 = inlined_call_operand.vmem [shape: f32[1,128], index: 6, kind: input, shape index: {}]   ;;  %s7003_s7 = inlined_call_operand.vmem [shape: f32[1,128], index: 7, kind: input, shape index: {}]   ;;  %s7004_s8 = inlined_call_operand.<no memory space> [shape: f32[1,1], index: 8, kind: input, shape index: {}]   ;;  %s7005_s9 = inlined_call_operand.vmem [shape: f32[16,1], index: 9, kind: output, shape index: {}]  }
   0x1   :  { %v14_v0 = vstv %s7004_s8 }
   0x2   :  { %15 = vst [vmem:[#allocation2] sm:$0x1] %v14_v0 }
   0x3 LB: > { %s5255_s12 = sadd.s32 4294967295, %s5194_s11   ;;  %p4111_p0 = scmp.ge.s32.totalorder %s5194_s11, 1  ;;  %s5194_s11 = sphi %s5249_s11, %s21_s11  }
   0x4   : > { %p303_p1 = scmp.lt.s32.totalorder %s5194_s11, 3 }
   0x6   : > { %p304_p2 = pnand %p4111_p0, %p303_p1 }
   0x7   : > { %v4983_v1 = vld [vmem:[%s6998_s2 + $0xc0] sm:$0xff] (!%p304_p2)   ;;  %v4987_v5 = vld [vmem:[%s6998_s2 + $0xc8] sm:$0xff] (!%p304_p2)   ;;  %v4991_v9 = vld [vmem:[%s6998_s2 + $0xd0] sm:$0xff] (!%p304_p2)   ;;  %s4112_s24 = sshll.u32 (!%p304_p2), %s5255_s12, 3  ;;  %vm541_vm0 = vsmask.f32 (!%p304_p2), 3328 }
   0x8   : > { %307 = sbr.rel (%p304_p2) target bundleno = 675 (0x2a3), region = 56  ;;  %v4984_v2 = vld [vmem:[%s6998_s2 + $0x40] sm:$0xff] (!%p304_p2)   ;;  %4438 = vmatprep.subr.bf16.mxu0 (!%p304_p2), %v4983_v1  ;;  %v4988_v6 = vld [vmem:[%s6998_s2 + $0x48] sm:$0xff] (!%p304_p2)   ;;  %v4992_v10 = vld [vmem:[%s6998_s2 + $0x50] sm:$0xff] (!%p304_p2)   ;;  %p346_p3 = scmp.lt.s32.totalorder (!%p304_p2), %s4112_s24, 15  ;;  %vm1058_vm3 = vcmask (!%p304_p2), 1042432  }
   0x9   : > { %v4985_v3 = vld [vmem:[%s6998_s2 + $0x80] sm:$0xff] (!%p304_p2)   ;;  %4478 = vmatprep.subr.bf16.mxu1 (!%p304_p2), %v4984_v2  ;;  %v4989_v7 = vld [vmem:[%s6998_s2 + $0x88] sm:$0xff] (!%p304_p2)   ;;  %v4993_v11 = vld [vmem:[%s6998_s2 + $0x90] sm:$0xff] (!%p304_p2)   ;;  %vm542_vm1 = vsmask.f32 (!%p304_p2), 7440  ;;  %vm1059_vm4 = vcmask (!%p304_p2), 1046532  }
   0xa   : > { %v4986_v4 = vld [vmem:[%s6998_s2] sm:$0xff] (!%p304_p2)   ;;  %4439 = vmatpush3.bf16.msra.mxu0 (!%p304_p2), %v4985_v3  ;;  %v4990_v8 = vld [vmem:[%s6998_s2 + $0x8] sm:$0xff] (!%p304_p2)   ;;  %v4994_v12 = vld [vmem:[%s6998_s2 + $0x10] sm:$0xff] (!%p304_p2)   ;;  %vm1294_vm5 = vsmask.f32 (!%p304_p2), 2304  ;;  %vm1578_vm9 = vcmask (!%p304_p2), 1041408  }
   0xb   : > { %4479 = vmatpush3.bf16.msra.mxu1 (!%p304_p2), %v4986_v4  ;;  %4440 = vmatprep.subr.bf16.mxu0 (!%p304_p2), %v4987_v5  ;;  %v4995_v13 = vld [vmem:[%s6998_s2 + $0xd8] sm:$0xff] (!%p304_p2)   ;;  %v4999_v17 = vld [vmem:[%s6998_s2 + $0xe0] sm:$0xff] (!%p304_p2)   ;;  %v5003_v21 = vld [vmem:[%s6998_s2 + $0xe8] sm:$0xff] (!%p304_p2)   ;;  %vm1295_vm6 = vsmask.f32 (!%p304_p2), 6416  ;;  %vm1579_vm10 = vcmask (!%p304_p2), 1045508  }
   0xc   : > { %4480 = vmatprep.subr.bf16.mxu1 (!%p304_p2), %v4988_v6  ;;  %v4996_v14 = vld [vmem:[%s6998_s2 + $0x58] sm:$0xff] (!%p304_p2)   ;;  %v5000_v18 = vld [vmem:[%s6998_s2 + $0x60] sm:$0xff] (!%p304_p2)   ;;  %v5004_v22 = vld [vmem:[%s6998_s2 + $0x68] sm:$0xff] (!%p304_p2)   ;;  %vm3968_vm12 = vcmask (!%p304_p2), 1041409   ;;  %vm3971_vm13 = vcmask (!%p304_p2), 1042434   ;;  %vm3974_vm14 = vcmask (!%p304_p2), 1043459  }
   0xd   : > { %v4997_v15 = vld [vmem:[%s6998_s2 + $0x98] sm:$0xff] (!%p304_p2)   ;;  %v5001_v19 = vld [vmem:[%s6998_s2 + $0xa0] sm:$0xff] (!%p304_p2)   ;;  %v5005_v23 = vld [vmem:[%s6998_s2 + $0xa8] sm:$0xff] (!%p304_p2)   ;;  %vm3977_vm15 = vcmask (!%p304_p2), 1044484   ;;  %p359_p4 = scmp.lt.s32.totalorder (!%p304_p2), %s5255_s12, 1 }
   0xe   : > { %4441 = vmatpush3.bf16.msra.mxu0 (!%p304_p2), %v4989_v7  ;;  %v4998_v16 = vld [vmem:[%s6998_s2 + $0x18] sm:$0xff] (!%p304_p2)   ;;  %v5002_v20 = vld [vmem:[%s6998_s2 + $0x20] sm:$0xff] (!%p304_p2)   ;;  %v5006_v24 = vld [vmem:[%s6998_s2 + $0x28] sm:$0xff] (!%p304_p2)  }
   0xf   : > { %4481 = vmatpush3.bf16.msra.mxu1 %v4990_v8  ;;  %4442 = vmatprep.subr.bf16.mxu0 %v4991_v9  ;;  %s7071_s24 = smov (!%p346_p3, %s4112_s24), 15  ;;  %v5007_v25 = vld [vmem:[%s6998_s2 + $0xf0] sm:$0xff]   ;;  %v5011_v29 = vld [vmem:[%s6998_s2 + $0xf8] sm:$0xff]   ;;  %v5017_v47 = vld [vmem:[%s6998_s2 + $0x140] sm:$0xff]   ;;  %s7073_s12 = smov (!%p359_p4, %s5255_s12), 1 }
  0x10   : > { %4482 = vmatprep.subr.bf16.mxu1 %v4992_v10  ;;  %v5008_v26 = vld [vmem:[%s6998_s2 + $0x70] sm:$0xff]   ;;  %s4437_s28 = sshll.u32 %s7071_s24, 4  ;;  %v5012_v30 = vld [vmem:[%s6998_s2 + $0x78] sm:$0xff]   ;;  %v5018_v48 = vld [vmem:[%s6998_s2 + $0x1c0] sm:$0xff]   ;;  %s4974_s20 = smul.u32 24, %s7071_s24 }
  0x11   : > { %v5009_v27 = vld [vmem:[%s6998_s2 + $0xb0] sm:$0xff]   ;;  %s5356_s17 = scalar_lea.vmem %s6996_s0, %s4437_s28  ;;  %v5013_v31 = vld [vmem:[%s6998_s2 + $0xb8] sm:$0xff]   ;;  %vm5402_vm2 = vmor %vm541_vm0, %vm542_vm1  ;;  %vm3980_vm0 = vcmask 1045509   ;;  %vm3983_vm1 = vcmask 1046534   ;;  %s4117_s30 = sshll.u32 %s7073_s12, 3 }
  0x12   : > { %4443 = vmatpush3.bf16.msra.mxu0 %v4993_v11  ;;  %v5010_v28 = vld [vmem:[%s6998_s2 + $0x30] sm:$0xff]   ;;  %v5014_v32 = vld [vmem:[%s6998_s2 + $0x38] sm:$0xff]   ;;  %v5365_v33 = vld [vmem:[%s5356_s17] sm:$0xff]  ;;  %s5843_s21 = scalar_lea.vmem %s6997_s1, %s4974_s20  ;;  %s362_s14 = scalar_lea.vmem %s7005_s9, %s4117_s30 }
  0x13   : > { %4483 = vmatpush3.bf16.msra.mxu1 %v4994_v12  ;;  %4444 = vmatprep.subr.bf16.mxu0 %v4995_v13  ;;  %v5368_v34 = vld [vmem:[%s5356_s17 + $0x8] sm:$0x33]  ;;  %v5371_v35 = vld [vmem:[%s5356_s17 + $0x10] sm:$0xff]  ;;  %v5374_v36 = vld [vmem:[%s5356_s17 + $0x18] sm:$0x33]  ;;  %v545_v37 = vshrl.u32 %v5365_v33, 16 }
  0x14   : > { %4484 = vmatprep.subr.bf16.mxu1 %v4996_v14  ;;  %v548_v38 = vshll.u32 %v5365_v33, 16  ;;  %v4143_v39 = vcombine.high %v5365_v33, %v5371_v35  ;;  %v554_v40 = vshll.u32 %v5368_v34, 16  ;;  %v559_v41 = vshrl.u32 %v5371_v35, 16  ;;  %v5020_v57 = vld [vmem:[%s6998_s2 + $0x180] sm:$0xff]   ;;  %v5022_v62 = vld [vmem:[%s6998_s2 + $0x1c8] sm:$0xff]   ;;  %v5438_v9 = vld [vmem:[%s5356_s17 + $0x30] sm:$0xff] }
  0x15   : > { %v562_v42 = vshll.u32 %v5371_v35, 16  ;;  %v568_v43 = vshll.u32 %v5374_v36, 16  ;;  %v547_v44 = vrot.slane %v545_v37, 4  ;;  %v4142_v46 = vcombine.low %v5365_v33, %v5371_v35  ;;  %v5019_v61 = vld [vmem:[%s6998_s2 + $0x100] sm:$0xff]   ;;  %v5021_v1 = vld [vmem:[%s6998_s2 + $0x148] sm:$0xff]   ;;  %vm5607_vm7 = vmor %vm1058_vm3, %vm1059_vm4 }
  0x16   : > { %4445 = vmatpush3.bf16.msra.mxu0 %v4997_v15  ;;  %v550_v45 = vrot.slane %v548_v38, 5  ;;  %1017 = vmatprep.mubr.bf16.mxu1 %v4143_v39  ;;  %v561_v49 = vrot.slane %v559_v41, 4  ;;  %v556_v52 = vrot.slane %v554_v40, 5  ;;  %v5411_v60 = vrot.slane %v554_v40, 6  ;;  %v5024_v4 = vld [vmem:[%s6998_s2 + $0x188] sm:$0xff]   ;;  %v5430_v5 = vld [vmem:[%s5356_s17 + $0x20] sm:$0xff]  ;;  %vm5617_vm8 = vmor %vm1294_vm5, %vm1295_vm6 }
  0x17   : > { %4485 = vmatpush3.bf16.msra.mxu1 %v4998_v16  ;;  %4446 = vmatprep.subr.bf16.mxu0 %v4999_v17  ;;  %v564_v50 = vrot.slane %v562_v42, 5  ;;  %v570_v55 = vrot.slane %v568_v43, 5  ;;  %v5421_v0 = vrot.slane %v568_v43, 6  ;;  %v4166_v6 = vrot.slane %v5365_v33, 9  ;;  %v5435_v8 = vld [vmem:[%s5356_s17 + $0x28] sm:$0x33]  ;;  %vm5828_vm11 = vmor %vm1578_vm9, %vm1579_vm10 }
  0x18   : > { %4486 = vmatprep.subr.bf16.mxu1 %v5000_v18  ;;  %v551_v51 = vor.u32 %v550_v45, %v547_v44  ;;  %v1063_v7 = vrot.slane %v5368_v34, 5  ;;  %v5441_v10 = vld [vmem:[%s5356_s17 + $0x38] sm:$0x33]  ;;  %v573_v11 = vshrl.u32 %v5430_v5, 16  ;;  %v576_v12 = vshll.u32 %v5430_v5, 16  ;;  %v5023_v16 = vld [vmem:[%s6998_s2 + $0x108] sm:$0xff]  }
  0x19   : > { %v565_v54 = vor.u32 %v564_v50, %v561_v49  ;;  %v582_v13 = vshll.u32 %v5435_v8, 16  ;;  %v587_v14 = vshrl.u32 %v5438_v9, 16  ;;  %v590_v15 = vshll.u32 %v5438_v9, 16  ;;  %v5031_v43 = vld [vmem:[%s6998_s2 + $0x158] sm:$0xff]   ;;  %v5143_v53 = vld [vmem:[%s7000_s4 + $0x1e8] sm:$0xff]  }
  0x1a   : > { %4447 = vmatpush3.bf16.msra.mxu0 %v5001_v19  ;;  %v552_v56 = vrot.slane %v551_v51, 4  ;;  %v575_v17 = vrot.slane %v573_v11, 4  ;;  %v596_v18 = vshll.u32 %v5441_v10, 16  ;;  %v4145_v19 = vcombine.high %v5430_v5, %v5438_v9  ;;  %v5032_v44 = vld [vmem:[%s6998_s2 + $0x1d8] sm:$0xff]   ;;  %v5501_v51 = vld [vmem:[%s5356_s17 + $0x40] sm:$0xff] }
  0x1b   : > { %4487 = vmatpush3.bf16.msra.mxu1 %v5002_v20  ;;  %4448 = vmatprep.subr.bf16.mxu0 %v5003_v21  ;;  %v566_v58 = vrot.slane %v565_v54, 4  ;;  %v4144_v20 = vcombine.low %v5430_v5, %v5438_v9  ;;  %v5028_v21 = vld [vmem:[%s6998_s2 + $0x1d0] sm:$0xff]   ;;  %v5034_v50 = vld [vmem:[%s6998_s2 + $0x198] sm:$0xff]   ;;  %v4167_v54 = vrot.slane %v5371_v35, 9  ;;  %vm4040_vm3 = vcmask 7168  }
  0x1c   : > { %4488 = vmatprep.subr.bf16.mxu1 %v5004_v22  ;;  %v557_v59 = vsel %vm5402_vm2, %v552_v56, %v556_v52  ;;  %v578_v22 = vrot.slane %v576_v12, 5  ;;  %v5504_v52 = vld [vmem:[%s5356_s17 + $0x48] sm:$0x33]  ;;  %v5509_v56 = vld [vmem:[%s5356_s17 + $0x50] sm:$0xff]  ;;  %v5054_v35 = vld [vmem:[%s6998_s2 + $0x1b8] sm:$0xff]  }
  0x1d   : > { %v571_v63 = vsel %vm5402_vm2, %v566_v58, %v570_v55  ;;  %v1067_v55 = vrot.slane %v5374_v36, 5  ;;  %v604_v58 = vshll.u32 %v5501_v51, 16 }
  0x1e   : > { %4449 = vmatpush3.bf16.msra.mxu0 %v5005_v23  ;;  %v4118_v2 = vcombine.low %v557_v59, %v571_v63  ;;  %v4119_v3 = vcombine.high %v557_v59, %v571_v63  ;;  %v589_v23 = vrot.slane %v587_v14, 4  ;;  %v610_v59 = vshll.u32 %v5504_v52, 16 }
  0x1f   : > { %4489 = vmatpush3.bf16.msra.mxu1 %v5006_v24  ;;  %4450 = vmatprep.subr.bf16.mxu0 %v5007_v25  ;;  %v592_v24 = vrot.slane %v590_v15, 5  ;;  %v5027_v25 = vld [vmem:[%s6998_s2 + $0x150] sm:$0xff]   ;;  %v618_v63 = vshll.u32 %v5509_v56, 16 }
  0x20   : > { %4490 = vmatprep.subr.bf16.mxu1 %v5008_v26  ;;  %816 = vmatprep.mubr.bf16.mxu0 %v4119_v3  ;;  %v584_v26 = vrot.slane %v582_v13, 5  ;;  %v5037_v3 = vld [vmem:[%s6998_s2 + $0x160] sm:$0xff]  }
  0x22   : > { %4451 = vmatpush3.bf16.msra.mxu0 %v5009_v27  ;;  %v598_v27 = vrot.slane %v596_v18, 5 }
  0x23   : > { %4491 = vmatpush3.bf16.msra.mxu1 %v5010_v28  ;;  %4452 = vmatprep.subr.bf16.mxu0 %v5011_v29  ;;  %v579_v28 = vor.u32 %v578_v22, %v575_v17  ;;  %v593_v29 = vor.u32 %v592_v24, %v589_v23  ;;  %v612_v17 = vrot.slane %v610_v59, 5  ;;  %v620_v22 = vrot.slane %v618_v63, 5  ;;  %v5039_v24 = vld [vmem:[%s6998_s2 + $0x120] sm:$0xff]  }
  0x24   : > { %4492 = vmatprep.subr.bf16.mxu1 %v5012_v30  ;;  %v5029_v30 = vld [vmem:[%s6998_s2 + $0x110] sm:$0xff]  }
  0x25   : > { %v580_v39 = vrot.slane %v579_v28, 4  ;;  %v594_v40 = vrot.slane %v593_v29, 4 }
  0x26   : > { %4453 = vmatpush3.bf16.msra.mxu0 %v5013_v31  ;;  %v5030_v31 = vld [vmem:[%s6998_s2 + $0x190] sm:$0xff]  }
  0x27   : > { %4493 = vmatpush3.bf16.msra.mxu1 %v5014_v32  ;;  %4518 = vmatprep.subr.bf16.mxu0 %v5017_v47  ;;  %v1297_v32 = vrot.slane %v545_v37, 5  ;;  %v585_v37 = vsel %vm5402_vm2, %v580_v39, %v584_v26  ;;  %v599_v45 = vsel %vm5402_vm2, %v594_v40, %v598_v27  ;;  %v1298_v47 = vrot.slane %v548_v38, 6  ;;  %v5040_v27 = vld [vmem:[%s6998_s2 + $0x1a0] sm:$0xff]   ;;  %v5043_v40 = vld [vmem:[%s6998_s2 + $0x128] sm:$0xff]  }
  0x28   : > { %4558 = vmatprep.subr.bf16.mxu1 %v5018_v48  ;;  %v4121_v48 = vcombine.high %v585_v37, %v599_v45  ;;  %v4120_v49 = vcombine.low %v585_v37, %v599_v45  ;;  %v601_v38 = vshrl.u32 %v5501_v51, 16  ;;  %v5044_v37 = vld [vmem:[%s6998_s2 + $0x1a8] sm:$0xff]   ;;  %v1307_v45 = vrot.slane %v559_v41, 5 }
  0x29   : > { %817 = vmatmul.mubr.bf16.vlgmr.msra.gmra.mrb[0].mxu0 %v4118_v2  ;;  %v4147_v2 = vcombine.high %v5501_v51, %v5509_v56 }
  0x2a   : > { %1018 = vmatmul.mubr.bf16.vlgmr.msra.gmra.mrb[0].mxu1 %v4142_v46  ;;  %4519 = vmatpush3.bf16.msra.mxu0 %v5019_v61  ;;  %v5033_v46 = vld [vmem:[%s6998_s2 + $0x118] sm:$0xff]   ;;  %v1299_v61 = vor.u32 %v1298_v47, %v1297_v32  ;;  %v5042_v32 = vld [vmem:[%s6998_s2 + $0x1e8] sm:$0xff]  }
  0x2b   : > { %4559 = vmatpush3.bf16.msra.mxu1 %v5020_v57  ;;  %4520 = vmatprep.subr.bf16.mxu0 %v5021_v1  ;;  %v5512_v57 = vld [vmem:[%s5356_s17 + $0x58] sm:$0x33] }
  0x2c   : > { %4560 = vmatprep.subr.bf16.mxu1 %v5022_v62  ;;  %1025 = vmatprep.mubr.bf16.mxu1 %v4145_v19  ;;  %v615_v62 = vshrl.u32 %v5509_v56, 16  ;;  %v624_v1 = vshll.u32 %v5512_v57, 16  ;;  %v4146_v19 = vcombine.low %v5501_v51, %v5509_v56  ;;  %v5548_v28 = vrot.slane %v1299_v61, 4  ;;  %v5579_v61 = vld [vmem:[%s5356_s17 + $0x78] sm:$0x33] }
  0x2d   : > { %824 = vmatprep.mubr.bf16.mxu0 %v4121_v48  ;;  %v5570_v48 = vld [vmem:[%s5356_s17 + $0x60] sm:$0xff] }
  0x2e   : > { %4521 = vmatpush3.bf16.msra.mxu0 %v5023_v16  ;;  %v606_v16 = vrot.slane %v604_v58, 5  ;;  %v626_v23 = vrot.slane %v624_v1, 5 }
  0x2f   : > { %4561 = vmatpush3.bf16.msra.mxu1 %v5024_v4  ;;  %4522 = vmatprep.subr.bf16.mxu0 %v5027_v25  ;;  %v603_v4 = vrot.slane %v601_v38, 4 }
  0x30   : > { %4562 = vmatprep.subr.bf16.mxu1 %v5028_v21  ;;  %v617_v21 = vrot.slane %v615_v62, 4 }
  0x31   : > { %825 = vmatmul.mubr.bf16.gmra.mrb[4].mxu0 %v4120_v49  ;;  %v607_v25 = vor.u32 %v606_v16, %v603_v4  ;;  %v5573_v49 = vld [vmem:[%s5356_s17 + $0x68] sm:$0x33] }
  0x32   : > { %1026 = vmatmul.mubr.bf16.gmra.mrb[4].mxu1 %v4144_v20  ;;  %4523 = vmatpush3.bf16.msra.mxu0 %v5029_v30  ;;  %v5038_v20 = vld [vmem:[%s6998_s2 + $0x1e0] sm:$0xff]   ;;  %v621_v26 = vor.u32 %v620_v22, %v617_v21  ;;  %v5041_v30 = vld [vmem:[%s6998_s2 + $0x168] sm:$0xff]   ;;  %v638_v4 = vshll.u32 %v5573_v49, 16 }
  0x33   : > { %4563 = vmatpush3.bf16.msra.mxu1 %v5030_v31  ;;  %4524 = vmatprep.subr.bf16.mxu0 %v5031_v43  ;;  %v608_v29 = vrot.slane %v607_v25, 4  ;;  %v1301_v43 = vshrl.u32 %v5368_v34, 16  ;;  %v5047_v25 = vld [vmem:[%s6998_s2 + $0x170] sm:$0xff]  }
  0x34   : > { %4564 = vmatprep.subr.bf16.mxu1 %v5032_v44  ;;  %1033 = vmatprep.mubr.bf16.mxu1 %v4147_v2  ;;  %v622_v31 = vrot.slane %v621_v26, 4  ;;  %v629_v2 = vshrl.u32 %v5570_v48, 16  ;;  %v5048_v26 = vld [vmem:[%s6998_s2 + $0x1f0] sm:$0xff]  }
  0x35   : > { %v613_v39 = vsel %vm5402_vm2, %v608_v29, %v612_v17  ;;  %v652_v17 = vshll.u32 %v5579_v61, 16 }
  0x36   : > { %4525 = vmatpush3.bf16.msra.mxu0 %v5033_v46  ;;  %v627_v44 = vsel %vm5402_vm2, %v622_v31, %v626_v23  ;;  %v631_v21 = vrot.slane %v629_v2, 4  ;;  %v640_v23 = vrot.slane %v638_v4, 5 }
  0x37   : > { %4565 = vmatpush3.bf16.msra.mxu1 %v5034_v50  ;;  %4526 = vmatprep.subr.bf16.mxu0 %v5037_v3  ;;  %v4123_v46 = vcombine.high %v613_v39, %v627_v44  ;;  %v4122_v47 = vcombine.low %v613_v39, %v627_v44  ;;  %v5576_v50 = vld [vmem:[%s5356_s17 + $0x70] sm:$0xff]  ;;  %v632_v3 = vshll.u32 %v5570_v48, 16 }
  0x38   : > { %4566 = vmatprep.subr.bf16.mxu1 %v5038_v20  ;;  %v643_v41 = vshrl.u32 %v5576_v50, 16  ;;  %v646_v16 = vshll.u32 %v5576_v50, 16  ;;  %v4148_v20 = vcombine.low %v5570_v48, %v5576_v50  ;;  %v5049_v39 = vld [vmem:[%s6998_s2 + $0x130] sm:$0xff]  }
  0x39   : > { %832 = vmatprep.mubr.bf16.mxu0 %v4123_v46  ;;  %v634_v22 = vrot.slane %v632_v3, 5  ;;  %v1308_v46 = vrot.slane %v562_v42, 6  ;;  %v1068_v42 = vsel %vm5607_vm7, %v4167_v54, %v1067_v55 }
  0x3a   : > { %1034 = vmatmul.mubr.bf16.gmra.mrb[8].mxu1 %v4146_v19  ;;  %4527 = vmatpush3.bf16.msra.mxu0 %v5039_v24  ;;  %v4149_v19 = vcombine.high %v5570_v48, %v5576_v50  ;;  %v645_v24 = vrot.slane %v643_v41, 4  ;;  %v648_v29 = vrot.slane %v646_v16, 5 }
  0x3b   : > { %4567 = vmatpush3.bf16.msra.mxu1 %v5040_v27  ;;  %4528 = vmatprep.subr.bf16.mxu0 %v5041_v30  ;;  %v654_v30 = vrot.slane %v652_v17, 5  ;;  %v5171_v27 = vld [vmem:[%s5843_s21 + $0x50] sm:$0xff] }
  0x3c   : > { %4568 = vmatprep.subr.bf16.mxu1 %v5042_v32  ;;  %833 = vmatmul.mubr.bf16.gmra.mrb[8].mxu0 %v4122_v47  ;;  %v635_v32 = vor.u32 %v634_v22, %v631_v21  ;;  %v649_v44 = vor.u32 %v648_v29, %v645_v24  ;;  %v1064_v21 = vsel %vm5607_vm7, %v4166_v6, %v1063_v7  ;;  %v1311_v6 = vshrl.u32 %v5374_v36, 16 }
  0x3d   : > { %1041 = vmatprep.mubr.bf16.mxu1 %v4149_v19  ;;  %v5051_v19 = vld [vmem:[%s6998_s2 + $0x178] sm:$0xff]   ;;  %v1309_v22 = vor.u32 %v1308_v46, %v1307_v45 }
  0x3e   : > { %4529 = vmatpush3.bf16.msra.mxu0 %v5043_v40  ;;  %v1303_v40 = vrot.slane %v1301_v43, 5  ;;  %v636_v47 = vrot.slane %v635_v32, 4  ;;  %v5052_v43 = vld [vmem:[%s6998_s2 + $0x1f8] sm:$0xff]   ;;  %v1313_v29 = vrot.slane %v1311_v6, 5  ;;  %v4168_v32 = vrot.slane %v5430_v5, 9  ;;  %v5057_v6 = vld [vmem:[%s6998_s2 + $0x200] sm:$0xff]  }
  0x3f   : > { %4569 = vmatpush3.bf16.msra.mxu1 %v5044_v37  ;;  %4530 = vmatprep.subr.bf16.mxu0 %v5047_v25  ;;  %v5050_v37 = vld [vmem:[%s6998_s2 + $0x1b0] sm:$0xff]   ;;  %v5053_v25 = vld [vmem:[%s6998_s2 + $0x138] sm:$0xff]   ;;  %v1310_v54 = vrot.slane %v1309_v22, 4  ;;  %v5060_v22 = vld [vmem:[%s7000_s4 + $0xc8] sm:$0xff]  }
  0x40   : > { %4570 = vmatprep.subr.bf16.mxu1 %v5048_v26  ;;  %v641_v24 = vsel %vm5402_vm2, %v636_v47, %v640_v23  ;;  %v1305_v26 = vor.u32 %v5411_v60, %v1303_v40  ;;  %v4175_v23 = vcombine.high %v1064_v21, %v1068_v42  ;;  %v5055_v60 = vld [vmem:[%s6998_s2 + $0x240] sm:$0xff]   ;;  %v1315_v40 = vor.u32 %v5421_v0, %v1313_v29 }
  0x41   : > { %v5058_v0 = vld [vmem:[%s7000_s4 + $0x80] sm:$0xff]   ;;  %v1334_v29 = vrot.slane %v596_v18, 6 }
  0x42   : > { %1042 = vmatmul.mubr.bf16.gmra.mrb[12].mxu1 %v4148_v20  ;;  %4531 = vmatpush3.bf16.msra.mxu0 %v5049_v39  ;;  %v650_v20 = vrot.slane %v649_v44, 4  ;;  %v1306_v39 = vsel %vm5617_vm8, %v5548_v28, %v1305_v26  ;;  %v1071_v44 = vrot.slane %v5435_v8, 5  ;;  %v1316_v46 = vsel %vm5617_vm8, %v1310_v54, %v1315_v40  ;;  %v5066_v40 = vld [vmem:[%s7000_s4 + $0x90] sm:$0xff]  }
  0x43   : > { %4571 = vmatpush3.bf16.msra.mxu1 %v5050_v37  ;;  %4532 = vmatprep.subr.bf16.mxu0 %v5051_v19  ;;  %v4169_v37 = vrot.slane %v5438_v9, 9  ;;  %v1075_v19 = vrot.slane %v5441_v10, 5  ;;  %v4198_v28 = vcombine.low %v1306_v39, %v1316_v46  ;;  %v4174_v26 = vcombine.low %v1064_v21, %v1068_v42 }
  0x44   : > { %v655_v7 = vsel %vm5402_vm2, %v650_v20, %v654_v30  ;;  %4572 = vmatprep.subr.bf16.mxu1 %v5052_v43  ;;  %v5056_v30 = vld [vmem:[%s7000_s4 + $0xc0] sm:$0xff]   ;;  %v5676_v47 = vsel %vm5607_vm7, %v4168_v32, %v1071_v44  ;;  %v4199_v20 = vcombine.high %v1306_v39, %v1316_v46  ;;  %v1317_v43 = vrot.slane %v573_v11, 5  ;;  %v5063_v39 = vld [vmem:[%s6998_s2 + $0x250] sm:$0xff]   ;;  %v5068_v46 = vld [vmem:[%s7000_s4 + $0xd8] sm:$0xff]  }
  0x45   : > { %v4125_v55 = vcombine.high %v641_v24, %v655_v7  ;;  %v4124_v45 = vcombine.low %v641_v24, %v655_v7  ;;  %v5689_v24 = vsel %vm5607_vm7, %v4169_v37, %v1075_v19  ;;  %v1321_v7 = vshrl.u32 %v5435_v8, 16 }
  0x46   : > { %4533 = vmatpush3.bf16.msra.mxu0 %v5053_v25  ;;  %v1318_v25 = vrot.slane %v576_v12, 6  ;;  %1537 = vmatprep.mubr.bf16.mxu1 %v4199_v20  ;;  %v4177_v11 = vcombine.high %v5676_v47, %v5689_v24  ;;  %v1324_v12 = vrot.slane %v582_v13, 6  ;;  %v1327_v21 = vrot.slane %v587_v14, 5  ;;  %v5061_v13 = vld [vmem:[%s6998_s2 + $0x208] sm:$0xff]  }
  0x47   : > { %4573 = vmatpush3.bf16.msra.mxu1 %v5054_v35  ;;  %840 = vmatprep.mubr.bf16.mxu0 %v4125_v55  ;;  %v5059_v35 = vld [vmem:[%s6998_s2 + $0x248] sm:$0xff]   ;;  %v1328_v42 = vrot.slane %v590_v15, 6  ;;  %v5064_v15 = vld [vmem:[%s7000_s4 + $0xd0] sm:$0xff]   ;;  %v4170_v19 = vrot.slane %v5501_v51, 9  ;;  %v4176_v20 = vcombine.low %v5676_v47, %v5689_v24  ;;  %v5070_v47 = vld [vmem:[%s7000_s4 + $0x98] sm:$0xff]  }
  0x48   : > { %4598 = vmatprep.subr.bf16.mxu0 %v5055_v60  ;;  %841 = vmatmul.mubr.bf16.gmra.mrb[12].mxu0 %v4124_v45  ;;  %v1319_v54 = vor.u32 %v1318_v25, %v1317_v43  ;;  %v5062_v55 = vld [vmem:[%s7000_s4 + $0x88] sm:$0xff]   ;;  %v1323_v45 = vrot.slane %v1321_v7, 5  ;;  %v5065_v25 = vld [vmem:[%s6998_s2 + $0x210] sm:$0xff]   ;;  %v1337_v7 = vrot.slane %v601_v38, 5  ;;  %v1347_v38 = vrot.slane %v615_v62, 5 }
  0x49   : > { %4638 = vmatprep.subr.bf16.mxu1 %v5056_v30  ;;  %1253 = vmatprep.mubr.bf16.mxu0 %v4175_v23  ;;  %v1331_v23 = vshrl.u32 %v5441_v10, 16  ;;  %v1329_v60 = vor.u32 %v1328_v42, %v1327_v21  ;;  %v1344_v42 = vrot.slane %v610_v59, 6  ;;  %v5071_v59 = vld [vmem:[%s6998_s2 + $0x260] sm:$0xff]  }
  0x4a   : > { %1538 = vmatmul.mubr.bf16.vlgmr.msra.gmra.mrb[16].mxu1 %v4198_v28  ;;  %v1320_v14 = vrot.slane %v1319_v54, 4  ;;  %v1325_v30 = vor.u32 %v1324_v12, %v1323_v45  ;;  %v1341_v54 = vshrl.u32 %v5504_v52, 16  ;;  %v5069_v12 = vld [vmem:[%s6998_s2 + $0x218] sm:$0xff]  }
  0x4b   : > { %4639 = vmatpush3.bf16.msra.mxu1 %v5058_v0  ;;  %v1333_v32 = vrot.slane %v1331_v23, 5  ;;  %v1330_v18 = vrot.slane %v1329_v60, 4  ;;  %v1079_v0 = vrot.slane %v5504_v52, 5 }
  0x4c   : > { %4640 = vmatprep.subr.bf16.mxu1 %v5060_v22  ;;  %v1326_v44 = vsel %vm5617_vm8, %v1320_v14, %v1325_v30  ;;  %v5074_v14 = vld [vmem:[%s7000_s4 + $0xa0] sm:$0xff]  }
  0x4d   : > { %v1335_v37 = vor.u32 %v1334_v29, %v1333_v32  ;;  %v1080_v24 = vsel %vm5607_vm7, %v4170_v19, %v1079_v0  ;;  %v1343_v29 = vrot.slane %v1341_v54, 5 }
  0x4f   : > { %4641 = vmatpush3.bf16.msra.mxu1 %v5062_v55  ;;  %v1336_v28 = vsel %vm5617_vm8, %v1330_v18, %v1335_v37  ;;  %v5072_v55 = vld [vmem:[%s7000_s4 + $0xe0] sm:$0xff]  }
  0x50   : > { %1254 = vmatmul.mubr.bf16.vlgmr.msra.gmra.mrb[16].mxu0 %v4174_v26  ;;  %4642 = vmatprep.subr.bf16.mxu1 %v5064_v15  ;;  %v4201_v43 = vcombine.high %v1326_v44, %v1336_v28  ;;  %v4200_v22 = vcombine.low %v1326_v44, %v1336_v28  ;;  %v5067_v26 = vld [vmem:[%s6998_s2 + $0x258] sm:$0xff]   ;;  %v1345_v15 = vor.u32 %v1344_v42, %v1343_v29  ;;  %v4172_v44 = vrot.slane %v5570_v48, 9  ;;  %v5073_v37 = vld [vmem:[%s6998_s2 + $0x220] sm:$0xff]   ;;  %v5075_v28 = vld [vmem:[%s6998_s2 + $0x268] sm:$0xff]  }
  0x51   : > { %4599 = vmatpush3.bf16.msra.mxu0 %v5057_v6  ;;  %1261 = vmatprep.mubr.bf16.mxu0 %v4177_v11  ;;  %v4171_v6 = vrot.slane %v5509_v56, 9  ;;  %v1083_v11 = vrot.slane %v5512_v57, 5 }
  0x52   : > { %4600 = vmatprep.subr.bf16.mxu0 %v5059_v35  ;;  %v1338_v35 = vrot.slane %v604_v58, 6  ;;  %1545 = vmatprep.mubr.bf16.mxu1 %v4201_v43  ;;  %v1348_v58 = vrot.slane %v618_v63, 6  ;;  %v1354_v63 = vrot.slane %v624_v1, 6  ;;  %v5076_v1 = vld [vmem:[%s7000_s4 + $0xe8] sm:$0xff]  }
  0x53   : > { %4643 = vmatpush3.bf16.msra.mxu1 %v5066_v40  ;;  %v1084_v21 = vsel %vm5607_vm7, %v4171_v6, %v1083_v11  ;;  %v1091_v6 = vrot.slane %v5579_v61, 5  ;;  %v1357_v11 = vrot.slane %v629_v2, 5  ;;  %v1367_v2 = vrot.slane %v643_v41, 5 }
  0x54   : > { %4644 = vmatprep.subr.bf16.mxu1 %v5068_v46  ;;  %1546 = vmatmul.mubr.bf16.gmra.mrb[20].mxu1 %v4200_v22  ;;  %v4179_v45 = vcombine.high %v1080_v24, %v1084_v21  ;;  %v1339_v23 = vor.u32 %v1338_v35, %v1337_v7  ;;  %v1349_v62 = vor.u32 %v1348_v58, %v1347_v38  ;;  %v1087_v46 = vrot.slane %v5573_v49, 5  ;;  %v5077_v22 = vld [vmem:[%s6998_s2 + $0x228] sm:$0xff]   ;;  %v5079_v35 = vld [vmem:[%s6998_s2 + $0x270] sm:$0xff]  }
  0x55   : > { %4601 = vmatpush3.bf16.msra.mxu0 %v5061_v13  ;;  %v1351_v13 = vshrl.u32 %v5512_v57, 16  ;;  %v4178_v40 = vcombine.low %v1080_v24, %v1084_v21  ;;  %v1361_v24 = vshrl.u32 %v5573_v49, 16  ;;  %v1364_v7 = vrot.slane %v638_v4, 6  ;;  %v5080_v4 = vld [vmem:[%s7000_s4 + $0xf0] sm:$0xff]  }
  0x56   : > { %4602 = vmatprep.subr.bf16.mxu0 %v5063_v39  ;;  %v1340_v60 = vrot.slane %v1339_v23, 4  ;;  %v1350_v32 = vrot.slane %v1349_v62, 4  ;;  %v1374_v58 = vrot.slane %v652_v17, 6  ;;  %v5082_v17 = vld [vmem:[%s7000_s4 + $0xb0] sm:$0xff]  }
  0x57   : > { %4645 = vmatpush3.bf16.msra.mxu1 %v5070_v47  ;;  %v1353_v30 = vrot.slane %v1351_v13, 5  ;;  %v1358_v47 = vrot.slane %v632_v3, 6  ;;  %v1368_v3 = vrot.slane %v646_v16, 6  ;;  %v1363_v38 = vrot.slane %v1361_v24, 5 }
  0x58   : > { %1262 = vmatmul.mubr.bf16.gmra.mrb[20].mxu0 %v4176_v20  ;;  %4646 = vmatprep.subr.bf16.mxu1 %v5072_v55  ;;  %v1346_v39 = vsel %vm5617_vm8, %v1340_v60, %v1345_v15  ;;  %v4173_v20 = vrot.slane %v5576_v50, 9  ;;  %v5084_v60 = vld [vmem:[%s7000_s4 + $0xf8] sm:$0xff]   ;;  %v4222_v15 = vrot.slane %v5365_v33, 10  ;;  %v5167_v33 = vld [vmem:[%s5356_s17 + $0x10] sm:$0xff] }
  0x59   : > { %4603 = vmatpush3.bf16.msra.mxu0 %v5065_v25  ;;  %1269 = vmatprep.mubr.bf16.mxu0 %v4179_v45  ;;  %v1355_v18 = vor.u32 %v1354_v63, %v1353_v30  ;;  %v5078_v25 = vld [vmem:[%s7000_s4 + $0xa8] sm:$0xff]   ;;  %v1359_v42 = vor.u32 %v1358_v47, %v1357_v11  ;;  %v1369_v16 = vor.u32 %v1368_v3, %v1367_v2  ;;  %v5081_v45 = vld [vmem:[%s6998_s2 + $0x230] sm:$0xff]   ;;  %v5083_v63 = vld [vmem:[%s6998_s2 + $0x278] sm:$0xff]  }
  0x5a   : > { %4604 = vmatprep.subr.bf16.mxu0 %v5067_v26  ;;  %v1088_v26 = vsel %vm5607_vm7, %v4172_v44, %v1087_v46  ;;  %v1092_v54 = vsel %vm5607_vm7, %v4173_v20, %v1091_v6  ;;  %v1365_v29 = vor.u32 %v1364_v7, %v1363_v38  ;;  %v4223_v44 = vrot.slane %v5167_v33, 10  ;;  %v5866_v46 = vld [vmem:[%s5843_s21] sm:$0xff] }
  0x5b   : > { %v1356_v19 = vsel %vm5617_vm8, %v1350_v32, %v1355_v18  ;;  %4647 = vmatpush3.bf16.msra.mxu1 %v5074_v14  ;;  %v4181_v21 = vcombine.high %v1088_v26, %v1092_v54  ;;  %v1360_v23 = vrot.slane %v1359_v42, 4  ;;  %v4180_v13 = vcombine.low %v1088_v26, %v1092_v54  ;;  %v5085_v32 = vld [vmem:[%s6998_s2 + $0x238] sm:$0xff]   ;;  %v5088_v3 = vld [vmem:[%s7000_s4] sm:$0xff]  }
  0x5c   : > { %v4203_v0 = vcombine.high %v1346_v39, %v1356_v19  ;;  %v4202_v43 = vcombine.low %v1346_v39, %v1356_v19  ;;  %4648 = vmatprep.subr.bf16.mxu1 %v5076_v1  ;;  %v1583_v39 = vrot.slane %v5368_v34, 6  ;;  %v5086_v1 = vld [vmem:[%s7000_s4 + $0xb8] sm:$0xff]   ;;  %v5869_v19 = vld [vmem:[%s5843_s21 + $0x8] sm:$0xff]  ;;  %v2070_v20 = vshrl.u32 %v5866_v46, 16 }
  0x5d   : > { %4605 = vmatpush3.bf16.msra.mxu0 %v5069_v12  ;;  %v1371_v12 = vshrl.u32 %v5579_v61, 16  ;;  %v1366_v14 = vsel %vm5617_vm8, %v1360_v23, %v1365_v29  ;;  %v1591_v42 = vrot.slane %v5435_v8, 6  ;;  %v5915_v29 = vld [vmem:[%s5843_s21 + $0x18] sm:$0xff]  ;;  %v5918_v8 = vld [vmem:[%s5843_s21 + $0x20] sm:$0xff] }
  0x5e   : > { %4606 = vmatprep.subr.bf16.mxu0 %v5071_v59  ;;  %1553 = vmatprep.mubr.bf16.mxu1 %v4203_v0  ;;  %v1370_v59 = vrot.slane %v1369_v16, 4  ;;  %v1584_v34 = vsel %vm5828_vm11, %v4222_v15, %v1583_v39  ;;  %v2073_v0 = vshll.u32 %v5866_v46, 16  ;;  %v2072_v11 = vrot.slane %v2070_v20, 4  ;;  %v5091_v16 = vld [vmem:[%s7000_s4 + $0x140] sm:$0xff]  }
  0x5f   : > { %1554 = vmatmul.mubr.bf16.gmra.mrb[24].mxu1 %v4202_v43  ;;  %v1373_v55 = vrot.slane %v1371_v12, 5  ;;  %v2079_v43 = vshll.u32 %v5869_v19, 16  ;;  %v4224_v12 = vrot.slane %v5430_v5, 10  ;;  %v1595_v5 = vrot.slane %v5441_v10, 6  ;;  %v5092_v15 = vld [vmem:[%s7000_s4 + $0x100] sm:$0xff]  }
  0x60   : > { %1270 = vmatmul.mubr.bf16.gmra.mrb[24].mxu0 %v4178_v40  ;;  %4649 = vmatpush3.bf16.msra.mxu1 %v5078_v25  ;;  %v2083_v25 = vshrl.u32 %v5869_v19, 16  ;;  %v2075_v47 = vrot.slane %v2073_v0, 5  ;;  %v2094_v10 = vshrl.u32 %v5915_v29, 16 }
  0x61   : > { %4607 = vmatpush3.bf16.msra.mxu0 %v5073_v37  ;;  %1277 = vmatprep.mubr.bf16.mxu0 %v4181_v21  ;;  %v1375_v62 = vor.u32 %v1374_v58, %v1373_v55  ;;  %v1587_v37 = vrot.slane %v5374_v36, 6  ;;  %v5087_v36 = vld [vmem:[%s7000_s4 + $0x40] sm:$0xff]   ;;  %v2081_v7 = vrot.slane %v2079_v43, 5  ;;  %v5089_v21 = vld [vmem:[%s7000_s4 + $0x48] sm:$0xff]   ;;  %v4225_v55 = vrot.slane %v5438_v9, 10 }
  0x62   : > { %4608 = vmatprep.subr.bf16.mxu0 %v5075_v28  ;;  %4650 = vmatprep.subr.bf16.mxu1 %v5080_v4  ;;  %v5874_v28 = vld [vmem:[%s5843_s21 + $0x10] sm:$0x33]  ;;  %v2076_v2 = vor.u32 %v2075_v47, %v2072_v11  ;;  %v5090_v58 = vld [vmem:[%s7000_s4 + $0x8] sm:$0xff]   ;;  %v1592_v23 = vsel %vm5828_vm11, %v4224_v12, %v1591_v42  ;;  %v5095_v47 = vld [vmem:[%s7000_s4 + $0x58] sm:$0xff]  }
  0x63   : > { %v1376_v30 = vsel %vm5617_vm8, %v1370_v59, %v1375_v62  ;;  %v2089_v26 = vshll.u32 %v5874_v28, 16  ;;  %v1596_v9 = vsel %vm5828_vm11, %v4225_v55, %v1595_v5  ;;  %v2097_v62 = vshll.u32 %v5915_v29, 16  ;;  %v5969_v12 = vld [vmem:[%s5843_s21 + $0x30] sm:$0xff] }
  0x64   : > { %4651 = vmatpush3.bf16.msra.mxu1 %v5082_v17  ;;  %v4205_v18 = vcombine.high %v1366_v14, %v1376_v30  ;;  %v4204_v40 = vcombine.low %v1366_v14, %v1376_v30  ;;  %v2077_v38 = vrot.slane %v2076_v2, 4  ;;  %v4226_v17 = vrot.slane %v5501_v51, 10  ;;  %v5093_v30 = vld [vmem:[%s7000_s4 + $0x50] sm:$0xff]  }
  0x65   : > { %4609 = vmatpush3.bf16.msra.mxu0 %v5077_v22  ;;  %4652 = vmatprep.subr.bf16.mxu1 %v5084_v60  ;;  %v1588_v22 = vsel %vm5828_vm11, %v4223_v44, %v1587_v37  ;;  %v2091_v54 = vrot.slane %v2089_v26, 5  ;;  %v4233_v14 = vcombine.high %v1592_v23, %v1596_v9  ;;  %v2103_v60 = vshll.u32 %v5918_v8, 16 }
  0x66   : > { %4610 = vmatprep.subr.bf16.mxu0 %v5079_v35  ;;  %1561 = vmatprep.mubr.bf16.mxu1 %v4205_v18  ;;  %v4231_v6 = vcombine.high %v1584_v34, %v1588_v22  ;;  %v4230_v24 = vcombine.low %v1584_v34, %v1588_v22  ;;  %v2085_v35 = vrot.slane %v2083_v25, 4  ;;  %v2082_v59 = vsel %vm5402_vm2, %v2077_v38, %v2081_v7  ;;  %v5980_v38 = vld [vmem:[%s5843_s21 + $0x40] sm:$0x33] }
  0x67   : > { %1562 = vmatmul.mubr.bf16.gmra.mrb[28].mxu1 %v4204_v40  ;;  %v2107_v51 = vshrl.u32 %v5918_v8, 16  ;;  %v2096_v18 = vrot.slane %v2094_v10, 4  ;;  %v2099_v40 = vrot.slane %v2097_v62, 5  ;;  %v4232_v37 = vcombine.low %v1592_v23, %v1596_v9 }
  0x68   : > { %1278 = vmatmul.mubr.bf16.gmra.mrb[28].mxu0 %v4180_v13  ;;  %4653 = vmatpush3.bf16.msra.mxu1 %v5086_v1  ;;  %v2086_v4 = vor.u32 %v2085_v35, %v2081_v7  ;;  %v5921_v13 = vld [vmem:[%s5843_s21 + $0x28] sm:$0x33]  ;;  %v2105_v1 = vrot.slane %v2103_v60, 5  ;;  %v1599_v22 = vrot.slane %v5504_v52, 6  ;;  %v5096_v7 = vld [vmem:[%s7000_s4 + $0x18] sm:$0xff]   ;;  %v4227_v2 = vrot.slane %v5509_v56, 10 }
  0x69   : > { %4611 = vmatpush3.bf16.msra.mxu0 %v5081_v45  ;;  %1773 = vmatprep.mubr.bf16.mxu0 %v4231_v6  ;;  %v2109_v33 = vrot.slane %v2107_v51, 4  ;;  %v7031_v44 = vshll.u32 %v5921_v13, 16  ;;  %v2100_v34 = vor.u32 %v2099_v40, %v2096_v18  ;;  %v5097_v52 = vld [vmem:[%s7000_s4 + $0x148] sm:$0xff]   ;;  %v2121_v56 = vshll.u32 %v5969_v12, 16 }
  0x6a   : > { %4612 = vmatprep.subr.bf16.mxu0 %v5083_v63  ;;  %v2087_v45 = vrot.slane %v2086_v4, 4  ;;  %4766 = vmatprep.subr.bf16.mxu1 %v5091_v16  ;;  %v5972_v4 = vld [vmem:[%s5843_s21 + $0x38] sm:$0xff]  ;;  %v5099_v16 = vld [vmem:[%s7000_s4 + $0x60] sm:$0xff]   ;;  %v7032_v23 = vshll.u32 %v5980_v38, 16 }
  0x6b   : > { %v2110_v6 = vor.u32 %v2109_v33, %v2105_v1  ;;  %v2115_v11 = vrot.slane %v7031_v44, 5  ;;  %v5101_v33 = vld [vmem:[%s7000_s4 + $0x68] sm:$0xff]   ;;  %v5156_v44 = vld [vmem:[%s7000_s4 + $0x1b8] sm:$0xff]  }
  0x6c   : > { %v2092_v63 = vsel %vm5402_vm2, %v2087_v45, %v2091_v54  ;;  %v1600_v54 = vsel %vm5828_vm11, %v4226_v17, %v1599_v22  ;;  %v2131_v45 = vshrl.u32 %v5972_v4, 16 }
  0x6d   : > { %4613 = vmatpush3.bf16.msra.mxu0 %v5085_v32  ;;  %v4255_v32 = vcombine.low %v2082_v59, %v2092_v63  ;;  %v4256_v39 = vcombine.high %v2082_v59, %v2092_v63  ;;  %v2111_v35 = vrot.slane %v2110_v6, 4 }
  0x6e   : > { %4702 = vmatprep.subr.bf16.mxu0 %v5087_v36  ;;  %v5094_v36 = vld [vmem:[%s7000_s4 + $0x10] sm:$0xff]  }
  0x6f   : > { %2453 = vmatprep.mubr.bf16.mxu1 %v4256_v39  ;;  %v2116_v55 = vsel %vm5402_vm2, %v2111_v35, %v2115_v11  ;;  %v2139_v39 = vrot.slane %v7032_v23, 5  ;;  %v5103_v11 = vld [vmem:[%s7000_s4 + $0x150] sm:$0xff]  }
  0x70   : > { %1774 = vmatmul.mubr.bf16.vlgmr.msra.gmra.mrb[32].mxu0 %v4230_v24  ;;  %2454 = vmatmul.mubr.bf16.vlgmr.msra.gmra.mrb[32].mxu1 %v4255_v32  ;;  %v2101_v24 = vrot.slane %v2100_v34, 4  ;;  %v2133_v32 = vrot.slane %v2131_v45, 4  ;;  %v5102_v34 = vld [vmem:[%s7000_s4 + $0x28] sm:$0xff]  }
  0x71   : > { %4703 = vmatpush3.bf16.msra.mxu0 %v5088_v3  ;;  %1781 = vmatprep.mubr.bf16.mxu0 %v4233_v14  ;;  %v1603_v3 = vrot.slane %v5512_v57, 6  ;;  %v7033_v57 = vshll.u32 %v5972_v4, 16  ;;  %v5100_v14 = vld [vmem:[%s7000_s4 + $0x20] sm:$0xff]  }
  0x72   : > { %4704 = vmatprep.subr.bf16.mxu0 %v5089_v21  ;;  %4767 = vmatpush3.bf16.msra.mxu1 %v5092_v15  ;;  %v5098_v21 = vld [vmem:[%s7000_s4 + $0x108] sm:$0xff]   ;;  %v2106_v42 = vsel %vm5402_vm2, %v2101_v24, %v2105_v1  ;;  %v2123_v15 = vrot.slane %v2121_v56, 5  ;;  %v1611_v24 = vrot.slane %v5579_v61, 6 }
  0x73   : > { %4768 = vmatprep.subr.bf16.mxu1 %v5097_v52  ;;  %v1604_v5 = vsel %vm5828_vm11, %v4227_v2, %v1603_v3  ;;  %v4258_v17 = vcombine.high %v2106_v42, %v2116_v55  ;;  %v4257_v59 = vcombine.low %v2106_v42, %v2116_v55  ;;  %v6026_v52 = vld [vmem:[%s5843_s21 + $0x50] sm:$0xff] }
  0x74   : > { %v4235_v9 = vcombine.high %v1600_v54, %v1604_v5  ;;  %v4234_v18 = vcombine.low %v1600_v54, %v1604_v5  ;;  %v5105_v42 = vld [vmem:[%s7000_s4 + $0x70] sm:$0xff]  }
  0x75   : > { %4705 = vmatpush3.bf16.msra.mxu0 %v5090_v58  ;;  %v2118_v58 = vshrl.u32 %v5969_v12, 16  ;;  %2461 = vmatprep.mubr.bf16.mxu1 %v4258_v17 }
  0x76   : > { %4706 = vmatprep.subr.bf16.mxu0 %v5093_v30  ;;  %4769 = vmatpush3.bf16.msra.mxu1 %v5098_v21  ;;  %v2129_v30 = vrot.slane %v7033_v57, 5  ;;  %v7022_v21 = vshll.u32 %v6026_v52, 16  ;;  %v3132_v57 = vrot.slane %v2083_v25, 5 }
  0x77   : > { %v2120_v63 = vrot.slane %v2118_v58, 4  ;;  %4770 = vmatprep.subr.bf16.mxu1 %v5103_v11  ;;  %v6079_v11 = vld [vmem:[%s5843_s21 + $0x70] sm:$0x33] }
  0x78   : > { %1782 = vmatmul.mubr.bf16.gmra.mrb[36].mxu0 %v4232_v37  ;;  %2462 = vmatmul.mubr.bf16.gmra.mrb[36].mxu1 %v4257_v59  ;;  %v2134_v1 = vor.u32 %v2133_v32, %v2129_v30  ;;  %v4228_v37 = vrot.slane %v5570_v48, 10  ;;  %v5106_v59 = vld [vmem:[%s7000_s4 + $0x30] sm:$0xff]   ;;  %v4288_v32 = vcombine.high %v5866_v46, %v5869_v19 }
  0x79   : > { %4707 = vmatpush3.bf16.msra.mxu0 %v5094_v36  ;;  %1789 = vmatprep.mubr.bf16.mxu0 %v4235_v9  ;;  %v2124_v40 = vor.u32 %v2123_v15, %v2120_v63  ;;  %v1607_v36 = vrot.slane %v5573_v49, 6  ;;  %v6029_v49 = vld [vmem:[%s5843_s21 + $0x58] sm:$0x33]  ;;  %v2153_v63 = vrot.slane %v7022_v21, 5 }
  0x7a   : > { %4708 = vmatprep.subr.bf16.mxu0 %v5095_v47  ;;  %v2135_v6 = vrot.slane %v2134_v1, 4  ;;  %v4229_v47 = vrot.slane %v5576_v50, 10  ;;  %v5104_v50 = vld [vmem:[%s7000_s4 + $0x110] sm:$0xff]   ;;  %v7021_v15 = vshll.u32 %v6029_v49, 16  ;;  %v5108_v1 = vld [vmem:[%s7000_s4 + $0x38] sm:$0xff]  }
  0x7b   : > { %v2125_v22 = vrot.slane %v2124_v40, 4  ;;  %v1608_v48 = vsel %vm5828_vm11, %v4228_v37, %v1607_v36  ;;  %4771 = vmatpush3.bf16.msra.mxu1 %v5104_v50  ;;  %v5107_v40 = vld [vmem:[%s7000_s4 + $0x78] sm:$0xff]  }
  0x7c   : > { %v2140_v2 = vsel %vm5402_vm2, %v2135_v6, %v2139_v39  ;;  %v1612_v3 = vsel %vm5828_vm11, %v4229_v47, %v1611_v24  ;;  %v5109_v36 = vld [vmem:[%s7000_s4 + $0x158] sm:$0xff]   ;;  %v6076_v6 = vld [vmem:[%s5843_s21 + $0x68] sm:$0xff] }
  0x7d   : > { %4709 = vmatpush3.bf16.msra.mxu0 %v5096_v7  ;;  %v6021_v7 = vld [vmem:[%s5843_s21 + $0x48] sm:$0xff]  ;;  %v2130_v61 = vsel %vm5402_vm2, %v2125_v22, %v2129_v30  ;;  %v4237_v5 = vcombine.high %v1608_v48, %v1612_v3  ;;  %v4236_v30 = vcombine.low %v1608_v48, %v1612_v3  ;;  %v6073_v22 = vld [vmem:[%s5843_s21 + $0x60] sm:$0xff]  ;;  %v7007_v48 = vshll.u32 %v6076_v6, 16  ;;  %4772 = vmatprep.subr.bf16.mxu1 %v5109_v36 }
  0x7e   : > { %4710 = vmatprep.subr.bf16.mxu0 %v5099_v16  ;;  %v7027_v35 = vshrl.u32 %v6021_v7, 16  ;;  %v7026_v54 = vshll.u32 %v6021_v7, 16  ;;  %v4260_v16 = vcombine.high %v2130_v61, %v2140_v2  ;;  %v4259_v55 = vcombine.low %v2130_v61, %v2140_v2 }
  0x7f   : > { %v7020_v47 = vshrl.u32 %v6073_v22, 16  ;;  %v7014_v24 = vshll.u32 %v6073_v22, 16  ;;  %v7013_v50 = vshrl.u32 %v6076_v6, 16  ;;  %v7006_v3 = vshll.u32 %v6079_v11, 16 }
  0x80   : > { %1790 = vmatmul.mubr.bf16.gmra.mrb[40].mxu0 %v4234_v18  ;;  %v2144_v17 = vrot.slane %v7027_v35, 4  ;;  %v2147_v9 = vrot.slane %v7026_v54, 5  ;;  %2469 = vmatprep.mubr.bf16.mxu1 %v4260_v16  ;;  %v4290_v36 = vcombine.high %v5915_v29, %v5918_v8  ;;  %v2829_v23 = vrot.slane %v6076_v6, 5 }
  0x81   : > { %4711 = vmatpush3.bf16.msra.mxu0 %v5100_v14  ;;  %v7023_v14 = vshrl.u32 %v6026_v52, 16  ;;  %2470 = vmatmul.mubr.bf16.gmra.mrb[40].mxu1 %v4259_v55  ;;  %v2171_v16 = vrot.slane %v7014_v24, 5  ;;  %v2177_v55 = vrot.slane %v7007_v48, 5  ;;  %v6120_v48 = vld [vmem:[%s5843_s21 + $0x80] sm:$0xff]  ;;  %v5125_v24 = vld [vmem:[%s7000_s4 + $0x1d0] sm:$0xff]  }
  0x82   : > { %4712 = vmatprep.subr.bf16.mxu0 %v5101_v33  ;;  %1797 = vmatprep.mubr.bf16.mxu0 %v4237_v5  ;;  %v2148_v39 = vor.u32 %v2147_v9, %v2144_v17  ;;  %v2181_v5 = vrot.slane %v7013_v50, 4  ;;  %v5111_v17 = vld [vmem:[%s7000_s4 + $0x118] sm:$0xff]  }
  0x83   : > { %v2157_v18 = vrot.slane %v7023_v14, 4  ;;  %4773 = vmatpush3.bf16.msra.mxu1 %v5111_v17 }
  0x84   : > { %v2149_v33 = vrot.slane %v2148_v39, 4 }
  0x85   : > { %4713 = vmatpush3.bf16.msra.mxu0 %v5102_v34  ;;  %v2158_v37 = vor.u32 %v2157_v18, %v2153_v63  ;;  %v2163_v34 = vrot.slane %v7021_v15, 5 }
  0x86   : > { %4714 = vmatprep.subr.bf16.mxu0 %v5105_v42  ;;  %v2154_v61 = vsel %vm5402_vm2, %v2149_v33, %v2153_v63  ;;  %v2168_v42 = vrot.slane %v7020_v47, 4  ;;  %v2187_v63 = vrot.slane %v7006_v3, 5  ;;  %v2182_v33 = vor.u32 %v2181_v5, %v2177_v55 }
  0x87   : > { %v2159_v2 = vrot.slane %v2158_v37, 4  ;;  %v5115_v37 = vld [vmem:[%s7000_s4 + $0x160] sm:$0xff]   ;;  %v7011_v5 = vshrl.u32 %v6120_v48, 16 }
  0x88   : > { %1798 = vmatmul.mubr.bf16.gmra.mrb[44].mxu0 %v4236_v30  ;;  %v4287_v30 = vcombine.low %v5866_v46, %v5869_v19  ;;  %v2183_v3 = vrot.slane %v2182_v33, 4  ;;  %4774 = vmatprep.subr.bf16.mxu1 %v5115_v37 }
  0x89   : > { %4715 = vmatpush3.bf16.msra.mxu0 %v5106_v59  ;;  %2726 = vmatprep.mubr.bf16.mxu0 %v4288_v32  ;;  %v5113_v59 = vld [vmem:[%s7000_s4 + $0x1c0] sm:$0xff]   ;;  %v2164_v9 = vsel %vm5402_vm2, %v2159_v2, %v2163_v34  ;;  %v6115_v34 = vld [vmem:[%s5843_s21 + $0x78] sm:$0xff] }
  0x8a   : > { %4716 = vmatprep.subr.bf16.mxu0 %v5107_v40  ;;  %v5114_v32 = vld [vmem:[%s7000_s4 + $0x180] sm:$0xff]   ;;  %v4262_v39 = vcombine.high %v2154_v61, %v2164_v9  ;;  %v4261_v18 = vcombine.low %v2154_v61, %v2164_v9  ;;  %v2172_v40 = vor.u32 %v2171_v16, %v2168_v42  ;;  %v6123_v61 = vld [vmem:[%s5843_s21 + $0x88] sm:$0x33]  ;;  %v7009_v42 = vshll.u32 %v6115_v34, 16 }
  0x8b   : > { %v7008_v16 = vshll.u32 %v6120_v48, 16  ;;  %v7012_v17 = vshll.u32 %v6123_v61, 16  ;;  %v2188_v9 = vsel %vm5402_vm2, %v2183_v3, %v2187_v63  ;;  %v5119_v3 = vld [vmem:[%s7000_s4 + $0x1c8] sm:$0xff]  }
  0x8c   : > { %2477 = vmatprep.mubr.bf16.mxu1 %v4262_v39  ;;  %v2173_v2 = vrot.slane %v2172_v40, 4  ;;  %v2195_v40 = vrot.slane %v7009_v42, 5  ;;  %v5120_v63 = vld [vmem:[%s7000_s4 + $0x188] sm:$0xff]  }
  0x8d   : > { %4717 = vmatpush3.bf16.msra.mxu0 %v5108_v1  ;;  %v7010_v1 = vshrl.u32 %v6115_v34, 16  ;;  %2478 = vmatmul.mubr.bf16.gmra.mrb[44].mxu1 %v4261_v18  ;;  %v2211_v42 = vrot.slane %v7012_v17, 5  ;;  %v5123_v17 = vld [vmem:[%s7000_s4 + $0x128] sm:$0xff]  }
  0x8e   : > { %4830 = vmatprep.subr.bf16.mxu0 %v5113_v59  ;;  %v2178_v59 = vsel %vm5402_vm2, %v2173_v2, %v2177_v55  ;;  %v2201_v55 = vrot.slane %v7008_v16, 5  ;;  %v4289_v2 = vcombine.low %v5915_v29, %v5918_v8 }
  0x8f   : > { %v2192_v39 = vrot.slane %v7010_v1, 4  ;;  %v4264_v18 = vcombine.high %v2178_v59, %v2188_v9  ;;  %v4263_v33 = vcombine.low %v2178_v59, %v2188_v9  ;;  %v6159_v1 = vld [vmem:[%s5843_s21 + $0x90] sm:$0xff]  ;;  %v4292_v59 = vcombine.high %v5969_v12, %v5972_v4 }
  0x90   : > { %2727 = vmatmul.mubr.bf16.vlgmr.msra.gmra.mrb[48].mxu0 %v4287_v30  ;;  %v5117_v30 = vld [vmem:[%s7000_s4 + $0x120] sm:$0xff]  }
  0x91   : > { %4831 = vmatpush3.bf16.msra.mxu0 %v5114_v32  ;;  %2734 = vmatprep.mubr.bf16.mxu0 %v4290_v36  ;;  %v2205_v32 = vrot.slane %v7011_v5, 4  ;;  %v2196_v37 = vor.u32 %v2195_v40, %v2192_v39  ;;  %v5121_v36 = vld [vmem:[%s7000_s4 + $0x168] sm:$0xff]   ;;  %v6162_v5 = vld [vmem:[%s5843_s21 + $0x98] sm:$0xff]  ;;  %v7017_v39 = vshrl.u32 %v6159_v1, 16 }
  0x92   : > { %4775 = vmatpush3.bf16.msra.mxu1 %v5117_v30  ;;  %2485 = vmatprep.mubr.bf16.mxu1 %v4264_v18  ;;  %v6165_v30 = vld [vmem:[%s5843_s21 + $0xa0] sm:$0x33]  ;;  %v7016_v18 = vshll.u32 %v6159_v1, 16  ;;  %v7015_v40 = vshll.u32 %v6162_v5, 16 }
  0x93   : > { %4832 = vmatprep.subr.bf16.mxu0 %v5119_v3  ;;  %v2206_v16 = vor.u32 %v2205_v32, %v2201_v55  ;;  %v2197_v9 = vrot.slane %v2196_v37, 4  ;;  %4776 = vmatprep.subr.bf16.mxu1 %v5121_v36  ;;  %v7018_v32 = vshll.u32 %v6165_v30, 16  ;;  %v2216_v36 = vrot.slane %v7017_v39, 4 }
  0x94   : > { %v2225_v50 = vrot.slane %v7015_v40, 5  ;;  %v5126_v40 = vld [vmem:[%s7000_s4 + $0x190] sm:$0xff]  }
  0x95   : > { %4833 = vmatpush3.bf16.msra.mxu0 %v5120_v63  ;;  %v2207_v3 = vrot.slane %v2206_v16, 4  ;;  %v7019_v63 = vshrl.u32 %v6162_v5, 16  ;;  %2486 = vmatmul.mubr.bf16.gmra.mrb[48].mxu1 %v4263_v33  ;;  %v2202_v37 = vsel %vm5402_vm2, %v2197_v9, %v2201_v55  ;;  %v2219_v16 = vrot.slane %v7016_v18, 5 }
  0x96   : > { %4777 = vmatpush3.bf16.msra.mxu1 %v5123_v17  ;;  %4834 = vmatprep.subr.bf16.mxu0 %v5125_v24  ;;  %v2235_v39 = vrot.slane %v7018_v32, 5  ;;  %v6203_v17 = vld [vmem:[%s5843_s21 + $0xa8] sm:$0xff]  ;;  %v4294_v24 = vcombine.high %v6021_v7, %v6026_v52 }
  0x97   : > { %v2212_v33 = vsel %vm5402_vm2, %v2207_v3, %v2211_v42  ;;  %v2229_v55 = vrot.slane %v7019_v63, 4  ;;  %v2220_v9 = vor.u32 %v2219_v16, %v2216_v36  ;;  %v4291_v42 = vcombine.low %v5969_v12, %v5972_v4  ;;  %v6208_v16 = vld [vmem:[%s5843_s21 + $0xb0] sm:$0xff] }
  0x98   : > { %2735 = vmatmul.mubr.bf16.gmra.mrb[52].mxu0 %v4289_v2  ;;  %v4266_v2 = vcombine.high %v2202_v37, %v2212_v33  ;;  %v4265_v3 = vcombine.low %v2202_v37, %v2212_v33  ;;  %v7025_v32 = vshrl.u32 %v6203_v17, 16  ;;  %v7024_v63 = vshll.u32 %v6203_v17, 16 }
  0x99   : > { %2742 = vmatprep.mubr.bf16.mxu0 %v4292_v59  ;;  %v2230_v18 = vor.u32 %v2229_v55, %v2225_v50  ;;  %v5127_v59 = vld [vmem:[%s7000_s4 + $0x170] sm:$0xff]   ;;  %v2221_v36 = vrot.slane %v2220_v9, 4  ;;  %4835 = vmatpush3.bf16.msra.mxu0 %v5126_v40  ;;  %v6211_v55 = vld [vmem:[%s5843_s21 + $0xb8] sm:$0x33]  ;;  %v7028_v15 = vshll.u32 %v6208_v16, 16  ;;  %v7029_v21 = vshrl.u32 %v6208_v16, 16 }
  0x9a   : > { %2493 = vmatprep.mubr.bf16.mxu1 %v4266_v2  ;;  %4778 = vmatprep.subr.bf16.mxu1 %v5127_v59  ;;  %v7030_v14 = vshll.u32 %v6211_v55, 16  ;;  %v2240_v40 = vrot.slane %v7025_v32, 4  ;;  %v2243_v33 = vrot.slane %v7024_v63, 5  ;;  %v5131_v2 = vld [vmem:[%s7000_s4 + $0x1d8] sm:$0xff]   ;;  %v2801_v63 = vrot.slane %v5869_v19, 5  ;;  %v6333_v19 = vld [vmem:[%s7000_s4 + $0x200] sm:$0xff]  }
  0x9b   : > { %v2231_v47 = vrot.slane %v2230_v18, 4  ;;  %v2226_v37 = vsel %vm5402_vm2, %v2221_v36, %v2225_v50  ;;  %v5129_v18 = vld [vmem:[%s7000_s4 + $0x130] sm:$0xff]   ;;  %v2249_v50 = vrot.slane %v7028_v15, 5  ;;  %v2253_v59 = vrot.slane %v7029_v21, 4  ;;  %v5132_v36 = vld [vmem:[%s7000_s4 + $0x198] sm:$0xff]   ;;  %4836 = vmatprep.subr.bf16.mxu0 %v5131_v2 }
  0x9c   : > { %v2244_v54 = vor.u32 %v2243_v33, %v2240_v40  ;;  %4779 = vmatpush3.bf16.msra.mxu1 %v5129_v18  ;;  %v5138_v33 = vld [vmem:[%s7000_s4 + $0x1a0] sm:$0xff]   ;;  %v4296_v18 = vcombine.high %v6073_v22, %v6076_v6 }
  0x9d   : > { %v2236_v9 = vsel %vm5402_vm2, %v2231_v47, %v2235_v39  ;;  %2494 = vmatmul.mubr.bf16.gmra.mrb[52].mxu1 %v4265_v3  ;;  %v2254_v35 = vor.u32 %v2253_v59, %v2249_v50  ;;  %v2259_v47 = vrot.slane %v7030_v14, 5  ;;  %v5133_v39 = vld [vmem:[%s7000_s4 + $0x178] sm:$0xff]   ;;  %4837 = vmatpush3.bf16.msra.mxu0 %v5132_v36  ;;  %v4320_v59 = vrot.slane %v5915_v29, 9 }
  0x9e   : > { %v4268_v32 = vcombine.high %v2226_v37, %v2236_v9  ;;  %v2245_v15 = vrot.slane %v2244_v54, 4  ;;  %v5134_v3 = vld [vmem:[%s7000_s4 + $0x138] sm:$0xff]   ;;  %4780 = vmatprep.subr.bf16.mxu1 %v5133_v39  ;;  %v4319_v54 = vrot.slane %v5866_v46, 9  ;;  %v2815_v36 = vrot.slane %v5972_v4, 5 }
  0x9f   : > { %v2255_v21 = vrot.slane %v2254_v35, 4  ;;  %v5155_v14 = vld [vmem:[%s7000_s4 + $0x1f8] sm:$0xff]   ;;  %v4300_v46 = vcombine.high %v6159_v1, %v6162_v5  ;;  %v3152_v29 = vshrl.u32 %v5921_v13, 16 }
  0xa0   : > { %2743 = vmatmul.mubr.bf16.gmra.mrb[56].mxu0 %v4291_v42  ;;  %2501 = vmatprep.mubr.bf16.mxu1 %v4268_v32  ;;  %v5137_v42 = vld [vmem:[%s7000_s4 + $0x1e0] sm:$0xff]   ;;  %v2250_v40 = vsel %vm5402_vm2, %v2245_v15, %v2249_v50  ;;  %v4293_v32 = vcombine.low %v6021_v7, %v6026_v52  ;;  %v2808_v50 = vrot.slane %v5918_v8, 5 }
  0xa1   : > { %2750 = vmatprep.mubr.bf16.mxu0 %v4294_v24  ;;  %v4267_v24 = vcombine.low %v2226_v37, %v2236_v9  ;;  %v2260_v35 = vsel %vm5402_vm2, %v2255_v21, %v2259_v47  ;;  %4781 = vmatpush3.bf16.msra.mxu1 %v5134_v3  ;;  %v2803_v37 = vrot.slane %v2801_v63, 4  ;;  %v5139_v15 = vld [vmem:[%s7000_s4 + $0x240] sm:$0xff]   ;;  %v2804_v9 = vrot.slane %v5874_v28, 5  ;;  %v5144_v21 = vld [vmem:[%s7000_s4 + $0x1a8] sm:$0xff]  }
  0xa2   : > { %4838 = vmatprep.subr.bf16.mxu0 %v5137_v42  ;;  %v4270_v2 = vcombine.high %v2250_v40, %v2260_v35  ;;  %4958 = vmatprep.subr.bf16.mxu1 %v5139_v15  ;;  %v2802_v47 = vsel %vm5607_vm7, %v4319_v54, %v2801_v63  ;;  %v2810_v3 = vrot.slane %v2808_v50, 4  ;;  %v2811_v42 = vrot.slane %v5921_v13, 5  ;;  %v5150_v54 = vld [vmem:[%s7000_s4 + $0x1b0] sm:$0xff]  }
  0xa3   : > { %4839 = vmatpush3.bf16.msra.mxu0 %v5138_v33  ;;  %v2805_v39 = vsel %vm5607_vm7, %v2803_v37, %v2804_v9  ;;  %v4269_v33 = vcombine.low %v2250_v40, %v2260_v35  ;;  %v4321_v63 = vrot.slane %v5969_v12, 9  ;;  %v2817_v9 = vrot.slane %v2815_v36, 4 }
  0xa4   : > { %4840 = vmatprep.subr.bf16.mxu0 %v5143_v53  ;;  %v4328_v37 = vcombine.high %v2802_v47, %v2805_v39  ;;  %v2818_v53 = vrot.slane %v5980_v38, 5  ;;  %v2825_v40 = vrot.slane %v6029_v49, 5  ;;  %v3167_v12 = vshrl.u32 %v5980_v38, 16 }
  0xa5   : > { %2502 = vmatmul.mubr.bf16.gmra.mrb[56].mxu1 %v4267_v24  ;;  %v5149_v24 = vld [vmem:[%s7000_s4 + $0x1f0] sm:$0xff]   ;;  %vm3986_vm2 = vcmask 1047559  }
  0xa6   : > { %2509 = vmatprep.mubr.bf16.mxu1 %v4270_v2  ;;  %v4298_v2 = vcombine.high %v6115_v34, %v6120_v48 }
  0xa7   : > { %4841 = vmatpush3.bf16.msra.mxu0 %v5144_v21  ;;  %v4322_v21 = vrot.slane %v6021_v7, 9 }
  0xa8   : > { %2751 = vmatmul.mubr.bf16.gmra.mrb[60].mxu0 %v4293_v32  ;;  %v2822_v32 = vrot.slane %v6026_v52, 5  ;;  %4842 = vmatprep.subr.bf16.mxu0 %v5149_v24  ;;  %v6305_v24 = vsel %vm5607_vm7, %v4320_v59, %v2808_v50  ;;  %v3137_v50 = vshrl.u32 %v5874_v28, 16 }
  0xa9   : > { %2758 = vmatprep.mubr.bf16.mxu0 %v4296_v18  ;;  %v4295_v18 = vcombine.low %v6073_v22, %v6076_v6 }
  0xaa   : > { %v2824_v35 = vrot.slane %v2822_v32, 4  ;;  %v6341_v25 = vsel %vm5607_vm7, %v4322_v21, %v2822_v32  ;;  %v4299_v32 = vcombine.low %v6159_v1, %v6162_v5  ;;  %v4302_v21 = vcombine.high %v6203_v17, %v6208_v16 }
  0xab   : > { %4843 = vmatpush3.bf16.msra.mxu0 %v5150_v54  ;;  %v6309_v54 = vsel %vm5607_vm7, %v2810_v3, %v2811_v42 }
  0xac   : > { %4844 = vmatprep.subr.bf16.mxu0 %v5155_v14  ;;  %v4330_v59 = vcombine.high %v6305_v24, %v6309_v54  ;;  %v4329_v42 = vcombine.low %v6305_v24, %v6309_v54 }
  0xad   : > { %2510 = vmatmul.mubr.bf16.gmra.mrb[60].mxu1 %v4269_v33  ;;  %v3128_v33 = vrot.slane %v2070_v20, 5  ;;  %v4297_v20 = vcombine.low %v6115_v34, %v6120_v48 }
  0xae   : > { %3047 = vmatprep.mubr.bf16.mxu1 %v4328_v37  ;;  %v3133_v37 = vrot.slane %v2079_v43, 6  ;;  %v6337_v43 = vsel %vm5607_vm7, %v2817_v9, %v2818_v53  ;;  %v3140_v9 = vrot.slane %v2089_v26, 6  ;;  %v6377_v26 = vld [vmem:[%s7000_s4 + $0x250] sm:$0xff]  }
  0xaf   : > { %4845 = vmatpush3.bf16.msra.mxu0 %v5156_v44  ;;  %v4323_v44 = vrot.slane %v6073_v22, 9 }
  0xb0   : > { %2759 = vmatmul.mubr.bf16.gmra.mrb[64].mxu0 %v4295_v18  ;;  %v3129_v18 = vrot.slane %v2073_v0, 6  ;;  %v6328_v0 = vsel %vm5607_vm7, %v4321_v63, %v2815_v36  ;;  %4894 = vmatprep.subr.bf16.mxu0 %v5139_v15  ;;  %v6347_v15 = vld [vmem:[%s7000_s4 + $0x248] sm:$0xff]   ;;  %v6351_v36 = vsel %vm5607_vm7, %v2824_v35, %v2825_v40  ;;  %v3134_v3 = vor.u32 %v3133_v37, %v3132_v57 }
  0xb1   : > { %2766 = vmatprep.mubr.bf16.mxu0 %v4298_v2  ;;  %v4327_v2 = vcombine.low %v2802_v47, %v2805_v39  ;;  %v2831_v47 = vrot.slane %v2829_v23, 4  ;;  %v2832_v39 = vrot.slane %v6079_v11, 5  ;;  %v3139_v63 = vrot.slane %v3137_v50, 5  ;;  %v6370_v40 = vld [vmem:[%s7000_s4 + $0x208] sm:$0xff]  }
  0xb2   : > { %v3130_v14 = vor.u32 %v3129_v18, %v3128_v33  ;;  %v4332_v53 = vcombine.high %v6328_v0, %v6337_v43  ;;  %v4301_v57 = vcombine.low %v6203_v17, %v6208_v16  ;;  %v4331_v28 = vcombine.low %v6328_v0, %v6337_v43 }
  0xb3   : > { %v4334_v35 = vcombine.high %v6341_v25, %v6351_v36  ;;  %v6383_v24 = vsel %vm5607_vm7, %v4323_v44, %v2829_v23  ;;  %v3136_v33 = vrot.slane %v3134_v3, 4  ;;  %v3143_v18 = vrot.slane %v2094_v10, 5 }
  0xb4   : > { %v3131_v54 = vrot.slane %v3130_v14, 4  ;;  %v3144_v37 = vrot.slane %v2097_v62, 6  ;;  %v6394_v50 = vsel %vm5607_vm7, %v2831_v47, %v2832_v39  ;;  %v3141_v23 = vor.u32 %v3140_v9, %v3139_v63 }
  0xb5   : > { %3048 = vmatmul.mubr.bf16.vlgmr.msra.gmra.mrb[64].mxu1 %v4327_v2  ;;  %v3158_v2 = vrot.slane %v2118_v58, 5  ;;  %v3148_v10 = vrot.slane %v2103_v60, 6  ;;  %v3162_v62 = vrot.slane %v2131_v45, 5  ;;  %v7042_v58 = vshll.u32 %v5972_v4, 16  ;;  %v6417_v60 = vld [vmem:[%s7000_s4 + $0x210] sm:$0xff]  }
  0xb6   : > { %3055 = vmatprep.mubr.bf16.mxu1 %v4330_v59  ;;  %4966 = vmatpush3.bf16.msra.mxu1 %v6333_v19  ;;  %v3147_v59 = vrot.slane %v2107_v51, 5  ;;  %v4333_v44 = vcombine.low %v6341_v25, %v6351_v36  ;;  %v4336_v4 = vcombine.high %v6383_v24, %v6394_v50  ;;  %v6423_v45 = vsel %vm5617_vm8, %v3131_v54, %v3134_v3 }
  0xb7   : > { %4959 = vmatprep.subr.bf16.mxu1 %v6347_v15  ;;  %v4324_v14 = vrot.slane %v6115_v34, 9  ;;  %v6433_v39 = vsel %vm5617_vm8, %v3136_v33, %v3141_v23  ;;  %v3145_v63 = vor.u32 %v3144_v37, %v3143_v18  ;;  %v3154_v3 = vrot.slane %v3152_v29, 5 }
  0xb8   : > { %2767 = vmatmul.mubr.bf16.gmra.mrb[68].mxu0 %v4297_v20  ;;  %v3159_v20 = vrot.slane %v2121_v56, 6  ;;  %v7043_v56 = vshll.u32 %v5980_v38, 16  ;;  %v6429_v38 = vld [vmem:[%s7000_s4 + $0x258] sm:$0xff]   ;;  %v7044_v54 = vshll.u32 %v5921_v13, 16  ;;  %v7045_v33 = vshrl.u32 %v6021_v7, 16 }
  0xb9   : > { %2774 = vmatprep.mubr.bf16.mxu0 %v4300_v46  ;;  %v3163_v46 = vrot.slane %v7042_v58, 6  ;;  %v7046_v37 = vshll.u32 %v6021_v7, 16  ;;  %v4360_v13 = vcombine.high %v6423_v45, %v6433_v39  ;;  %v6462_v7 = vld [vmem:[%s7000_s4 + $0x260] sm:$0xff]   ;;  %v4359_v0 = vcombine.low %v6423_v45, %v6433_v39 }
  0xba   : > { %4967 = vmatpush3.bf16.msra.mxu1 %v6370_v40  ;;  %v3160_v51 = vor.u32 %v3159_v20, %v3158_v2  ;;  %v3170_v8 = vrot.slane %v7043_v56, 6  ;;  %v3169_v2 = vrot.slane %v3167_v12, 5  ;;  %v3149_v20 = vor.u32 %v3148_v10, %v3147_v59 }
  0xbb   : > { %4960 = vmatprep.subr.bf16.mxu1 %v6377_v26  ;;  %v3164_v47 = vor.u32 %v3163_v46, %v3162_v62  ;;  %v3155_v58 = vrot.slane %v7044_v54, 6  ;;  %v3173_v18 = vrot.slane %v7045_v33, 5  ;;  %v7048_v59 = vshll.u32 %v6026_v52, 16 }
  0xbc   : > { %v3161_v9 = vrot.slane %v3160_v51, 4  ;;  %v3171_v56 = vor.u32 %v3170_v8, %v3169_v2  ;;  %v3182_v12 = vshrl.u32 %v6029_v49, 16  ;;  %v7049_v8 = vshll.u32 %v6029_v49, 16 }
  0xbd   : > { %3056 = vmatmul.mubr.bf16.gmra.mrb[68].mxu1 %v4329_v42  ;;  %v3166_v62 = vrot.slane %v3164_v47, 4  ;;  %v3174_v42 = vrot.slane %v7046_v37, 6  ;;  %v3178_v10 = vrot.slane %v7048_v59, 6  ;;  %v3151_v33 = vrot.slane %v3149_v20, 4 }
  0xbe   : > { %3063 = vmatprep.mubr.bf16.mxu1 %v4332_v53  ;;  %v6439_v46 = vsel %vm5617_vm8, %v3161_v9, %v3164_v47  ;;  %4968 = vmatpush3.bf16.msra.mxu1 %v6417_v60  ;;  %v2836_v53 = vrot.slane %v6120_v48, 5  ;;  %v3185_v47 = vrot.slane %v7049_v8, 6  ;;  %v3146_v9 = vrot.slane %v3145_v63, 4 }
  0xbf   : > { %4961 = vmatprep.subr.bf16.mxu1 %v6429_v38  ;;  %v6466_v29 = vsel %vm5617_vm8, %v3166_v62, %v3171_v56  ;;  %v3175_v51 = vor.u32 %v3174_v42, %v3173_v18  ;;  %v3156_v37 = vor.u32 %v3155_v58, %v3154_v3  ;;  %v3184_v59 = vrot.slane %v3182_v12, 5  ;;  %v6479_v62 = vld [vmem:[%s7000_s4 + $0x220] sm:$0xff]   ;;  %v6491_v3 = vld [vmem:[%s7000_s4 + $0x268] sm:$0xff]  }
  0xc0   : > { %2775 = vmatmul.mubr.bf16.gmra.mrb[72].mxu0 %v4299_v32  ;;  %v6451_v32 = vld [vmem:[%s7000_s4 + $0x218] sm:$0xff]   ;;  %v4363_v2 = vcombine.low %v6439_v46, %v6466_v29  ;;  %v7050_v63 = vshrl.u32 %v6073_v22, 16  ;;  %v7051_v18 = vshll.u32 %v6073_v22, 16  ;;  %v7053_v12 = vshll.u32 %v6076_v6, 16 }
  0xc1   : > { %2782 = vmatprep.mubr.bf16.mxu0 %v4302_v21  ;;  %v7047_v21 = vshrl.u32 %v6026_v52, 16  ;;  %v4364_v52 = vcombine.high %v6439_v46, %v6466_v29  ;;  %v3197_v22 = vshrl.u32 %v6079_v11, 16  ;;  %v5168_v46 = vld [vmem:[%s5843_s21 + $0x38] sm:$0xff] }
  0xc2   : > { %4969 = vmatpush3.bf16.msra.mxu1 %v6451_v32  ;;  %v3188_v56 = vrot.slane %v7050_v63, 5  ;;  %v3189_v42 = vrot.slane %v7051_v18, 6  ;;  %v3193_v8 = vrot.slane %v7053_v12, 6  ;;  %v2838_v63 = vrot.slane %v2836_v53, 4 }
  0xc3   : > { %v3177_v23 = vrot.slane %v7047_v21, 5  ;;  %v3176_v21 = vrot.slane %v3175_v51, 4  ;;  %4962 = vmatprep.subr.bf16.mxu1 %v6462_v7  ;;  %v3186_v51 = vor.u32 %v3185_v47, %v3184_v59  ;;  %v7054_v47 = vshll.u32 %v6079_v11, 16  ;;  %v6528_v11 = vld [vmem:[%s7000_s4 + $0x228] sm:$0xff]  }
  0xc4   : > { %v6522_v59 = vsel %vm5617_vm8, %v3146_v9, %v3149_v20  ;;  %v6542_v20 = vld [vmem:[%s7000_s4 + $0x270] sm:$0xff]  }
  0xc5   : > { %v3179_v54 = vor.u32 %v3178_v10, %v3177_v23  ;;  %v7052_v23 = vshrl.u32 %v6076_v6, 16  ;;  %3064 = vmatmul.mubr.bf16.gmra.mrb[72].mxu1 %v4331_v28  ;;  %v3200_v6 = vrot.slane %v7054_v47, 6  ;;  %v3199_v28 = vrot.slane %v3197_v22, 5 }
  0xc6   : > { %3071 = vmatprep.mubr.bf16.mxu1 %v4334_v35  ;;  %4970 = vmatpush3.bf16.msra.mxu1 %v6479_v62  ;;  %v7059_v47 = vshll.u32 %v6123_v61, 16 }
  0xc7   : > { %v3181_v49 = vrot.slane %v3179_v54, 4  ;;  %v3192_v10 = vrot.slane %v7052_v23, 5  ;;  %v6495_v58 = vsel %vm5617_vm8, %v3176_v21, %v3179_v54  ;;  %v2839_v54 = vrot.slane %v6123_v61, 5  ;;  %4963 = vmatprep.subr.bf16.mxu1 %v6491_v3 }
  0xc8   : > { %2783 = vmatmul.mubr.bf16.gmra.mrb[76].mxu0 %v4301_v57  ;;  %v3190_v21 = vor.u32 %v3189_v42, %v3188_v56  ;;  %v7055_v56 = vshrl.u32 %v6115_v34, 16  ;;  %v7056_v23 = vshll.u32 %v6115_v34, 16  ;;  %v4325_v34 = vrot.slane %v6159_v1, 9 }
  0xc9   : > { %3440 = vmatprep.mubr.bf16.mxu0 %v4360_v13  ;;  %v6518_v43 = vsel %vm5617_vm8, %v3181_v49, %v3186_v51  ;;  %v3194_v57 = vor.u32 %v3193_v8, %v3192_v10  ;;  %v6536_v13 = vsel %vm5617_vm8, %v3151_v33, %v3156_v37  ;;  %v3201_v49 = vor.u32 %v3200_v6, %v3199_v28 }
  0xca   : > { %v4366_v35 = vcombine.high %v6495_v58, %v6518_v43  ;;  %v4365_v45 = vcombine.low %v6495_v58, %v6518_v43  ;;  %v3191_v39 = vrot.slane %v3190_v21, 4  ;;  %v3203_v18 = vrot.slane %v7055_v56, 5  ;;  %4971 = vmatpush3.bf16.msra.mxu1 %v6528_v11 }
  0xcb   : > { %v3196_v9 = vrot.slane %v3194_v57, 4  ;;  %v3204_v33 = vrot.slane %v7056_v23, 6  ;;  %v7057_v37 = vshrl.u32 %v6120_v48, 16  ;;  %v7058_v51 = vshll.u32 %v6120_v48, 16  ;;  %4964 = vmatprep.subr.bf16.mxu1 %v6542_v20 }
  0xcc   : > { %v6548_v42 = vsel %vm5617_vm8, %v3191_v39, %v3194_v57  ;;  %v4335_v8 = vcombine.low %v6383_v24, %v6394_v50  ;;  %v3212_v21 = vshrl.u32 %v6123_v61, 16  ;;  %v3215_v6 = vrot.slane %v7059_v47, 6 }
  0xcd   : > { %v3207_v10 = vrot.slane %v7057_v37, 5  ;;  %v3208_v12 = vrot.slane %v7058_v51, 6  ;;  %v6560_v22 = vsel %vm5617_vm8, %v3196_v9, %v3201_v49  ;;  %v4362_v57 = vcombine.high %v6522_v59, %v6536_v13  ;;  %v6585_v9 = vld [vmem:[%s7000_s4 + $0x230] sm:$0xff]   ;;  %3072 = vmatmul.mubr.bf16.gmra.mrb[76].mxu1 %v4333_v44 }
  0xce   : > { %v2843_v28 = vrot.slane %v6162_v5, 5  ;;  %v4368_v39 = vcombine.high %v6548_v42, %v6560_v22  ;;  %v4367_v56 = vcombine.low %v6548_v42, %v6560_v22  ;;  %v6579_v61 = vsel %vm5607_vm7, %v4324_v14, %v2836_v53  ;;  %v6598_v14 = vld [vmem:[%s7000_s4 + $0x278] sm:$0xff]   ;;  %3079 = vmatprep.mubr.bf16.mxu1 %v4336_v4  ;;  %4972 = vmatpush3.bf16.msra.mxu1 %v6585_v9 }
  0xcf   : > { %v3205_v49 = vor.u32 %v3204_v33, %v3203_v18  ;;  %v3209_v23 = vor.u32 %v3208_v12, %v3207_v10  ;;  %v3214_v37 = vrot.slane %v3212_v21, 5  ;;  %v6592_v48 = vsel %vm5607_vm7, %v2838_v63, %v2839_v54  ;;  %4965 = vmatprep.subr.bf16.mxu1 %v6598_v14 }
  0xd0   : > { %3441 = vmatmul.mubr.bf16.vlgmr.msra.gmra.mrb[80].mxu0 %v4359_v0  ;;  %v7060_v53 = vshrl.u32 %v6159_v1, 16  ;;  %v7061_v33 = vshll.u32 %v6159_v1, 16  ;;  %v7062_v63 = vshrl.u32 %v6162_v5, 16  ;;  %v2845_v0 = vrot.slane %v2843_v28, 4 }
  0xd1   : > { %4895 = vmatpush3.bf16.msra.mxu0 %v6333_v19  ;;  %v3206_v25 = vrot.slane %v3205_v49, 4  ;;  %v3211_v36 = vrot.slane %v3209_v23, 4  ;;  %v3216_v44 = vor.u32 %v3215_v6, %v3214_v37  ;;  %3448 = vmatprep.mubr.bf16.mxu0 %v4362_v57  ;;  %v2846_v51 = vrot.slane %v6165_v30, 5  ;;  %v6618_v19 = vld [vmem:[%s7000_s4 + $0x238] sm:$0xff]  }
  0xd2   : > { %v3218_v18 = vrot.slane %v7060_v53, 5  ;;  %v3219_v10 = vrot.slane %v7061_v33, 6  ;;  %v3222_v54 = vrot.slane %v7062_v63, 5  ;;  %4896 = vmatprep.subr.bf16.mxu0 %v6347_v15  ;;  %v7063_v12 = vshll.u32 %v6162_v5, 16  ;;  %4973 = vmatpush3.bf16.msra.mxu1 %v6618_v19 }
  0xd3   : > { %v6622_v24 = vsel %vm5617_vm8, %v3206_v25, %v3209_v23  ;;  %v6626_v15 = vsel %vm5617_vm8, %v3211_v36, %v3216_v44  ;;  %v3227_v50 = vshrl.u32 %v6165_v30, 16  ;;  %v7064_v4 = vshll.u32 %v6165_v30, 16 }
  0xd4   : > { %v3220_v1 = vor.u32 %v3219_v10, %v3218_v18  ;;  %v3223_v21 = vrot.slane %v7063_v12, 6  ;;  %v4361_v6 = vcombine.low %v6522_v59, %v6536_v13  ;;  %v4370_v57 = vcombine.high %v6622_v24, %v6626_v15 }
  0xd5   : > { %v3230_v47 = vrot.slane %v7064_v4, 6  ;;  %v4369_v49 = vcombine.low %v6622_v24, %v6626_v15  ;;  %v4338_v37 = vcombine.high %v6579_v61, %v6592_v48  ;;  %4897 = vmatpush3.bf16.msra.mxu0 %v6370_v40  ;;  %v3229_v30 = vrot.slane %v3227_v50, 5  ;;  %3080 = vmatmul.mubr.bf16.gmra.mrb[80].mxu1 %v4335_v8 }
  0xd6   : > { %v3221_v23 = vrot.slane %v3220_v1, 4  ;;  %v3224_v53 = vor.u32 %v3223_v21, %v3222_v54  ;;  %4898 = vmatprep.subr.bf16.mxu0 %v6377_v26  ;;  %v7065_v59 = vshrl.u32 %v6203_v17, 16  ;;  %v7066_v25 = vshll.u32 %v6203_v17, 16 }
  0xd7   : > { %v3231_v10 = vor.u32 %v3230_v47, %v3229_v30  ;;  %v2844_v40 = vsel %vm5607_vm7, %v4325_v34, %v2843_v28  ;;  %v2847_v26 = vsel %vm5607_vm7, %v2845_v0, %v2846_v51  ;;  %v7067_v44 = vshrl.u32 %v6208_v16, 16  ;;  %3087 = vmatprep.mubr.bf16.mxu1 %v4338_v37 }
  0xd8   : > { %v3233_v13 = vrot.slane %v7065_v59, 5  ;;  %v6647_v18 = vsel %vm5617_vm8, %v3221_v23, %v3224_v53  ;;  %v3226_v33 = vrot.slane %v3224_v53, 4  ;;  %v3234_v36 = vrot.slane %v7066_v25, 6  ;;  %3449 = vmatmul.mubr.bf16.gmra.mrb[84].mxu0 %v4361_v6 }
  0xd9   : > { %v3237_v63 = vrot.slane %v7067_v44, 5  ;;  %v7068_v54 = vshll.u32 %v6208_v16, 16  ;;  %3456 = vmatprep.mubr.bf16.mxu0 %v4364_v52  ;;  %v3242_v28 = vshrl.u32 %v6211_v55, 16  ;;  %v7069_v34 = vshll.u32 %v6211_v55, 16  ;;  %4899 = vmatpush3.bf16.msra.mxu0 %v6417_v60  ;;  %v5174_v44 = vld [vmem:[%s5843_s21 + $0x68] sm:$0xff] }
  0xda   : > { %v6664_v8 = vsel %vm5617_vm8, %v3226_v33, %v3231_v10  ;;  %v3235_v12 = vor.u32 %v3234_v36, %v3233_v13  ;;  %v2850_v51 = vrot.slane %v6208_v16, 5  ;;  %4900 = vmatprep.subr.bf16.mxu0 %v6429_v38  ;;  %v4337_v6 = vcombine.low %v6579_v61, %v6592_v48  ;;  %v5169_v33 = vld [vmem:[%s5843_s21 + $0x30] sm:$0xff]  ;;  %v5170_v36 = vld [vmem:[%s5843_s21 + $0x40] sm:$0x33] }
  0xdb   : > { %v3238_v1 = vrot.slane %v7068_v54, 6  ;;  %v3245_v0 = vrot.slane %v7069_v34, 6  ;;  %v4372_v21 = vcombine.high %v6647_v18, %v6664_v8  ;;  %v4371_v52 = vcombine.low %v6647_v18, %v6664_v8 }
  0xdc   : > { %v3236_v4 = vrot.slane %v3235_v12, 4  ;;  %v3244_v47 = vrot.slane %v3242_v28, 5  ;;  %v4340_v37 = vcombine.high %v2844_v40, %v2847_v26  ;;  %v4326_v30 = vrot.slane %v6203_v17, 9  ;;  %v5175_v28 = vld [vmem:[%s5843_s21 + $0x60] sm:$0xff] }
  0xdd   : > { %v3239_v50 = vor.u32 %v3238_v1, %v3237_v63  ;;  %v2852_v59 = vrot.slane %v2850_v51, 4  ;;  %v2853_v13 = vrot.slane %v6211_v55, 5  ;;  %4901 = vmatpush3.bf16.msra.mxu0 %v6451_v32  ;;  %3088 = vmatmul.mubr.bf16.gmra.mrb[84].mxu1 %v4337_v6  ;;  %v4339_v29 = vcombine.low %v2844_v40, %v2847_v26  ;;  %v5173_v26 = vld [vmem:[%s5843_s21 + $0x58] sm:$0x33]  ;;  %v5177_v6 = vld [vmem:[%s5843_s21 + $0x80] sm:$0xff] }
  0xde   : > { %v3246_v53 = vor.u32 %v3245_v0, %v3244_v47  ;;  %4902 = vmatprep.subr.bf16.mxu0 %v6462_v7  ;;  %3095 = vmatprep.mubr.bf16.mxu1 %v4340_v37  ;;  %v2851_v31 = vsel %vm5607_vm7, %v4326_v30, %v2850_v51  ;;  %v3537_v7 = vrot.slane %v5168_v46, 6  ;;  %v4393_v10 = vrot.slane %v5169_v33, 10  ;;  %v5176_v0 = vld [vmem:[%s5843_s21 + $0x70] sm:$0x33]  ;;  %v5181_v33 = vld [vmem:[%s5843_s21] sm:$0xff] }
  0xdf   : > { %v3241_v23 = vrot.slane %v3239_v50, 4  ;;  %v6680_v60 = vsel %vm5617_vm8, %v3236_v4, %v3239_v50  ;;  %v2854_v32 = vsel %vm5607_vm7, %v2852_v59, %v2853_v13  ;;  %v4395_v34 = vrot.slane %v5175_v28, 10 }
  0xe0   : > { %3457 = vmatmul.mubr.bf16.gmra.mrb[88].mxu0 %v4363_v2  ;;  %v4342_v2 = vcombine.high %v2851_v31, %v2854_v32  ;;  %v3539_v25 = vrot.slane %v3537_v7, 4  ;;  %v4341_v58 = vcombine.low %v2851_v31, %v2854_v32  ;;  %v3554_v51 = vrot.slane %v5176_v0, 6  ;;  %v5179_v31 = vld [vmem:[%s5843_s21 + $0x78] sm:$0xff] }
  0xe1   : > { %v6688_v38 = vsel %vm5617_vm8, %v3241_v23, %v3246_v53  ;;  %3464 = vmatprep.mubr.bf16.mxu0 %v4366_v35  ;;  %4903 = vmatpush3.bf16.msra.mxu0 %v6479_v62  ;;  %v3540_v35 = vrot.slane %v5170_v36, 6  ;;  %v3544_v62 = vrot.slane %v5171_v27, 6  ;;  %v3558_v23 = vrot.slane %v5177_v6, 6  ;;  %v5178_v53 = vld [vmem:[%s5843_s21 + $0x8] sm:$0xff] }
  0xe2   : > { %v4374_v61 = vcombine.high %v6680_v60, %v6688_v38  ;;  %v4373_v48 = vcombine.low %v6680_v60, %v6688_v38  ;;  %4904 = vmatprep.subr.bf16.mxu0 %v6491_v3  ;;  %v3538_v3 = vsel %vm5828_vm11, %v4393_v10, %v3537_v7  ;;  %v3523_v24 = vrot.slane %v5178_v53, 6  ;;  %v5180_v7 = vld [vmem:[%s5843_s21 + $0x88] sm:$0x33] }
  0xe3   : > { %v3546_v40 = vrot.slane %v3544_v62, 4  ;;  %v4396_v32 = vrot.slane %v5179_v31, 10  ;;  %v3560_v46 = vrot.slane %v3558_v23, 4  ;;  %v4391_v10 = vrot.slane %v5181_v33, 10 }
  0xe4   : > { %v3525_v27 = vrot.slane %v3523_v24, 4 }
  0xe5   : > { %4905 = vmatpush3.bf16.msra.mxu0 %v6528_v11  ;;  %3096 = vmatmul.mubr.bf16.gmra.mrb[88].mxu1 %v4339_v29  ;;  %v3541_v11 = vsel %vm5828_vm11, %v3539_v25, %v3540_v35  ;;  %v3561_v29 = vrot.slane %v5180_v7, 6 }
  0xe6   : > { %4906 = vmatprep.subr.bf16.mxu0 %v6542_v20  ;;  %3103 = vmatprep.mubr.bf16.mxu1 %v4342_v2  ;;  %v4404_v43 = vcombine.high %v3538_v3, %v3541_v11  ;;  %v4403_v42 = vcombine.low %v3538_v3, %v3541_v11 }
  0xe7   : > { %v3562_v18 = vsel %vm5828_vm11, %v3560_v46, %v3561_v29  ;;  %v4398_v46 = vrot.slane %v6203_v17, 10  ;;  %v3575_v29 = vrot.slane %v6211_v55, 6 }
  0xe8   : > { %3465 = vmatmul.mubr.bf16.gmra.mrb[92].mxu0 %v4365_v45  ;;  %v5172_v45 = vld [vmem:[%s5843_s21 + $0x48] sm:$0xff] }
  0xe9   : > { %3472 = vmatprep.mubr.bf16.mxu0 %v4368_v39  ;;  %4907 = vmatpush3.bf16.msra.mxu0 %v6585_v9  ;;  %v4394_v20 = vrot.slane %v5172_v45, 10  ;;  %v3547_v39 = vrot.slane %v5173_v26, 6  ;;  %v3524_v26 = vsel %vm5828_vm11, %v4391_v10, %v3523_v24 }
  0xea   : > { %4908 = vmatprep.subr.bf16.mxu0 %v6598_v14 }
  0xeb   : > { %v3545_v9 = vsel %vm5828_vm11, %v4394_v20, %v3544_v62  ;;  %v3548_v14 = vsel %vm5828_vm11, %v3546_v40, %v3547_v39  ;;  %v5182_v62 = vld [vmem:[%s5843_s21 + $0x10] sm:$0x33]  ;;  %v3559_v20 = vsel %vm5828_vm11, %v4396_v32, %v3558_v23  ;;  %v5183_v39 = vld [vmem:[%s5843_s21 + $0x20] sm:$0xff] }
  0xec   : > { %v4406_v22 = vcombine.high %v3545_v9, %v3548_v14  ;;  %v3526_v3 = vrot.slane %v5182_v62, 6 }
  0xed   : > { %4909 = vmatpush3.bf16.msra.mxu0 %v6618_v19  ;;  %3104 = vmatmul.mubr.bf16.gmra.mrb[92].mxu1 %v4341_v58  ;;  %v3551_v19 = vrot.slane %v5174_v44, 6 }
  0xee   : > { %3785 = vmatprep.mubr.bf16.mxu1 %v4404_v43  ;;  %v3527_v8 = vsel %vm5828_vm11, %v3525_v27, %v3526_v3 }
  0xef   : > { %v3552_v4 = vsel %vm5828_vm11, %v4395_v34, %v3551_v19 }
  0xf0   : > { %3473 = vmatmul.mubr.bf16.gmra.mrb[96].mxu0 %v4367_v56 }
  0xf1   : > { %3480 = vmatprep.mubr.bf16.mxu0 %v4370_v57  ;;  %v3553_v57 = vrot.slane %v3551_v19, 4  ;;  %v4410_v19 = vcombine.high %v3559_v20, %v3562_v18 }
  0xf3   : > { %v3555_v47 = vsel %vm5828_vm11, %v3553_v57, %v3554_v51  ;;  %v5187_v57 = vld [vmem:[%s5843_s21 + $0x28] sm:$0x33] }
  0xf4   : > { %v4408_v30 = vcombine.high %v3552_v4, %v3555_v47  ;;  %v3533_v0 = vrot.slane %v5187_v57, 6 }
  0xf5   : > { %3786 = vmatmul.mubr.bf16.vlgmr.msra.gmra.mrb[96].mxu1 %v4403_v42 }
  0xf6   : > { %3793 = vmatprep.mubr.bf16.mxu1 %v4406_v22 }
  0xf8   : > { %3481 = vmatmul.mubr.bf16.gmra.mrb[100].mxu0 %v4369_v49  ;;  %v4405_v49 = vcombine.low %v3545_v9, %v3548_v14  ;;  %v3530_v9 = vrot.slane %v5183_v39, 6  ;;  %v5184_v14 = vld [vmem:[%s5843_s21 + $0x90] sm:$0xff] }
  0xf9   : > { %3488 = vmatprep.mubr.bf16.mxu0 %v4372_v21  ;;  %v4397_v44 = vrot.slane %v5184_v14, 10 }
  0xfa   : > { %v3532_v34 = vrot.slane %v3530_v9, 4 }
  0xfc   : > { %v4454_v37 = vpop.f32.mrb[0].mxu0  ;;  %v3534_v38 = vsel %vm5828_vm11, %v3532_v34, %v3533_v0 }
  0xfd   : > { %v4494_v63 = vpop.f32.mrb[0].mxu1  ;;  %v4455_v15 = vpop.f32.mrb[1].mxu0  ;;  %3794 = vmatmul.mubr.bf16.gmra.mrb[100].mxu1 %v4405_v49 }
  0xfe   : > { %v4495_v54 = vpop.f32.mrb[1].mxu1  ;;  %v4456_v59 = vadd.f32 %v4455_v15, %v4454_v37  ;;  %v4457_v13 = vpop.f32.mrb[2].mxu0  ;;  %3801 = vmatprep.mubr.bf16.mxu1 %v4408_v30 }
  0xff   : > { %v4496_v1 = vadd.f32 %v4495_v54, %v4494_v63  ;;  %v4497_v12 = vpop.f32.mrb[2].mxu1  ;;  %v4458_v21 = vpop.f32.mrb[3].mxu0  ;;  %v4400_v54 = vcombine.high %v3524_v26, %v3527_v8 }
 0x100   : > { %v4498_v56 = vpop.f32.mrb[3].mxu1  ;;  %v4459_v36 = vadd.f32 %v4458_v21, %v4457_v13  ;;  %3489 = vmatmul.mubr.bf16.gmra.mrb[104].mxu0 %v4371_v52  ;;  %v3565_v52 = vrot.slane %v6162_v5, 6  ;;  %v4409_v13 = vcombine.low %v3559_v20, %v3562_v18  ;;  %v4399_v21 = vcombine.low %v3524_v26, %v3527_v8 }
 0x101   : > { %v4499_v50 = vadd.f32 %v4498_v56, %v4497_v12  ;;  %v6755_v25 = vadd.f32 %v4496_v1, %v4456_v59  ;;  %3496 = vmatprep.mubr.bf16.mxu0 %v4374_v61  ;;  %v4407_v61 = vcombine.low %v3552_v4, %v3555_v47  ;;  %v5185_v1 = vld [vmem:[%s5843_s21 + $0xa0] sm:$0x33]  ;;  %v5186_v56 = vld [vmem:[%s5843_s21 + $0x18] sm:$0xff] }
 0x102   : > { %v3568_v12 = vrot.slane %v5185_v1, 6  ;;  %v3567_v22 = vrot.slane %v3565_v52, 4  ;;  %v4392_v28 = vrot.slane %v5186_v56, 10  ;;  %v3566_v47 = vsel %vm5828_vm11, %v4397_v44, %v3565_v52 }
 0x103   : > { %v6761_v43 = vadd.f32 %v4499_v50, %v4459_v36 }
 0x104   : > { %v4460_v63 = vpop.f32.mrb[4].mxu0  ;;  %v3569_v15 = vsel %vm5828_vm11, %v3567_v22, %v3568_v12  ;;  %v3531_v60 = vsel %vm5828_vm11, %v4392_v28, %v3530_v9 }
 0x105   : > { %v4500_v2 = vpop.f32.mrb[4].mxu1  ;;  %v4461_v42 = vpop.f32.mrb[5].mxu0  ;;  %3802 = vmatmul.mubr.bf16.gmra.mrb[104].mxu1 %v4407_v61  ;;  %v4412_v31 = vcombine.high %v3566_v47, %v3569_v15  ;;  %v4402_v32 = vcombine.high %v3531_v60, %v3534_v38  ;;  %v4411_v62 = vcombine.low %v3566_v47, %v3569_v15 }
 0x106   : > { %v4501_v35 = vpop.f32.mrb[5].mxu1  ;;  %v4462_v51 = vadd.f32 %v4461_v42, %v4460_v63  ;;  %v4463_v5 = vpop.f32.mrb[6].mxu0  ;;  %3809 = vmatprep.mubr.bf16.mxu1 %v4410_v19 }
 0x107   : > { %v4502_v11 = vadd.f32 %v4501_v35, %v4500_v2  ;;  %v4503_v58 = vpop.f32.mrb[6].mxu1  ;;  %v4464_v4 = vpop.f32.mrb[7].mxu0 }
 0x108   : > { %v4504_v45 = vpop.f32.mrb[7].mxu1  ;;  %3497 = vmatmul.mubr.bf16.gmra.mrb[108].mxu0 %v4373_v48  ;;  %v4465_v37 = vadd.f32 %v4464_v4, %v4463_v5  ;;  %v3572_v48 = vrot.slane %v6208_v16, 6 }
 0x109   : > { %v4505_v40 = vadd.f32 %v4504_v45, %v4503_v58  ;;  %v6785_v23 = vadd.f32 %v4502_v11, %v4462_v51  ;;  %3769 = vmatprep.mubr.bf16.mxu0 %v4400_v54  ;;  %v4401_v58 = vcombine.low %v3531_v60, %v3534_v38 }
 0x10a   : > { %v3574_v7 = vrot.slane %v3572_v48, 4  ;;  %v3573_v36 = vsel %vm5828_vm11, %v4398_v46, %v3572_v48 }
 0x10b   : > { %v6794_v30 = vadd.f32 %v4505_v40, %v4465_v37 }
 0x10c   : > { %v3576_v35 = vsel %vm5828_vm11, %v3574_v7, %v3575_v29 }
 0x10d   : > { %v4506_v50 = vpop.f32.mrb[8].mxu1  ;;  %3810 = vmatmul.mubr.bf16.gmra.mrb[108].mxu1 %v4409_v13  ;;  %v4414_v40 = vcombine.high %v3573_v36, %v3576_v35  ;;  %v4413_v39 = vcombine.low %v3573_v36, %v3576_v35 }
 0x10e   : > { %v4507_v6 = vpop.f32.mrb[9].mxu1  ;;  %3817 = vmatprep.mubr.bf16.mxu1 %v4412_v31 }
 0x10f   : > { %v4508_v53 = vadd.f32 %v4507_v6, %v4506_v50  ;;  %v4509_v24 = vpop.f32.mrb[10].mxu1  ;;  %v4466_v2 = vpop.f32.mrb[8].mxu0 }
 0x110   : > { %v4510_v49 = vpop.f32.mrb[11].mxu1  ;;  %3770 = vmatmul.mubr.bf16.vlgmr.msra.gmra.mrb[112].mxu0 %v4399_v21  ;;  %v4467_v33 = vpop.f32.mrb[9].mxu0 }
 0x111   : > { %v4511_v59 = vadd.f32 %v4510_v49, %v4509_v24  ;;  %3777 = vmatprep.mubr.bf16.mxu0 %v4402_v32  ;;  %v4468_v10 = vadd.f32 %v4467_v33, %v4466_v2  ;;  %v4469_v16 = vpop.f32.mrb[10].mxu0 }
 0x112   : > { %v4470_v17 = vpop.f32.mrb[11].mxu0 }
 0x113   : > { %v1036_v11 = vadd.f32 %v4508_v53, %v4468_v10  ;;  %v4471_v55 = vadd.f32 %v4470_v17, %v4469_v16 }
 0x115   : > { %v4512_v27 = vpop.f32.mrb[12].mxu1  ;;  %v1039_v18 = vadd.f32 %v4511_v59, %v4471_v55  ;;  %3818 = vmatmul.mubr.bf16.gmra.mrb[112].mxu1 %v4411_v62 }
 0x116   : > { %v4513_v3 = vpop.f32.mrb[13].mxu1  ;;  %3825 = vmatprep.mubr.bf16.mxu1 %v4414_v40 }
 0x117   : > { %v4514_v45 = vadd.f32 %v4513_v3, %v4512_v27  ;;  %v4515_v20 = vpop.f32.mrb[14].mxu1 }
 0x118   : > { %v4516_v26 = vpop.f32.mrb[15].mxu1  ;;  %3778 = vmatmul.mubr.bf16.gmra.mrb[116].mxu0 %v4401_v58 }
 0x119   : > { %v4517_v8 = vadd.f32 %v4516_v26, %v4515_v20 }
 0x11b   : > { %v4472_v52 = vpop.f32.mrb[12].mxu0 }
 0x11c   : > { %v4473_v41 = vpop.f32.mrb[13].mxu0 }
 0x11d   : > { %v4474_v9 = vadd.f32 %v4473_v41, %v4472_v52  ;;  %v4475_v61 = vpop.f32.mrb[14].mxu0  ;;  %3826 = vmatmul.mubr.bf16.gmra.mrb[116].mxu1 %v4413_v39  ;;  %v4574_v63 = vpop.f32.mrb[16].mxu1 }
 0x11e   : > { %v4476_v14 = vpop.f32.mrb[15].mxu0  ;;  %v4575_v1 = vpop.f32.mrb[17].mxu1 }
 0x11f   : > { %v1044_v44 = vadd.f32 %v4514_v45, %v4474_v9  ;;  %v4477_v19 = vadd.f32 %v4476_v14, %v4475_v61  ;;  %v4576_v12 = vadd.f32 %v4575_v1, %v4574_v63  ;;  %v4577_v42 = vpop.f32.mrb[18].mxu1 }
 0x120   : > { %v4578_v56 = vpop.f32.mrb[19].mxu1 }
 0x121   : > { %v1047_v54 = vadd.f32 %v4517_v8, %v4477_v19  ;;  %v4579_v34 = vadd.f32 %v4578_v56, %v4577_v42 }
 0x123   : > { %v4534_v22 = vpop.f32.mrb[16].mxu0 }
 0x124   : > { %v4535_v28 = vpop.f32.mrb[17].mxu0 }
 0x125   : > { %v4536_v57 = vadd.f32 %v4535_v28, %v4534_v22  ;;  %v4537_v0 = vpop.f32.mrb[18].mxu0  ;;  %v6819_v28 = vld [vmem:[%s6999_s3] ss:$0 sm:$0xff] }
 0x126   : > { %v4538_v51 = vpop.f32.mrb[19].mxu0 }
 0x127   : > { %v1286_v5 = vadd.f32 %v4536_v57, %v6755_v25  ;;  %v4539_v50 = vadd.f32 %v4538_v51, %v4537_v0  ;;  %v4580_v53 = vpop.f32.mrb[20].mxu1 }
 0x128   : > { %v4581_v15 = vpop.f32.mrb[21].mxu1 }
 0x129   : > { %v1287_v4 = vadd.f32 %v4539_v50, %v6761_v43  ;;  %v1570_v47 = vadd.f32 %v4576_v12, %v1286_v5  ;;  %v4582_v38 = vadd.f32 %v4581_v15, %v4580_v53  ;;  %v4583_v48 = vpop.f32.mrb[22].mxu1 }
 0x12a   : > { %v4584_v13 = vpop.f32.mrb[23].mxu1 }
 0x12b   : > { %v1571_v6 = vadd.f32 %v4579_v34, %v1287_v4  ;;  %v4540_v37 = vpop.f32.mrb[20].mxu0  ;;  %v4585_v32 = vadd.f32 %v4584_v13, %v4583_v48 }
 0x12c   : > { %v4541_v24 = vpop.f32.mrb[21].mxu0 }
 0x12d   : > { %v4542_v49 = vadd.f32 %v4541_v24, %v4540_v37  ;;  %v4543_v60 = vpop.f32.mrb[22].mxu0 }
 0x12e   : > { %v4544_v59 = vpop.f32.mrb[23].mxu0 }
 0x12f   : > { %v1288_v21 = vadd.f32 %v4542_v49, %v6785_v23  ;;  %v4545_v31 = vadd.f32 %v4544_v59, %v4543_v60 }
 0x131   : > { %v1289_v25 = vadd.f32 %v4545_v31, %v6794_v30  ;;  %v1572_v46 = vadd.f32 %v4582_v38, %v1288_v21 }
 0x132   : > { %v4586_v10 = vpop.f32.mrb[24].mxu1 }
 0x133   : > { %v6806_v43 = vadd.f32 %v4585_v32, %v1289_v25  ;;  %v4546_v7 = vpop.f32.mrb[24].mxu0  ;;  %v4587_v36 = vpop.f32.mrb[25].mxu1 }
 0x134   : > { %v4547_v29 = vpop.f32.mrb[25].mxu0  ;;  %v4588_v62 = vadd.f32 %v4587_v36, %v4586_v10  ;;  %v4589_v17 = vpop.f32.mrb[26].mxu1 }
 0x135   : > { %v4548_v2 = vadd.f32 %v4547_v29, %v4546_v7  ;;  %v4549_v33 = vpop.f32.mrb[26].mxu0  ;;  %v4590_v3 = vpop.f32.mrb[27].mxu1 }
 0x136   : > { %v4550_v16 = vpop.f32.mrb[27].mxu0  ;;  %v4591_v58 = vadd.f32 %v4590_v3, %v4589_v17 }
 0x137   : > { %v1290_v35 = vadd.f32 %v4548_v2, %v1036_v11  ;;  %v4551_v27 = vadd.f32 %v4550_v16, %v4549_v33 }
 0x139   : > { %v1291_v23 = vadd.f32 %v4551_v27, %v1039_v18  ;;  %v6808_v55 = vadd.f32 %v4588_v62, %v1290_v35 }
 0x13a   : > { %v4592_v8 = vpop.f32.mrb[28].mxu1 }
 0x13b   : > { %v6810_v30 = vadd.f32 %v4591_v58, %v1291_v23  ;;  %v4552_v45 = vpop.f32.mrb[28].mxu0  ;;  %v4593_v9 = vpop.f32.mrb[29].mxu1 }
 0x13c   : > { %v4553_v20 = vpop.f32.mrb[29].mxu0  ;;  %v4594_v11 = vadd.f32 %v4593_v9, %v4592_v8  ;;  %v4595_v61 = vpop.f32.mrb[30].mxu1 }
 0x13d   : > { %v4554_v40 = vadd.f32 %v4553_v20, %v4552_v45  ;;  %v4555_v26 = vpop.f32.mrb[30].mxu0  ;;  %v4596_v19 = vpop.f32.mrb[31].mxu1 }
 0x13e   : > { %v4556_v52 = vpop.f32.mrb[31].mxu0  ;;  %v4597_v18 = vadd.f32 %v4596_v19, %v4595_v61  ;;  %v6838_v19 = vld [vmem:[%s7002_s6] ss:$0 sm:$0xff] }
 0x13f   : > { %v1292_v39 = vadd.f32 %v4554_v40, %v1044_v44  ;;  %v4557_v41 = vadd.f32 %v4556_v52, %v4555_v26 }
 0x141   : > { %v1293_v14 = vadd.f32 %v4557_v41, %v1047_v54  ;;  %v6812_v63 = vadd.f32 %v4594_v11, %v1292_v39 }
 0x143   : > { %v4614_v1 = vpop.f32.mrb[32].mxu0  ;;  %v6814_v12 = vadd.f32 %v4597_v18, %v1293_v14  ;;  %v4654_v51 = vpop.f32.mrb[32].mxu1 }
 0x144   : > { %v4615_v42 = vpop.f32.mrb[33].mxu0  ;;  %v4655_v5 = vpop.f32.mrb[33].mxu1 }
 0x145   : > { %v4616_v22 = vadd.f32 %v4615_v42, %v4614_v1  ;;  %v4617_v56 = vpop.f32.mrb[34].mxu0  ;;  %v6823_v37 = vadd.f32 %v4655_v5, %v4654_v51  ;;  %v4657_v53 = vpop.f32.mrb[34].mxu1 }
 0x146   : > { %v4618_v44 = vpop.f32.mrb[35].mxu0  ;;  %v4658_v15 = vpop.f32.mrb[35].mxu1 }
 0x147   : > { %v1806_v34 = vadd.f32 %v4616_v22, %v1570_v47  ;;  %v4619_v57 = vadd.f32 %v4618_v44, %v4617_v56  ;;  %v6825_v48 = vadd.f32 %v4658_v15, %v4657_v53 }
 0x149   : > { %v1820_v54 = vadd.f32 %v6819_v28, %v1806_v34  ;;  %v1807_v0 = vadd.f32 %v4619_v57, %v1571_v6 }
 0x14b   : > { %v1828_v50 = vmax.f32 %v1820_v54, 0.0  ;;  %v1821_v4 = vadd.f32 %v6819_v28, %v1807_v0  ;;  %v4620_v24 = vpop.f32.mrb[36].mxu0  ;;  %v4660_v33 = vpop.f32.mrb[36].mxu1 }
 0x14c   : > { %v4621_v49 = vpop.f32.mrb[37].mxu0  ;;  %v4661_v10 = vpop.f32.mrb[37].mxu1 }
 0x14d   : > { %v1836_v60 = vrot.slane %v1828_v50, 4  ;;  %v1829_v38 = vmax.f32 %v1821_v4, 0.0  ;;  %v4622_v47 = vadd.f32 %v4621_v49, %v4620_v24  ;;  %v4623_v59 = vpop.f32.mrb[38].mxu0  ;;  %v4663_v62 = vpop.f32.mrb[38].mxu1  ;;  %v6830_v3 = vadd.f32 %v4661_v10, %v4660_v33 }
 0x14e   : > { %v4624_v13 = vpop.f32.mrb[39].mxu0  ;;  %v4664_v23 = vpop.f32.mrb[39].mxu1 }
 0x14f   : > { %v1837_v21 = vmax.f32 %v1828_v50, %v1836_v60  ;;  %v1842_v6 = vrot.slane %v1829_v38, 4  ;;  %v1808_v31 = vadd.f32 %v4622_v47, %v1572_v46  ;;  %v4625_v32 = vadd.f32 %v4624_v13, %v4623_v59 }
 0x150   : > { %v6832_v8 = vadd.f32 %v4664_v23, %v4663_v62 }
 0x151   : > { %v1838_v25 = vrot.slane %v1837_v21, 2  ;;  %v1843_v7 = vmax.f32 %v1829_v38, %v1842_v6  ;;  %v1822_v29 = vadd.f32 %v6819_v28, %v1808_v31  ;;  %v1809_v2 = vadd.f32 %v4625_v32, %v6806_v43 }
 0x153   : > { %v1839_v16 = vmax.f32 %v1837_v21, %v1838_v25  ;;  %v1844_v36 = vrot.slane %v1843_v7, 2  ;;  %v1830_v35 = vmax.f32 %v1822_v29, 0.0  ;;  %v1823_v27 = vadd.f32 %v6819_v28, %v1809_v2  ;;  %v4626_v17 = vpop.f32.mrb[40].mxu0 }
 0x154   : > { %v4627_v46 = vpop.f32.mrb[41].mxu0  ;;  %v4666_v22 = vpop.f32.mrb[40].mxu1 }
 0x155   : > { %v1840_v58 = vrot.slane %v1839_v16, 1  ;;  %v1845_v45 = vmax.f32 %v1843_v7, %v1844_v36  ;;  %v1848_v20 = vrot.slane %v1830_v35, 4  ;;  %v1831_v40 = vmax.f32 %v1823_v27, 0.0  ;;  %v4629_v26 = vpop.f32.mrb[42].mxu0  ;;  %v4667_v34 = vpop.f32.mrb[41].mxu1 }
 0x156   : > { %v4628_v43 = vadd.f32 %v4627_v46, %v4626_v17  ;;  %v4630_v52 = vpop.f32.mrb[43].mxu0  ;;  %v4669_v51 = vpop.f32.mrb[42].mxu1 }
 0x157   : > { %v1846_v39 = vrot.slane %v1845_v45, 1  ;;  %v1849_v41 = vmax.f32 %v1830_v35, %v1848_v20  ;;  %v1854_v9 = vrot.slane %v1831_v40, 4  ;;  %v1841_v11 = vmax.f32 %v1839_v16, %v1840_v58  ;;  %v4670_v24 = vpop.f32.mrb[43].mxu1 }
 0x158   : > { %v1810_v61 = vadd.f32 %v4628_v43, %v6808_v55  ;;  %v4631_v14 = vadd.f32 %v4630_v52, %v4629_v26  ;;  %v6843_v55 = vadd.f32 %v4667_v34, %v4666_v22  ;;  %v6847_v38 = vadd.f32 %v4670_v24, %v4669_v51 }
 0x159   : > { %v1847_v18 = vmax.f32 %v1845_v45, %v1846_v39  ;;  %v1850_v1 = vrot.slane %v1849_v41, 2  ;;  %v1855_v42 = vmax.f32 %v1831_v40, %v1854_v9  ;;  %v3951_v50 = vmul.f32 %v6838_v19, %v1841_v11 }
 0x15a   : > { %v1824_v56 = vadd.f32 %v6819_v28, %v1810_v61  ;;  %v1811_v44 = vadd.f32 %v4631_v14, %v6810_v30 }
 0x15b   : > { %v3952_v57 = vmul.f32 %v6838_v19, %v1847_v18  ;;  %v1851_v54 = vmax.f32 %v1849_v41, %v1850_v1  ;;  %v1856_v0 = vrot.slane %v1855_v42, 2  ;;  %v4632_v5 = vpop.f32.mrb[44].mxu0 }
 0x15c   : > { %v1832_v4 = vmax.f32 %v1824_v56, 0.0  ;;  %v1825_v53 = vadd.f32 %v6819_v28, %v1811_v44  ;;  %v4633_v15 = vpop.f32.mrb[45].mxu0 }
 0x15d   : > { %v3967_v49 = vrot.slane %v3952_v57, 7  ;;  %v1852_v60 = vrot.slane %v1851_v54, 1  ;;  %v1857_v30 = vmax.f32 %v1855_v42, %v1856_v0  ;;  %v4635_v47 = vpop.f32.mrb[46].mxu0  ;;  %v4634_v21 = vadd.f32 %v4633_v15, %v4632_v5 }
 0x15e   : > { %v1860_v59 = vrot.slane %v1832_v4, 4  ;;  %v1833_v13 = vmax.f32 %v1825_v53, 0.0  ;;  %v4636_v6 = vpop.f32.mrb[47].mxu0 }
 0x15f   : > { %v1853_v31 = vmax.f32 %v1851_v54, %v1852_v60  ;;  %v1858_v32 = vrot.slane %v1857_v30, 1  ;;  %v4637_v25 = vadd.f32 %v4636_v6, %v4635_v47  ;;  %v3969_v7 = vsel %vm3968_vm12, %v3967_v49, %v3951_v50 }
 0x160   : > { %v1861_v29 = vmax.f32 %v1832_v4, %v1860_v59  ;;  %v1866_v2 = vrot.slane %v1833_v13, 4  ;;  %v1812_v33 = vadd.f32 %v4634_v21, %v6812_v63  ;;  %v4672_v58 = vpop.f32.mrb[44].mxu1 }
 0x161   : > { %v3953_v10 = vmul.f32 %v6838_v19, %v1853_v31  ;;  %v1859_v16 = vmax.f32 %v1857_v30, %v1858_v32  ;;  %v1813_v36 = vadd.f32 %v4637_v25, %v6814_v12  ;;  %v4673_v26 = vpop.f32.mrb[45].mxu1 }
 0x162   : > { %v1862_v35 = vrot.slane %v1861_v29, 2  ;;  %v1867_v27 = vmax.f32 %v1833_v13, %v1866_v2  ;;  %v1826_v62 = vadd.f32 %v6819_v28, %v1812_v33  ;;  %v6856_v12 = vadd.f32 %v4673_v26, %v4672_v58  ;;  %v4675_v39 = vpop.f32.mrb[46].mxu1 }
 0x163   : > { %v3970_v17 = vrot.slane %v3953_v10, 6  ;;  %v3954_v23 = vmul.f32 %v6838_v19, %v1859_v16  ;;  %v1827_v46 = vadd.f32 %v6819_v28, %v1813_v36  ;;  %v4718_v45 = vpop.f32.mrb[48].mxu0  ;;  %v4676_v28 = vpop.f32.mrb[47].mxu1 }
 0x164   : > { %v1863_v20 = vmax.f32 %v1861_v29, %v1862_v35  ;;  %v1868_v40 = vrot.slane %v1867_v27, 2  ;;  %v1834_v63 = vmax.f32 %v1826_v62, 0.0  ;;  %v4719_v43 = vpop.f32.mrb[49].mxu0  ;;  %v6859_v56 = vadd.f32 %v4676_v28, %v4675_v39 }
 0x165   : > { %v1835_v52 = vmax.f32 %v1827_v46, 0.0  ;;  %v4720_v41 = vadd.f32 %v4719_v43, %v4718_v45  ;;  %v4721_v9 = vpop.f32.mrb[50].mxu0  ;;  %v3972_v11 = vsel %vm3971_vm13, %v3970_v17, %v3969_v7  ;;  %v3973_v42 = vrot.slane %v3954_v23, 5 }
 0x166   : > { %v1864_v61 = vrot.slane %v1863_v20, 1  ;;  %v1869_v14 = vmax.f32 %v1867_v27, %v1868_v40  ;;  %v1872_v18 = vrot.slane %v1834_v63, 4  ;;  %v4722_v1 = vpop.f32.mrb[51].mxu0 }
 0x167   : > { %v1878_v22 = vrot.slane %v1835_v52, 4  ;;  %v6862_v44 = vadd.f32 %v4720_v41, %v6823_v37  ;;  %v4723_v34 = vadd.f32 %v4722_v1, %v4721_v9  ;;  %v3975_v51 = vsel %vm3974_vm14, %v3973_v42, %v3972_v11 }
 0x168   : > { %v1865_v57 = vmax.f32 %v1863_v20, %v1864_v61  ;;  %v1870_v54 = vrot.slane %v1869_v14, 1  ;;  %v1873_v0 = vmax.f32 %v1834_v63, %v1872_v18  ;;  %v4678_v49 = vpop.f32.mrb[48].mxu1 }
 0x169   : > { %v1879_v5 = vmax.f32 %v1835_v52, %v1878_v22  ;;  %v6866_v50 = vadd.f32 %v4723_v34, %v6825_v48  ;;  %v4679_v30 = vpop.f32.mrb[49].mxu1 }
 0x16a   : > { %v1871_v4 = vmax.f32 %v1869_v14, %v1870_v54  ;;  %v1874_v53 = vrot.slane %v1873_v0, 2  ;;  %v3955_v24 = vmul.f32 %v6838_v19, %v1865_v57  ;;  %v6870_v21 = vadd.f32 %v4679_v30, %v4678_v49  ;;  %v4681_v6 = vpop.f32.mrb[50].mxu1 }
 0x16b   : > { %v1880_v15 = vrot.slane %v1879_v5, 2  ;;  %v4724_v60 = vpop.f32.mrb[52].mxu0  ;;  %v4682_v25 = vpop.f32.mrb[51].mxu1 }
 0x16c   : > { %v1875_v37 = vmax.f32 %v1873_v0, %v1874_v53  ;;  %v4725_v47 = vpop.f32.mrb[53].mxu0  ;;  %v3956_v59 = vmul.f32 %v6838_v19, %v1871_v4  ;;  %v3976_v13 = vrot.slane %v3955_v24, 4  ;;  %v4683_v10 = vadd.f32 %v4682_v25, %v4681_v6 }
 0x16d   : > { %v4726_v31 = vadd.f32 %v4725_v47, %v4724_v60  ;;  %v4727_v48 = vpop.f32.mrb[54].mxu0  ;;  %v1881_v32 = vmax.f32 %v1879_v5, %v1880_v15 }
 0x16e   : > { %v4728_v7 = vpop.f32.mrb[55].mxu0  ;;  %v1876_v29 = vrot.slane %v1875_v37, 1  ;;  %v3978_v2 = vsel %vm3977_vm15, %v3976_v13, %v3975_v51  ;;  %v3979_v33 = vrot.slane %v3956_v59, 3 }
 0x16f   : > { %v6874_v16 = vadd.f32 %v4726_v31, %v6830_v3  ;;  %v4729_v36 = vadd.f32 %v4728_v7, %v4727_v48  ;;  %v1882_v35 = vrot.slane %v1881_v32, 1 }
 0x170   : > { %v1877_v27 = vmax.f32 %v1875_v37, %v1876_v29  ;;  %v3981_v62 = vsel %vm3980_vm0, %v3979_v33, %v3978_v2  ;;  %v4684_v58 = vpop.f32.mrb[52].mxu1 }
 0x171   : > { %v6878_v17 = vadd.f32 %v4729_v36, %v6832_v8  ;;  %v1883_v23 = vmax.f32 %v1881_v32, %v1882_v35  ;;  %v4685_v40 = vpop.f32.mrb[53].mxu1 }
 0x172   : > { %v3957_v46 = vmul.f32 %v6838_v19, %v1877_v27  ;;  %v4686_v26 = vadd.f32 %v4685_v40, %v4684_v58  ;;  %v4687_v43 = vpop.f32.mrb[54].mxu1 }
 0x173   : > { %v4730_v45 = vpop.f32.mrb[56].mxu0  ;;  %v3958_v20 = vmul.f32 %v6838_v19, %v1883_v23  ;;  %v4688_v9 = vpop.f32.mrb[55].mxu1 }
 0x174   : > { %v4731_v63 = vpop.f32.mrb[57].mxu0  ;;  %v3982_v3 = vrot.slane %v3957_v46, 2  ;;  %v4689_v61 = vadd.f32 %v4688_v9, %v4687_v43 }
 0x175   : > { %v4732_v52 = vadd.f32 %v4731_v63, %v4730_v45  ;;  %v4733_v39 = vpop.f32.mrb[58].mxu0  ;;  %v3985_v41 = vrot.slane %v3958_v20, 1 }
 0x176   : > { %v4734_v8 = vpop.f32.mrb[59].mxu0  ;;  %v3984_v11 = vsel %vm3983_vm1, %v3982_v3, %v3981_v62 }
 0x177   : > { %v6884_v14 = vadd.f32 %v4732_v52, %v6843_v55  ;;  %v4735_v18 = vadd.f32 %v4734_v8, %v4733_v39  ;;  %v3987_v19 = vsel %vm3986_vm2, %v3985_v41, %v3984_v11 }
 0x178   : > { %3989 = vadd.xlane.f32.xlu0 %v3987_v19  ;;  %v4690_v1 = vpop.f32.mrb[56].mxu1 }
 0x179   : > { %v6888_v28 = vadd.f32 %v4735_v18, %v6847_v38  ;;  %v4691_v22 = vpop.f32.mrb[57].mxu1 }
 0x17a   : > { %v4692_v57 = vadd.f32 %v4691_v22, %v4690_v1  ;;  %v4693_v54 = vpop.f32.mrb[58].mxu1 }
 0x17b   : > { %v4736_v42 = vpop.f32.mrb[60].mxu0  ;;  %v4694_v5 = vpop.f32.mrb[59].mxu1 }
 0x17c   : > { %v4737_v34 = vpop.f32.mrb[61].mxu0  ;;  %v4695_v53 = vadd.f32 %v4694_v5, %v4693_v54 }
 0x17d   : > { %v4738_v0 = vadd.f32 %v4737_v34, %v4736_v42  ;;  %v4739_v51 = vpop.f32.mrb[62].mxu0 }
 0x17e   : > { %v4740_v4 = vpop.f32.mrb[63].mxu0 }
 0x17f   : > { %v6891_v55 = vadd.f32 %v4738_v0, %v6856_v12  ;;  %v4741_v24 = vadd.f32 %v4740_v4, %v4739_v51 }
 0x180   : > { %v4696_v38 = vpop.f32.mrb[60].mxu1 }
 0x181   : > { %v6894_v15 = vadd.f32 %v4741_v24, %v6859_v56  ;;  %v4697_v60 = vpop.f32.mrb[61].mxu1 }
 0x182   : > { %v4698_v30 = vadd.f32 %v4697_v60, %v4696_v38  ;;  %v4699_v47 = vpop.f32.mrb[62].mxu1 }
 0x183   : > { %v4742_v49 = vpop.f32.mrb[64].mxu0  ;;  %v4700_v6 = vpop.f32.mrb[63].mxu1 }
 0x184   : > { %v4743_v37 = vpop.f32.mrb[65].mxu0  ;;  %v4701_v48 = vadd.f32 %v4700_v6, %v4699_v47 }
 0x185   : > { %v4744_v59 = vadd.f32 %v4743_v37, %v4742_v49  ;;  %v4745_v13 = vpop.f32.mrb[66].mxu0 }
 0x186   : > { %v4746_v31 = vpop.f32.mrb[67].mxu0 }
 0x187   : > { %v6897_v32 = vadd.f32 %v4744_v59, %v6870_v21  ;;  %v4747_v12 = vadd.f32 %v4746_v31, %v4745_v13 }
 0x188   : > { %v4782_v7 = vpop.f32.mrb[64].mxu1 }
 0x189   : > { %v6899_v25 = vadd.f32 %v4747_v12, %v4683_v10  ;;  %v4783_v29 = vpop.f32.mrb[65].mxu1 }
 0x18a   : > { %v4784_v33 = vadd.f32 %v4783_v29, %v4782_v7  ;;  %v4785_v36 = vpop.f32.mrb[66].mxu1 }
 0x18b   : > { %v4748_v56 = vpop.f32.mrb[68].mxu0  ;;  %v4786_v62 = vpop.f32.mrb[67].mxu1 }
 0x18c   : > { %v4749_v2 = vpop.f32.mrb[69].mxu0  ;;  %v3112_v46 = vadd.f32 %v4784_v33, %v6862_v44  ;;  %v4787_v58 = vadd.f32 %v4786_v62, %v4785_v36 }
 0x18d   : > { %v4750_v35 = vadd.f32 %v4749_v2, %v4748_v56  ;;  %v4751_v27 = vpop.f32.mrb[70].mxu0 }
 0x18e   : > { %v4752_v23 = vpop.f32.mrb[71].mxu0  ;;  %v3113_v20 = vadd.f32 %v4787_v58, %v6866_v50 }
 0x18f   : > { %v6902_v45 = vadd.f32 %v4750_v35, %v4686_v26  ;;  %v4753_v21 = vadd.f32 %v4752_v23, %v4751_v27 }
 0x190   : > { %v4788_v40 = vpop.f32.mrb[68].mxu1 }
 0x191   : > { %v6905_v10 = vadd.f32 %v4753_v21, %v4689_v61  ;;  %v4789_v3 = vpop.f32.mrb[69].mxu1 }
 0x192   : > { %v4790_v52 = vadd.f32 %v4789_v3, %v4788_v40  ;;  %v4791_v39 = vpop.f32.mrb[70].mxu1 }
 0x193   : > { %v4754_v63 = vpop.f32.mrb[72].mxu0  ;;  %v4792_v8 = vpop.f32.mrb[71].mxu1 }
 0x194   : > { %v4755_v43 = vpop.f32.mrb[73].mxu0  ;;  %v3114_v44 = vadd.f32 %v4790_v52, %v6874_v16  ;;  %v4793_v18 = vadd.f32 %v4792_v8, %v4791_v39 }
 0x195   : > { %v4756_v41 = vadd.f32 %v4755_v43, %v4754_v63  ;;  %v4757_v9 = vpop.f32.mrb[74].mxu0 }
 0x196   : > { %v4758_v11 = vpop.f32.mrb[75].mxu0  ;;  %v3115_v50 = vadd.f32 %v4793_v18, %v6878_v17 }
 0x197   : > { %v6908_v26 = vadd.f32 %v4756_v41, %v4692_v57  ;;  %v4759_v19 = vadd.f32 %v4758_v11, %v4757_v9 }
 0x198   : > { %v4794_v1 = vpop.f32.mrb[72].mxu1 }
 0x199   : > { %v6911_v61 = vadd.f32 %v4759_v19, %v4695_v53  ;;  %v4795_v22 = vpop.f32.mrb[73].mxu1 }
 0x19a   : > { %v4796_v54 = vadd.f32 %v4795_v22, %v4794_v1  ;;  %v4797_v0 = vpop.f32.mrb[74].mxu1 }
 0x19b   : > { %v4760_v42 = vpop.f32.mrb[76].mxu0  ;;  %v4798_v4 = vpop.f32.mrb[75].mxu1 }
 0x19c   : > { %v4761_v34 = vpop.f32.mrb[77].mxu0  ;;  %v3116_v16 = vadd.f32 %v4796_v54, %v6884_v14  ;;  %v4799_v38 = vadd.f32 %v4798_v4, %v4797_v0 }
 0x19d   : > { %v4762_v51 = vadd.f32 %v4761_v34, %v4760_v42  ;;  %v4763_v5 = vpop.f32.mrb[78].mxu0 }
 0x19e   : > { %v4764_v24 = vpop.f32.mrb[79].mxu0  ;;  %v3117_v17 = vadd.f32 %v4799_v38, %v6888_v28 }
 0x19f   : > { %v6914_v57 = vadd.f32 %v4762_v51, %v4698_v30  ;;  %v4765_v49 = vadd.f32 %v4764_v24, %v4763_v5 }
 0x1a0   : > { %v4800_v60 = vpop.f32.mrb[76].mxu1 }
 0x1a1   : > { %v6917_v53 = vadd.f32 %v4765_v49, %v4701_v48  ;;  %v4801_v47 = vpop.f32.mrb[77].mxu1 }
 0x1a2   : > { %v4802_v13 = vadd.f32 %v4801_v47, %v4800_v60  ;;  %v4803_v6 = vpop.f32.mrb[78].mxu1 }
 0x1a3   : > { %v4846_v37 = vpop.f32.mrb[80].mxu0  ;;  %v4804_v7 = vpop.f32.mrb[79].mxu1 }
 0x1a4   : > { %v4847_v59 = vpop.f32.mrb[81].mxu0  ;;  %v3118_v14 = vadd.f32 %v4802_v13, %v6891_v55  ;;  %v4805_v29 = vadd.f32 %v4804_v7, %v4803_v6 }
 0x1a5   : > { %v4848_v31 = vadd.f32 %v4847_v59, %v4846_v37  ;;  %v4849_v12 = vpop.f32.mrb[82].mxu0 }
 0x1a6   : > { %v4850_v56 = vpop.f32.mrb[83].mxu0  ;;  %v3119_v28 = vadd.f32 %v4805_v29, %v6894_v15 }
 0x1a7   : > { %v6920_v30 = vadd.f32 %v4848_v31, %v3112_v46  ;;  %v4851_v2 = vadd.f32 %v4850_v56, %v4849_v12 }
 0x1a8   : > { %v4806_v33 = vpop.f32.mrb[80].mxu1 }
 0x1a9   : > { %v6923_v48 = vadd.f32 %v4851_v2, %v3113_v20  ;;  %v4807_v35 = vpop.f32.mrb[81].mxu1 }
 0x1aa   : > { %v4808_v62 = vadd.f32 %v4807_v35, %v4806_v33  ;;  %v4809_v23 = vpop.f32.mrb[82].mxu1 }
 0x1ab   : > { %v4852_v36 = vpop.f32.mrb[84].mxu0  ;;  %v4810_v40 = vpop.f32.mrb[83].mxu1 }
 0x1ac   : > { %v4853_v27 = vpop.f32.mrb[85].mxu0  ;;  %v3120_v55 = vadd.f32 %v4808_v62, %v6897_v32  ;;  %v4811_v3 = vadd.f32 %v4810_v40, %v4809_v23 }
 0x1ad   : > { %v4854_v58 = vadd.f32 %v4853_v27, %v4852_v36  ;;  %v4855_v21 = vpop.f32.mrb[86].mxu0 }
 0x1ae   : > { %v4856_v63 = vpop.f32.mrb[87].mxu0  ;;  %v3121_v15 = vadd.f32 %v4811_v3, %v6899_v25 }
 0x1af   : > { %v6926_v46 = vadd.f32 %v4854_v58, %v3114_v44  ;;  %v4857_v43 = vadd.f32 %v4856_v63, %v4855_v21 }
 0x1b0   : > { %v4812_v52 = vpop.f32.mrb[84].mxu1 }
 0x1b1   : > { %v6929_v20 = vadd.f32 %v4857_v43, %v3115_v50  ;;  %v4813_v41 = vpop.f32.mrb[85].mxu1 }
 0x1b2   : > { %v4814_v8 = vadd.f32 %v4813_v41, %v4812_v52  ;;  %v4815_v11 = vpop.f32.mrb[86].mxu1  ;;  %v6940_v52 = vld [vmem:[%s7001_s5] ss:$0 sm:$0xff] }
 0x1b3   : > { %v4858_v39 = vpop.f32.mrb[88].mxu0  ;;  %v4816_v1 = vpop.f32.mrb[87].mxu1 }
 0x1b4   : > { %v4859_v9 = vpop.f32.mrb[89].mxu0  ;;  %v3122_v32 = vadd.f32 %v4814_v8, %v6902_v45  ;;  %v4817_v22 = vadd.f32 %v4816_v1, %v4815_v11 }
 0x1b5   : > { %v4860_v18 = vadd.f32 %v4859_v9, %v4858_v39  ;;  %v4861_v19 = vpop.f32.mrb[90].mxu0 }
 0x1b6   : > { %v4862_v42 = vpop.f32.mrb[91].mxu0  ;;  %v3123_v54 = vadd.f32 %v4817_v22, %v6905_v10 }
 0x1b7   : > { %v3509_v44 = vadd.f32 %v4860_v18, %v3116_v16  ;;  %v4863_v34 = vadd.f32 %v4862_v42, %v4861_v19 }
 0x1b8   : > { %v4818_v50 = vpop.f32.mrb[88].mxu1 }
 0x1b9   : > { %v3510_v25 = vadd.f32 %v4863_v34, %v3117_v17  ;;  %v4819_v51 = vpop.f32.mrb[89].mxu1 }
 0x1ba   : > { %v4820_v4 = vadd.f32 %v4819_v51, %v4818_v50  ;;  %v4821_v24 = vpop.f32.mrb[90].mxu1 }
 0x1bb   : > { %v4864_v0 = vpop.f32.mrb[92].mxu0  ;;  %v4822_v60 = vpop.f32.mrb[91].mxu1 }
 0x1bc   : > { %v4865_v5 = vpop.f32.mrb[93].mxu0  ;;  %v3124_v47 = vadd.f32 %v4820_v4, %v6908_v26  ;;  %v4823_v59 = vadd.f32 %v4822_v60, %v4821_v24 }
 0x1bd   : > { %v4866_v38 = vadd.f32 %v4865_v5, %v4864_v0  ;;  %v4867_v49 = vpop.f32.mrb[94].mxu0 }
 0x1be   : > { %v4868_v37 = vpop.f32.mrb[95].mxu0  ;;  %v3125_v16 = vadd.f32 %v4823_v59, %v6911_v61 }
 0x1bf   : > { %v3511_v45 = vadd.f32 %v4866_v38, %v3118_v14  ;;  %v4869_v13 = vadd.f32 %v4868_v37, %v4867_v49 }
 0x1c0   : > { %v4824_v10 = vpop.f32.mrb[92].mxu1 }
 0x1c1   : > { %v3512_v6 = vadd.f32 %v4869_v13, %v3119_v28  ;;  %v4825_v31 = vpop.f32.mrb[93].mxu1 }
 0x1c2   : > { %v4826_v7 = vadd.f32 %v4825_v31, %v4824_v10  ;;  %v4827_v56 = vpop.f32.mrb[94].mxu1 }
 0x1c3   : > { %v4870_v17 = vpop.f32.mrb[96].mxu0  ;;  %v4828_v33 = vpop.f32.mrb[95].mxu1 }
 0x1c4   : > { %v4871_v12 = vpop.f32.mrb[97].mxu0  ;;  %v3126_v35 = vadd.f32 %v4826_v7, %v6914_v57  ;;  %v4829_v27 = vadd.f32 %v4828_v33, %v4827_v56 }
 0x1c5   : > { %v4872_v29 = vadd.f32 %v4871_v12, %v4870_v17  ;;  %v4873_v2 = vpop.f32.mrb[98].mxu0 }
 0x1c6   : > { %v4874_v36 = vpop.f32.mrb[99].mxu0  ;;  %v3127_v14 = vadd.f32 %v4829_v27, %v6917_v53 }
 0x1c7   : > { %v3513_v26 = vadd.f32 %v4872_v29, %v3120_v55  ;;  %v4875_v62 = vadd.f32 %v4874_v36, %v4873_v2 }
 0x1c8   : > { %v4922_v61 = vpop.f32.mrb[96].mxu1 }
 0x1c9   : > { %v3514_v23 = vadd.f32 %v4875_v62, %v3121_v15  ;;  %v4923_v58 = vpop.f32.mrb[97].mxu1 }
 0x1ca   : > { %v4924_v40 = vadd.f32 %v4923_v58, %v4922_v61  ;;  %v4925_v63 = vpop.f32.mrb[98].mxu1 }
 0x1cb   : > { %v4876_v28 = vpop.f32.mrb[100].mxu0  ;;  %v4926_v57 = vpop.f32.mrb[99].mxu1 }
 0x1cc   : > { %v4877_v21 = vpop.f32.mrb[101].mxu0  ;;  %v3838_v55 = vadd.f32 %v4924_v40, %v3509_v44  ;;  %v4927_v41 = vadd.f32 %v4926_v57, %v4925_v63 }
 0x1cd   : > { %v4878_v3 = vadd.f32 %v4877_v21, %v4876_v28  ;;  %v4879_v43 = vpop.f32.mrb[102].mxu0 }
 0x1ce   : > { %v4880_v39 = vpop.f32.mrb[103].mxu0  ;;  %v3860_v15 = vadd.f32 %v6940_v52, %v3838_v55  ;;  %v3839_v8 = vadd.f32 %v4927_v41, %v3510_v25 }
 0x1cf   : > { %v3515_v9 = vadd.f32 %v4878_v3, %v3122_v32  ;;  %v4881_v53 = vadd.f32 %v4880_v39, %v4879_v43 }
 0x1d0   : > { %v3861_v18 = vadd.f32 %v6940_v52, %v3839_v8  ;;  %v4928_v19 = vpop.f32.mrb[100].mxu1  ;;  %v3876_v34 = vmax.f32 %v3860_v15, 0.0 }
 0x1d1   : > { %v3516_v11 = vadd.f32 %v4881_v53, %v3123_v54  ;;  %v4929_v42 = vpop.f32.mrb[101].mxu1 }
 0x1d2   : > { %v3877_v50 = vmax.f32 %v3861_v18, 0.0  ;;  %v4930_v0 = vadd.f32 %v4929_v42, %v4928_v19  ;;  %v4931_v51 = vpop.f32.mrb[102].mxu1 }
 0x1d3   : > { %v4882_v1 = vpop.f32.mrb[104].mxu0  ;;  %v4932_v44 = vpop.f32.mrb[103].mxu1 }
 0x1d4   : > { %v4883_v22 = vpop.f32.mrb[105].mxu0  ;;  %v6944_v32 = vmax.f32 %v3876_v34, %v3877_v50  ;;  %v3840_v38 = vadd.f32 %v4930_v0, %v3511_v45  ;;  %v4933_v49 = vadd.f32 %v4932_v44, %v4931_v51 }
 0x1d5   : > { %v4884_v5 = vadd.f32 %v4883_v22, %v4882_v1  ;;  %v4885_v4 = vpop.f32.mrb[106].mxu0 }
 0x1d6   : > { %v4886_v24 = vpop.f32.mrb[107].mxu0  ;;  %v3862_v60 = vadd.f32 %v6940_v52, %v3840_v38  ;;  %v3841_v37 = vadd.f32 %v4933_v49, %v3512_v6 }
 0x1d7   : > { %v6946_v25 = vadd.f32 %v4884_v5, %v3124_v47  ;;  %v4887_v54 = vadd.f32 %v4886_v24, %v4885_v4 }
 0x1d8   : > { %v3863_v13 = vadd.f32 %v6940_v52, %v3841_v37  ;;  %v4934_v10 = vpop.f32.mrb[104].mxu1  ;;  %v3878_v7 = vmax.f32 %v3862_v60, 0.0 }
 0x1d9   : > { %v6949_v59 = vadd.f32 %v4887_v54, %v3125_v16  ;;  %v4935_v31 = vpop.f32.mrb[105].mxu1 }
 0x1da   : > { %v3879_v56 = vmax.f32 %v3863_v13, 0.0  ;;  %v4936_v29 = vadd.f32 %v4935_v31, %v4934_v10  ;;  %v4937_v2 = vpop.f32.mrb[106].mxu1 }
 0x1db   : > { %v4888_v17 = vpop.f32.mrb[108].mxu0  ;;  %v4938_v47 = vpop.f32.mrb[107].mxu1 }
 0x1dc   : > { %v4889_v12 = vpop.f32.mrb[109].mxu0  ;;  %v3909_v27 = vmax.f32 %v3878_v7, %v3879_v56  ;;  %v3842_v62 = vadd.f32 %v4936_v29, %v3513_v26  ;;  %v4939_v61 = vadd.f32 %v4938_v47, %v4937_v2 }
 0x1dd   : > { %v4890_v45 = vadd.f32 %v4889_v12, %v4888_v17  ;;  %v4891_v33 = vpop.f32.mrb[110].mxu0 }
 0x1de   : > { %v4892_v36 = vpop.f32.mrb[111].mxu0  ;;  %v3864_v28 = vadd.f32 %v6940_v52, %v3842_v62  ;;  %v3843_v58 = vadd.f32 %v4939_v61, %v3514_v23  ;;  %v3910_v38 = vrot.slane %v3909_v27, 4 }
 0x1df   : > { %v6952_v6 = vadd.f32 %v4890_v45, %v3126_v35  ;;  %v4893_v16 = vadd.f32 %v4892_v36, %v4891_v33 }
 0x1e0   : > { %v3865_v40 = vadd.f32 %v6940_v52, %v3843_v58  ;;  %v4940_v63 = vpop.f32.mrb[108].mxu1  ;;  %v3880_v39 = vmax.f32 %v3864_v28, 0.0  ;;  %v3911_v47 = vmax.f32 %v3909_v27, %v3910_v38 }
 0x1e1   : > { %v6955_v21 = vadd.f32 %v4893_v16, %v3127_v14  ;;  %v4941_v43 = vpop.f32.mrb[109].mxu1 }
 0x1e2   : > { %v3881_v55 = vmax.f32 %v3865_v40, 0.0  ;;  %v4942_v41 = vadd.f32 %v4941_v43, %v4940_v63  ;;  %v4943_v53 = vpop.f32.mrb[110].mxu1 }
 0x1e3   : > { %v4910_v3 = vpop.f32.mrb[112].mxu0  ;;  %v4944_v15 = vpop.f32.mrb[111].mxu1 }
 0x1e4   : > { %v4911_v57 = vpop.f32.mrb[113].mxu0  ;;  %v3916_v18 = vmax.f32 %v3880_v39, %v3881_v55  ;;  %v3844_v19 = vadd.f32 %v4942_v41, %v3515_v9  ;;  %v4945_v1 = vadd.f32 %v4944_v15, %v4943_v53  ;;  %v3903_v9 = vrot.slane %v6944_v32, 4 }
 0x1e5   : > { %v4913_v26 = vpop.f32.mrb[114].mxu0  ;;  %v4912_v35 = vadd.f32 %v4911_v57, %v4910_v3  ;;  %v3912_v41 = vrot.slane %v3911_v47, 2 }
 0x1e6   : > { %v4914_v8 = vpop.f32.mrb[115].mxu0  ;;  %v3866_v42 = vadd.f32 %v6940_v52, %v3844_v19  ;;  %v3845_v22 = vadd.f32 %v4945_v1, %v3516_v11  ;;  %v3917_v31 = vrot.slane %v3916_v18, 4  ;;  %v3904_v33 = vmax.f32 %v6944_v32, %v3903_v9 }
 0x1e7   : > { %v3834_v14 = vadd.f32 %v4912_v35, %v6920_v30  ;;  %v4915_v23 = vadd.f32 %v4914_v8, %v4913_v26 }
 0x1e8   : > { %v4946_v0 = vpop.f32.mrb[112].mxu1  ;;  %v3867_v5 = vadd.f32 %v6940_v52, %v3845_v22  ;;  %v3882_v11 = vmax.f32 %v3866_v42, 0.0  ;;  %v3905_v27 = vrot.slane %v3904_v33, 2 }
 0x1e9   : > { %v3856_v34 = vadd.f32 %v6940_v52, %v3834_v14  ;;  %v3835_v50 = vadd.f32 %v4915_v23, %v6923_v48  ;;  %v4947_v4 = vpop.f32.mrb[113].mxu1 }
 0x1ea   : > { %v4948_v30 = vadd.f32 %v4947_v4, %v4946_v0  ;;  %v4949_v49 = vpop.f32.mrb[114].mxu1  ;;  %v3883_v37 = vmax.f32 %v3867_v5, 0.0  ;;  %v3906_v23 = vmax.f32 %v3904_v33, %v3905_v27 }
 0x1eb   : > { %v4916_v51 = vpop.f32.mrb[116].mxu0  ;;  %v3857_v44 = vadd.f32 %v6940_v52, %v3835_v50  ;;  %v3872_v13 = vmax.f32 %v3856_v34, 0.0  ;;  %v4950_v48 = vpop.f32.mrb[115].mxu1  ;;  %v3913_v50 = vmax.f32 %v3911_v47, %v3912_v41 }
 0x1ec   : > { %v4917_v24 = vpop.f32.mrb[117].mxu0  ;;  %v3846_v12 = vadd.f32 %v4948_v30, %v6946_v25  ;;  %v4951_v7 = vadd.f32 %v4950_v48, %v4949_v49  ;;  %v3923_v29 = vmax.f32 %v3882_v11, %v3883_v37  ;;  %v3918_v25 = vmax.f32 %v3916_v18, %v3917_v31 }
 0x1ed   : > { %v4918_v54 = vadd.f32 %v4917_v24, %v4916_v51  ;;  %v4919_v60 = vpop.f32.mrb[118].mxu0  ;;  %v3873_v10 = vmax.f32 %v3857_v44, 0.0 }
 0x1ee   : > { %v4920_v17 = vpop.f32.mrb[119].mxu0  ;;  %v3868_v36 = vadd.f32 %v6940_v52, %v3846_v12  ;;  %v3847_v62 = vadd.f32 %v4951_v7, %v6949_v59  ;;  %v3924_v61 = vrot.slane %v3923_v29, 4  ;;  %v3919_v35 = vrot.slane %v3918_v25, 2 }
 0x1ef   : > { %v3836_v56 = vadd.f32 %v4918_v54, %v6926_v46  ;;  %v3888_v2 = vmax.f32 %v3872_v13, %v3873_v10  ;;  %v4921_v45 = vadd.f32 %v4920_v17, %v4919_v60  ;;  %v3914_v54 = vrot.slane %v3913_v50, 1 }
 0x1f0   : > { %v3869_v40 = vadd.f32 %v6940_v52, %v3847_v62  ;;  %v4952_v46 = vpop.f32.mrb[116].mxu1  ;;  %v3925_v63 = vmax.f32 %v3923_v29, %v3924_v61  ;;  %v3884_v57 = vmax.f32 %v3868_v36, 0.0  ;;  %v3920_v51 = vmax.f32 %v3918_v25, %v3919_v35 }
 0x1f1   : > { %v3889_v16 = vrot.slane %v3888_v2, 4  ;;  %v3858_v28 = vadd.f32 %v6940_v52, %v3836_v56  ;;  %v3837_v58 = vadd.f32 %v4921_v45, %v6929_v20  ;;  %v4953_v43 = vpop.f32.mrb[117].mxu1  ;;  %v3915_v7 = vmax.f32 %v3913_v50, %v3914_v54 }
 0x1f2   : > { %v3885_v39 = vmax.f32 %v3869_v40, 0.0  ;;  %v4954_v55 = vadd.f32 %v4953_v43, %v4952_v46  ;;  %v4955_v59 = vpop.f32.mrb[118].mxu1  ;;  %v3926_v19 = vrot.slane %v3925_v63, 2  ;;  %v3921_v11 = vrot.slane %v3920_v51, 1 }
 0x1f3   : > { %v3890_v3 = vmax.f32 %v3888_v2, %v3889_v16  ;;  %v3859_v32 = vadd.f32 %v6940_v52, %v3837_v58  ;;  %v3874_v53 = vmax.f32 %v3858_v28, 0.0  ;;  %v4956_v15 = vpop.f32.mrb[119].mxu1 }
 0x1f4   : > { %v3930_v20 = vmax.f32 %v3884_v57, %v3885_v39  ;;  %v3848_v8 = vadd.f32 %v4954_v55, %v6952_v6  ;;  %v4957_v18 = vadd.f32 %v4956_v15, %v4955_v59  ;;  %v3927_v44 = vmax.f32 %v3925_v63, %v3926_v19 }
 0x1f5   : > { %v3875_v26 = vmax.f32 %v3859_v32, 0.0  ;;  %v3891_v1 = vrot.slane %v3890_v3, 2  ;;  %v3907_v6 = vrot.slane %v3906_v23, 1  ;;  %v3922_v29 = vmax.f32 %v3920_v51, %v3921_v11 }
 0x1f6   : > { %v3931_v42 = vrot.slane %v3930_v20, 4  ;;  %v3870_v22 = vadd.f32 %v6940_v52, %v3848_v8  ;;  %v3849_v34 = vadd.f32 %v4957_v18, %v6955_v21  ;;  %v3928_v10 = vrot.slane %v3927_v44, 1 }
 0x1f7   : > { %v3895_v14 = vmax.f32 %v3874_v53, %v3875_v26  ;;  %v3892_v24 = vmax.f32 %v3890_v3, %v3891_v1  ;;  %v3908_v17 = vmax.f32 %v3906_v23, %v3907_v6 }
 0x1f8   : > { %v3932_v5 = vmax.f32 %v3930_v20, %v3931_v42  ;;  %v3871_v4 = vadd.f32 %v6940_v52, %v3849_v34  ;;  %v3886_v30 = vmax.f32 %v3870_v22, 0.0  ;;  %v4433_v52 = vld [vmem:[%s7003_s7] ss:$0 sm:$0xff]  ;;  %v3929_v47 = vmax.f32 %v3927_v44, %v3928_v10 }
 0x1f9   : > { %v3896_v0 = vrot.slane %v3895_v14, 4  ;;  %v3893_v21 = vrot.slane %v3892_v24, 1  ;;  %v4000_v36 = vmul.f32 %v4433_v52, %v3908_v17  ;;  %v4001_v28 = vmul.f32 %v4433_v52, %v3915_v7 }
 0x1fa   : > { %v3933_v38 = vrot.slane %v3932_v5, 2  ;;  %v3887_v49 = vmax.f32 %v3871_v4, 0.0  ;;  %v4002_v25 = vmul.f32 %v4433_v52, %v3922_v29  ;;  %v4003_v63 = vmul.f32 %v4433_v52, %v3929_v47 }
 0x1fb   : > { %v3897_v9 = vmax.f32 %v3895_v14, %v3896_v0  ;;  %v3894_v45 = vmax.f32 %v3892_v24, %v3893_v21  ;;  %v4016_v3 = vrot.slane %v4000_v36, 6  ;;  %v4018_v57 = vrot.slane %v4001_v28, 5  ;;  %v4434_v14 = vld [vmem:[#allocation2] ss:$0 sm:$0xff] }
 0x1fc   : > { %v3934_v37 = vmax.f32 %v3932_v5, %v3933_v38  ;;  %v3937_v13 = vmax.f32 %v3886_v30, %v3887_v49  ;;  %v4020_v59 = vrot.slane %v4002_v25, 4  ;;  %v4022_v53 = vrot.slane %v4003_v63, 3 }
 0x1fd   : > { %v3898_v60 = vrot.slane %v3897_v9, 2  ;;  %v3998_v40 = vmul.f32 %v4433_v52, %v3894_v45 }
 0x1fe   : > { %v3938_v31 = vrot.slane %v3937_v13, 4  ;;  %v3935_v12 = vrot.slane %v3934_v37, 1 }
 0x1ff   : > { %v3899_v48 = vmax.f32 %v3897_v9, %v3898_v60 }
 0x200   : > { %v3939_v2 = vmax.f32 %v3937_v13, %v3938_v31  ;;  %v3936_v61 = vmax.f32 %v3934_v37, %v3935_v12 }
 0x201   : > { %v3900_v56 = vrot.slane %v3899_v48, 1 }
 0x202   : > { %v3940_v62 = vrot.slane %v3939_v2, 2  ;;  %v4004_v32 = vmul.f32 %v4433_v52, %v3936_v61 }
 0x203   : > { %v3901_v33 = vmax.f32 %v3899_v48, %v3900_v56 }
 0x204   : > { %v3941_v58 = vmax.f32 %v3939_v2, %v3940_v62  ;;  %v4024_v35 = vrot.slane %v4004_v32, 2 }
 0x205   : > { %v3999_v16 = vmul.f32 %v4433_v52, %v3901_v33  ;;  %v3990_v1 = vpop.xlane.xlu0 %3989 }
 0x206   : > { %v3942_v43 = vrot.slane %v3941_v58, 1 }
 0x207   : > { %v4014_v46 = vrot.slane %v3999_v16, 7 }
 0x208   : > { %v3943_v39 = vmax.f32 %v3941_v58, %v3942_v43 }
 0x209   : > { %v4015_v27 = vsel %vm3968_vm12, %v4014_v46, %v3998_v40 }
 0x20a   : > { %v4017_v55 = vsel %vm3971_vm13, %v4016_v3, %v4015_v27  ;;  %v4005_v26 = vmul.f32 %v4433_v52, %v3943_v39 }
 0x20b   : > { %v4019_v41 = vsel %vm3974_vm14, %v4018_v57, %v4017_v55 }
 0x20c   : > { %v4021_v15 = vsel %vm3977_vm15, %v4020_v59, %v4019_v41  ;;  %v4026_v18 = vrot.slane %v4005_v26, 1 }
 0x20d   : > { %v4023_v20 = vsel %vm3980_vm0, %v4022_v53, %v4021_v15 }
 0x20e   : > { %v4025_v8 = vsel %vm3983_vm1, %v4024_v35, %v4023_v20 }
 0x20f   : > { %v4027_v19 = vsel %vm3986_vm2, %v4026_v18, %v4025_v8 }
 0x210   : > { %4029 = vadd.xlane.f32.xlu0 %v4027_v19 }
 0x29d   : > { %v4030_v23 = vpop.xlane.xlu0 %4029 }
 0x29e   : > { %v4031_v42 = vadd.f32 %v4030_v23, %v3990_v1 }
 0x2a0   : > { %v4039_v22 = vadd.f32 %v4434_v14, %v4031_v42 }
 0x2a2   : > { %4041 = vst.msk [vmem:[%s362_s14] sm:$0xff] %vm4040_vm3, %v4039_v22 }
 0x2a3 PF: > { %s21_s11 = sadd.s32 1, %s5194_s11  }
 0x2a4   : > { %p18_p5 = scmp.ge.s32.totalorder %s21_s11, 4  }
 0x2a6   :  { %20 = sbr.rel (!%p18_p5) target bundleno = 3 (0x3), region = 89 }

</bundles_post_ra>
